<compile_context>
chip_gen: v6e
topology: v6e:2x2x1
jax: 0.10.0
libtpu: 0.0.40
codegen_flags: <defaults>
</compile_context>

<pallas_src>
import functools
import math

import jax
import jax.numpy as jnp
from jax.experimental import pallas as pl
from jax.experimental.pallas import tpu as pltpu


_NITER = 20        # bisection passes: bracket [-1,1] -> final width ~2e-6
_MAX_T_BLK = 4096  # cap on the time-tile (lane) width per grid step


def _round_up(x, m):
    return ((x + m - 1) // m) * m


# ----------------------------------------------------------------------------
# Fused kernel: stage-1 sparsemax over instruments + stage-2 sparsemax over
# lst-long time frames, on one lane-dense (n_insts, t_blk) VMEM tile.
# ----------------------------------------------------------------------------
def _fused_sparsemax_kernel(x_ref, o_ref, *, n_insts, lst, niter):
    ni = n_insts
    x = x_ref[0, :, :].astype(jnp.float32)          # (NI, T), time on lanes
    t = x.shape[-1]

    # ---- stage 1: exact sparsemax over the instrument axis (axis 0) --------
    # r[i,c] = #{j : x[j,c] >= x[i,c]},  s[i,c] = sum{x[j,c] : x[j,c] >= x[i,c]}
    r = jnp.zeros_like(x)
    s = jnp.zeros_like(x)
    for j in range(ni):
        zj = x[j:j + 1, :]                          # (1, T)
        ge = zj >= x                                # (NI, T)
        r = r + jnp.where(ge, 1.0, 0.0)
        s = s + jnp.where(ge, zj, 0.0)
    # Vectorized support count / sum: full-tile VPU ops + 2 sublane reduces.
    sup = (1.0 + r * x) > s                         # (NI, T)
    cnt = jnp.sum(jnp.where(sup, 1.0, 0.0), axis=0, keepdims=True)   # (1, T)
    ssup = jnp.sum(jnp.where(sup, x, 0.0), axis=0, keepdims=True)    # (1, T)
    tau1 = (ssup - 1.0) / cnt                       # cnt >= 1 always
    y1 = jnp.maximum(x - tau1, 0.0)                 # (NI, T); columns sum to 1

    # ---- stage 2: sparsemax over every aligned lst-long lane segment -------
    # Per-frame reductions via an XOR butterfly of lane rotations; every lane
    # of a frame ends up holding that frame's sum, so per-frame scalars stay in
    # broadcast (NI, T) form and no relayout / masked store is ever needed.
    lane = jax.lax.broadcasted_iota(jnp.int32, (ni, t), 1)

    def seg_allreduce(v):
        acc = v
        shift = 1
        while shift < lst:
            up = pltpu.roll(acc, t - shift, axis=1)   # acc[lane + shift]
            dn = pltpu.roll(acc, shift, axis=1)       # acc[lane - shift]
            acc = acc + jnp.where((lane & shift) == 0, up, dn)
            shift *= 2
        return acc                                    # frame sum, on every lane

    # tau bisection (lo-only; half-width is a compile-time constant).
    # Stage-1 outputs lie in [0, 1], so tau* is bracketed by [-1, 1].
    lo = jnp.full_like(y1, -1.0)
    w = 2.0
    for _ in range(niter):
        w *= 0.5
        mid = lo + w
        f = seg_allreduce(jnp.maximum(y1 - mid, 0.0))
        lo = jnp.where(f >= 1.0, mid, lo)

    # Exact finishing step: support from the final bracket midpoint, then
    # tau = (sum(support) - 1) / |support|.
    mid = lo + 0.5 * w
    msk = y1 > mid
    kk = seg_allreduce(jnp.where(msk, 1.0, 0.0))
    sm = seg_allreduce(jnp.where(msk, y1, 0.0))
    tau2 = (sm - 1.0) / jnp.maximum(kk, 1.0)        # kk >= 1 always
    y2 = jnp.maximum(y1 - tau2, 0.0)

    # Single unmasked lane-dense store.
    o_ref[0, :, :] = y2.astype(o_ref.dtype)


# ----------------------------------------------------------------------------
# Wrapper: single pad + single fused pallas_call + final slice.
# ----------------------------------------------------------------------------
@functools.partial(jax.jit, static_argnames=("lst",))
def sequential_sparsemax(midis_out, lst=64):
    """midis_out: (batch, n_insts, time) — same semantics as the PyTorch module."""
    if lst & (lst - 1):
        raise ValueError("sparsemax_lst must be a power of two")
    batch, n_insts, time = midis_out.shape

    # Module-mandated pad to a multiple of lst; the extra pad to a lane-dense
    # tile only adds whole zero frames that never mix with real samples and are
    # sliced off at the end.
    t_pad = _round_up(time, lst)
    base = math.lcm(lst, 128)                     # whole frames + lane-dense
    cap = max(base, (_MAX_T_BLK // base) * base)
    t_min = _round_up(t_pad, base)
    t_blk = min(t_min, cap)
    # v7x has 2 TensorCores: keep >= 2 parallel grid steps when batch == 1.
    if batch == 1 and t_blk >= 2 * base and _round_up(t_min, t_blk) // t_blk < 2:
        t_blk = _round_up((t_blk + 1) // 2, base)
    t_tile = _round_up(t_min, t_blk)

    x = jnp.pad(midis_out, ((0, 0), (0, 0), (0, t_tile - time)))

    kernel = functools.partial(
        _fused_sparsemax_kernel, n_insts=n_insts, lst=lst, niter=_NITER)

    n_elems = batch * n_insts * t_tile
    cost = pl.CostEstimate(
        flops=int(n_elems * (5 * n_insts
                             + (4 * int(math.log2(lst)) + 8) * (_NITER + 2))),
        transcendentals=0,
        bytes_accessed=int(2 * n_elems * midis_out.dtype.itemsize))

    out = pl.pallas_call(
        kernel,
        out_shape=jax.ShapeDtypeStruct((batch, n_insts, t_tile), midis_out.dtype),
        grid=(batch, t_tile // t_blk),
        in_specs=[pl.BlockSpec((1, n_insts, t_blk), lambda b, t: (b, 0, t))],
        out_specs=pl.BlockSpec((1, n_insts, t_blk), lambda b, t: (b, 0, t)),
        compiler_params=pltpu.CompilerParams(
            dimension_semantics=("parallel", "parallel")),
        cost_estimate=cost,
    )(x)

    return out[:, :, :time]


# ----------------------------------------------------------------------------
# Pure-JAX reference (sort-based sparsemax) for correctness checking.
# ----------------------------------------------------------------------------
def _ref_sparsemax_lastdim(z):
    z = z - jnp.max(z, axis=-1, keepdims=True)
    n = z.shape[-1]
    z_sorted = jnp.flip(jnp.sort(z, axis=-1), axis=-1)
    ks = jnp.arange(1, n + 1, dtype=z.dtype)
    cumsum = jnp.cumsum(z_sorted, axis=-1)
    cond = 1.0 + ks * z_sorted > cumsum
    k = jnp.sum(cond.astype(jnp.int32), axis=-1, keepdims=True)
    tau = (jnp.take_along_axis(cumsum, k - 1, axis=-1) - 1.0) / k.astype(z.dtype)
    return jnp.maximum(z - tau, 0.0)


def _ref_forward(midis_out, lst):
    batch, n_insts, time = midis_out.shape
    len_pad = (lst - time % lst) % lst
    x = jnp.pad(midis_out, ((0, 0), (0, 0), (0, len_pad)))
    x = jnp.transpose(_ref_sparsemax_lastdim(jnp.transpose(x, (0, 2, 1))), (0, 2, 1))
    t_pad = time + len_pad
    x = x.reshape(batch, n_insts, t_pad // lst, lst)
    x = _ref_sparsemax_lastdim(x)
    x = x.reshape(batch, n_insts, t_pad)
    return x[:, :, :time]


if __name__ == "__main__":
    LST = 64
    key = jax.random.PRNGKey(0)
    k1, k2, k3 = jax.random.split(key, 3)

    # Test 1: small, time not a multiple of lst (padding + 2 frames).
    x1 = jax.random.normal(k1, (2, 4, 100), dtype=jnp.float32)
    out1 = jax.block_until_ready(sequential_sparsemax(x1, lst=LST))
    ref1 = jax.block_until_ready(_ref_forward(x1, LST))
    assert out1.shape == x1.shape
    assert jnp.allclose(out1, ref1, atol=2e-5, rtol=1e-5), "test1 mismatch vs reference"

    # Test 2: longer time, n_insts=6, multiple batch rows.
    x2 = jax.random.normal(k2, (2, 6, 1500), dtype=jnp.float32)
    out2 = jax.block_until_ready(sequential_sparsemax(x2, lst=LST))
    ref2 = jax.block_until_ready(_ref_forward(x2, LST))
    assert out2.shape == x2.shape
    assert jnp.allclose(out2, ref2, atol=2e-5, rtol=1e-5), "test2 mismatch vs reference"

    # Test 3: batch == 1 exercises the >=2-parallel-grid-steps split.
    x3 = jax.random.normal(k3, (1, 5, 700), dtype=jnp.float32)
    out3 = jax.block_until_ready(sequential_sparsemax(x3, lst=LST))
    ref3 = jax.block_until_ready(_ref_forward(x3, LST))
    assert out3.shape == x3.shape
    assert jnp.allclose(out3, ref3, atol=2e-5, rtol=1e-5), "test3 mismatch vs reference"

    print("KERNEL_OK")
</pallas_src>

<mosaic_0001>
module attributes {stable_mosaic.version = 11 : i64} {
  func.func @_fused_sparsemax_kernel(%arg0: i32, %arg1: i32, %arg2: memref<1x4x128xf32, #tpu.memory_space<vmem>>, %arg3: memref<1x4x128xf32, #tpu.memory_space<vmem>>) attributes {dimension_semantics = [#tpu.dimension_semantics<parallel>, #tpu.dimension_semantics<parallel>], iteration_bounds = array<i64: 2, 1>, scalar_prefetch = 0 : i64, scratch_operands = 0 : i64, tpu.core_type = #tpu.core_type<tc>, window_params = [{transform_indices = @transform_0, window_bounds = array<i64: 1, 4, 128>}, {transform_indices = @transform_1, window_bounds = array<i64: 1, 4, 128>}]} {
    %c0 = arith.constant 0 : index
    %c0_0 = arith.constant 0 : index
    %c0_1 = arith.constant 0 : index
    %0 = vector.load %arg2[%c0, %c0_0, %c0_1] : memref<1x4x128xf32, #tpu.memory_space<vmem>>, vector<1x4x128xf32>
    %1 = vector.shape_cast %0 : vector<1x4x128xf32> to vector<4x128xf32>
    %cst = arith.constant 0.000000e+00 : f32
    %2 = vector.broadcast %cst : f32 to vector<4x128xf32>
    %cst_2 = arith.constant 0.000000e+00 : f32
    %3 = vector.broadcast %cst_2 : f32 to vector<4x128xf32>
    %4 = vector.extract_strided_slice %1 {offsets = [0, 0], sizes = [1, 128], strides = [1, 1]} : vector<4x128xf32> to vector<1x128xf32>
    %5 = vector.broadcast %4 : vector<1x128xf32> to vector<4x128xf32>
    %6 = arith.cmpf oge, %5, %1 : vector<4x128xf32>
    %cst_3 = arith.constant 1.000000e+00 : f32
    %cst_4 = arith.constant 0.000000e+00 : f32
    %7 = vector.broadcast %cst_3 : f32 to vector<4x128xf32>
    %8 = vector.broadcast %cst_4 : f32 to vector<4x128xf32>
    %9 = arith.select %6, %7, %8 : vector<4x128xi1>, vector<4x128xf32>
    %10 = arith.addf %2, %9 : vector<4x128xf32>
    %cst_5 = arith.constant 0.000000e+00 : f32
    %11 = vector.shape_cast %4 : vector<1x128xf32> to vector<1x128xf32>
    %12 = vector.broadcast %11 : vector<1x128xf32> to vector<4x128xf32>
    %13 = vector.broadcast %cst_5 : f32 to vector<4x128xf32>
    %14 = arith.select %6, %12, %13 : vector<4x128xi1>, vector<4x128xf32>
    %15 = arith.addf %3, %14 : vector<4x128xf32>
    %16 = vector.extract_strided_slice %1 {offsets = [1, 0], sizes = [1, 128], strides = [1, 1]} : vector<4x128xf32> to vector<1x128xf32>
    %17 = vector.broadcast %16 : vector<1x128xf32> to vector<4x128xf32>
    %18 = arith.cmpf oge, %17, %1 : vector<4x128xf32>
    %cst_6 = arith.constant 1.000000e+00 : f32
    %cst_7 = arith.constant 0.000000e+00 : f32
    %19 = vector.broadcast %cst_6 : f32 to vector<4x128xf32>
    %20 = vector.broadcast %cst_7 : f32 to vector<4x128xf32>
    %21 = arith.select %18, %19, %20 : vector<4x128xi1>, vector<4x128xf32>
    %22 = arith.addf %10, %21 : vector<4x128xf32>
    %cst_8 = arith.constant 0.000000e+00 : f32
    %23 = vector.shape_cast %16 : vector<1x128xf32> to vector<1x128xf32>
    %24 = vector.broadcast %23 : vector<1x128xf32> to vector<4x128xf32>
    %25 = vector.broadcast %cst_8 : f32 to vector<4x128xf32>
    %26 = arith.select %18, %24, %25 : vector<4x128xi1>, vector<4x128xf32>
    %27 = arith.addf %15, %26 : vector<4x128xf32>
    %28 = vector.extract_strided_slice %1 {offsets = [2, 0], sizes = [1, 128], strides = [1, 1]} : vector<4x128xf32> to vector<1x128xf32>
    %29 = vector.broadcast %28 : vector<1x128xf32> to vector<4x128xf32>
    %30 = arith.cmpf oge, %29, %1 : vector<4x128xf32>
    %cst_9 = arith.constant 1.000000e+00 : f32
    %cst_10 = arith.constant 0.000000e+00 : f32
    %31 = vector.broadcast %cst_9 : f32 to vector<4x128xf32>
    %32 = vector.broadcast %cst_10 : f32 to vector<4x128xf32>
    %33 = arith.select %30, %31, %32 : vector<4x128xi1>, vector<4x128xf32>
    %34 = arith.addf %22, %33 : vector<4x128xf32>
    %cst_11 = arith.constant 0.000000e+00 : f32
    %35 = vector.shape_cast %28 : vector<1x128xf32> to vector<1x128xf32>
    %36 = vector.broadcast %35 : vector<1x128xf32> to vector<4x128xf32>
    %37 = vector.broadcast %cst_11 : f32 to vector<4x128xf32>
    %38 = arith.select %30, %36, %37 : vector<4x128xi1>, vector<4x128xf32>
    %39 = arith.addf %27, %38 : vector<4x128xf32>
    %40 = vector.extract_strided_slice %1 {offsets = [3, 0], sizes = [1, 128], strides = [1, 1]} : vector<4x128xf32> to vector<1x128xf32>
    %41 = vector.broadcast %40 : vector<1x128xf32> to vector<4x128xf32>
    %42 = arith.cmpf oge, %41, %1 : vector<4x128xf32>
    %cst_12 = arith.constant 1.000000e+00 : f32
    %cst_13 = arith.constant 0.000000e+00 : f32
    %43 = vector.broadcast %cst_12 : f32 to vector<4x128xf32>
    %44 = vector.broadcast %cst_13 : f32 to vector<4x128xf32>
    %45 = arith.select %42, %43, %44 : vector<4x128xi1>, vector<4x128xf32>
    %46 = arith.addf %34, %45 : vector<4x128xf32>
    %cst_14 = arith.constant 0.000000e+00 : f32
    %47 = vector.shape_cast %40 : vector<1x128xf32> to vector<1x128xf32>
    %48 = vector.broadcast %47 : vector<1x128xf32> to vector<4x128xf32>
    %49 = vector.broadcast %cst_14 : f32 to vector<4x128xf32>
    %50 = arith.select %42, %48, %49 : vector<4x128xi1>, vector<4x128xf32>
    %51 = arith.addf %39, %50 : vector<4x128xf32>
    %52 = arith.mulf %46, %1 : vector<4x128xf32>
    %cst_15 = arith.constant 1.000000e+00 : f32
    %53 = vector.broadcast %cst_15 : f32 to vector<4x128xf32>
    %54 = arith.addf %53, %52 : vector<4x128xf32>
    %55 = arith.cmpf ogt, %54, %51 : vector<4x128xf32>
    %cst_16 = arith.constant 1.000000e+00 : f32
    %cst_17 = arith.constant 0.000000e+00 : f32
    %56 = vector.broadcast %cst_16 : f32 to vector<4x128xf32>
    %57 = vector.broadcast %cst_17 : f32 to vector<4x128xf32>
    %58 = arith.select %55, %56, %57 : vector<4x128xi1>, vector<4x128xf32>
    %cst_18 = arith.constant dense<0.000000e+00> : vector<128xf32>
    %59 = vector.multi_reduction <add>, %58, %cst_18 [0] : vector<4x128xf32> to vector<128xf32>
    %60 = vector.shape_cast %59 : vector<128xf32> to vector<1x128xf32>
    %cst_19 = arith.constant 0.000000e+00 : f32
    %61 = vector.broadcast %cst_19 : f32 to vector<4x128xf32>
    %62 = arith.select %55, %1, %61 : vector<4x128xi1>, vector<4x128xf32>
    %cst_20 = arith.constant dense<0.000000e+00> : vector<128xf32>
    %63 = vector.multi_reduction <add>, %62, %cst_20 [0] : vector<4x128xf32> to vector<128xf32>
    %64 = vector.shape_cast %63 : vector<128xf32> to vector<1x128xf32>
    %cst_21 = arith.constant 1.000000e+00 : f32
    %65 = vector.broadcast %cst_21 : f32 to vector<1x128xf32>
    %66 = arith.subf %64, %65 : vector<1x128xf32>
    %67 = arith.divf %66, %60 : vector<1x128xf32>
    %68 = vector.broadcast %67 : vector<1x128xf32> to vector<4x128xf32>
    %69 = arith.subf %1, %68 : vector<4x128xf32>
    %cst_22 = arith.constant 0.000000e+00 : f32
    %70 = vector.broadcast %cst_22 : f32 to vector<4x128xf32>
    %71 = arith.maximumf %69, %70 : vector<4x128xf32>
    %72 = tpu.iota {dimensions = array<i32: 1>} : vector<4x128xi32>
    %cst_23 = arith.constant -1.000000e+00 : f32
    %73 = vector.broadcast %cst_23 : f32 to vector<4x128xf32>
    %cst_24 = arith.constant 1.000000e+00 : f32
    %74 = vector.broadcast %cst_24 : f32 to vector<4x128xf32>
    %75 = arith.addf %73, %74 : vector<4x128xf32>
    %76 = arith.subf %71, %75 : vector<4x128xf32>
    %cst_25 = arith.constant 0.000000e+00 : f32
    %77 = vector.broadcast %cst_25 : f32 to vector<4x128xf32>
    %78 = arith.maximumf %76, %77 : vector<4x128xf32>
    %c127_i32 = arith.constant 127 : i32
    %79 = tpu.dynamic_rotate %78 by %c127_i32 dim 1 : vector<4x128xf32>, i32 -> vector<4x128xf32>
    %c1_i32 = arith.constant 1 : i32
    %80 = tpu.dynamic_rotate %78 by %c1_i32 dim 1 : vector<4x128xf32>, i32 -> vector<4x128xf32>
    %c1_i32_26 = arith.constant 1 : i32
    %81 = vector.broadcast %c1_i32_26 : i32 to vector<4x128xi32>
    %82 = arith.andi %72, %81 : vector<4x128xi32>
    %c0_i32 = arith.constant 0 : i32
    %83 = vector.broadcast %c0_i32 : i32 to vector<4x128xi32>
    %84 = arith.cmpi eq, %82, %83 : vector<4x128xi32>
    %85 = arith.select %84, %79, %80 : vector<4x128xi1>, vector<4x128xf32>
    %86 = arith.addf %78, %85 : vector<4x128xf32>
    %c126_i32 = arith.constant 126 : i32
    %87 = tpu.dynamic_rotate %86 by %c126_i32 dim 1 : vector<4x128xf32>, i32 -> vector<4x128xf32>
    %c2_i32 = arith.constant 2 : i32
    %88 = tpu.dynamic_rotate %86 by %c2_i32 dim 1 : vector<4x128xf32>, i32 -> vector<4x128xf32>
    %c2_i32_27 = arith.constant 2 : i32
    %89 = vector.broadcast %c2_i32_27 : i32 to vector<4x128xi32>
    %90 = arith.andi %72, %89 : vector<4x128xi32>
    %c0_i32_28 = arith.constant 0 : i32
    %91 = vector.broadcast %c0_i32_28 : i32 to vector<4x128xi32>
    %92 = arith.cmpi eq, %90, %91 : vector<4x128xi32>
    %93 = arith.select %92, %87, %88 : vector<4x128xi1>, vector<4x128xf32>
    %94 = arith.addf %86, %93 : vector<4x128xf32>
    %c124_i32 = arith.constant 124 : i32
    %95 = tpu.dynamic_rotate %94 by %c124_i32 dim 1 : vector<4x128xf32>, i32 -> vector<4x128xf32>
    %c4_i32 = arith.constant 4 : i32
    %96 = tpu.dynamic_rotate %94 by %c4_i32 dim 1 : vector<4x128xf32>, i32 -> vector<4x128xf32>
    %c4_i32_29 = arith.constant 4 : i32
    %97 = vector.broadcast %c4_i32_29 : i32 to vector<4x128xi32>
    %98 = arith.andi %72, %97 : vector<4x128xi32>
    %c0_i32_30 = arith.constant 0 : i32
    %99 = vector.broadcast %c0_i32_30 : i32 to vector<4x128xi32>
    %100 = arith.cmpi eq, %98, %99 : vector<4x128xi32>
    %101 = arith.select %100, %95, %96 : vector<4x128xi1>, vector<4x128xf32>
    %102 = arith.addf %94, %101 : vector<4x128xf32>
    %c120_i32 = arith.constant 120 : i32
    %103 = tpu.dynamic_rotate %102 by %c120_i32 dim 1 : vector<4x128xf32>, i32 -> vector<4x128xf32>
    %c8_i32 = arith.constant 8 : i32
    %104 = tpu.dynamic_rotate %102 by %c8_i32 dim 1 : vector<4x128xf32>, i32 -> vector<4x128xf32>
    %c8_i32_31 = arith.constant 8 : i32
    %105 = vector.broadcast %c8_i32_31 : i32 to vector<4x128xi32>
    %106 = arith.andi %72, %105 : vector<4x128xi32>
    %c0_i32_32 = arith.constant 0 : i32
    %107 = vector.broadcast %c0_i32_32 : i32 to vector<4x128xi32>
    %108 = arith.cmpi eq, %106, %107 : vector<4x128xi32>
    %109 = arith.select %108, %103, %104 : vector<4x128xi1>, vector<4x128xf32>
    %110 = arith.addf %102, %109 : vector<4x128xf32>
    %c112_i32 = arith.constant 112 : i32
    %111 = tpu.dynamic_rotate %110 by %c112_i32 dim 1 : vector<4x128xf32>, i32 -> vector<4x128xf32>
    %c16_i32 = arith.constant 16 : i32
    %112 = tpu.dynamic_rotate %110 by %c16_i32 dim 1 : vector<4x128xf32>, i32 -> vector<4x128xf32>
    %c16_i32_33 = arith.constant 16 : i32
    %113 = vector.broadcast %c16_i32_33 : i32 to vector<4x128xi32>
    %114 = arith.andi %72, %113 : vector<4x128xi32>
    %c0_i32_34 = arith.constant 0 : i32
    %115 = vector.broadcast %c0_i32_34 : i32 to vector<4x128xi32>
    %116 = arith.cmpi eq, %114, %115 : vector<4x128xi32>
    %117 = arith.select %116, %111, %112 : vector<4x128xi1>, vector<4x128xf32>
    %118 = arith.addf %110, %117 : vector<4x128xf32>
    %c96_i32 = arith.constant 96 : i32
    %119 = tpu.dynamic_rotate %118 by %c96_i32 dim 1 : vector<4x128xf32>, i32 -> vector<4x128xf32>
    %c32_i32 = arith.constant 32 : i32
    %120 = tpu.dynamic_rotate %118 by %c32_i32 dim 1 : vector<4x128xf32>, i32 -> vector<4x128xf32>
    %c32_i32_35 = arith.constant 32 : i32
    %121 = vector.broadcast %c32_i32_35 : i32 to vector<4x128xi32>
    %122 = arith.andi %72, %121 : vector<4x128xi32>
    %c0_i32_36 = arith.constant 0 : i32
    %123 = vector.broadcast %c0_i32_36 : i32 to vector<4x128xi32>
    %124 = arith.cmpi eq, %122, %123 : vector<4x128xi32>
    %125 = arith.select %124, %119, %120 : vector<4x128xi1>, vector<4x128xf32>
    %126 = arith.addf %118, %125 : vector<4x128xf32>
    %cst_37 = arith.constant 1.000000e+00 : f32
    %127 = vector.broadcast %cst_37 : f32 to vector<4x128xf32>
    %128 = arith.cmpf oge, %126, %127 : vector<4x128xf32>
    %129 = arith.select %128, %75, %73 : vector<4x128xi1>, vector<4x128xf32>
    %cst_38 = arith.constant 5.000000e-01 : f32
    %130 = vector.broadcast %cst_38 : f32 to vector<4x128xf32>
    %131 = arith.addf %129, %130 : vector<4x128xf32>
    %132 = arith.subf %71, %131 : vector<4x128xf32>
    %cst_39 = arith.constant 0.000000e+00 : f32
    %133 = vector.broadcast %cst_39 : f32 to vector<4x128xf32>
    %134 = arith.maximumf %132, %133 : vector<4x128xf32>
    %c127_i32_40 = arith.constant 127 : i32
    %135 = tpu.dynamic_rotate %134 by %c127_i32_40 dim 1 : vector<4x128xf32>, i32 -> vector<4x128xf32>
    %c1_i32_41 = arith.constant 1 : i32
    %136 = tpu.dynamic_rotate %134 by %c1_i32_41 dim 1 : vector<4x128xf32>, i32 -> vector<4x128xf32>
    %c1_i32_42 = arith.constant 1 : i32
    %137 = vector.broadcast %c1_i32_42 : i32 to vector<4x128xi32>
    %138 = arith.andi %72, %137 : vector<4x128xi32>
    %c0_i32_43 = arith.constant 0 : i32
    %139 = vector.broadcast %c0_i32_43 : i32 to vector<4x128xi32>
    %140 = arith.cmpi eq, %138, %139 : vector<4x128xi32>
    %141 = arith.select %140, %135, %136 : vector<4x128xi1>, vector<4x128xf32>
    %142 = arith.addf %134, %141 : vector<4x128xf32>
    %c126_i32_44 = arith.constant 126 : i32
    %143 = tpu.dynamic_rotate %142 by %c126_i32_44 dim 1 : vector<4x128xf32>, i32 -> vector<4x128xf32>
    %c2_i32_45 = arith.constant 2 : i32
    %144 = tpu.dynamic_rotate %142 by %c2_i32_45 dim 1 : vector<4x128xf32>, i32 -> vector<4x128xf32>
    %c2_i32_46 = arith.constant 2 : i32
    %145 = vector.broadcast %c2_i32_46 : i32 to vector<4x128xi32>
    %146 = arith.andi %72, %145 : vector<4x128xi32>
    %c0_i32_47 = arith.constant 0 : i32
    %147 = vector.broadcast %c0_i32_47 : i32 to vector<4x128xi32>
    %148 = arith.cmpi eq, %146, %147 : vector<4x128xi32>
    %149 = arith.select %148, %143, %144 : vector<4x128xi1>, vector<4x128xf32>
    %150 = arith.addf %142, %149 : vector<4x128xf32>
    %c124_i32_48 = arith.constant 124 : i32
    %151 = tpu.dynamic_rotate %150 by %c124_i32_48 dim 1 : vector<4x128xf32>, i32 -> vector<4x128xf32>
    %c4_i32_49 = arith.constant 4 : i32
    %152 = tpu.dynamic_rotate %150 by %c4_i32_49 dim 1 : vector<4x128xf32>, i32 -> vector<4x128xf32>
    %c4_i32_50 = arith.constant 4 : i32
    %153 = vector.broadcast %c4_i32_50 : i32 to vector<4x128xi32>
    %154 = arith.andi %72, %153 : vector<4x128xi32>
    %c0_i32_51 = arith.constant 0 : i32
    %155 = vector.broadcast %c0_i32_51 : i32 to vector<4x128xi32>
    %156 = arith.cmpi eq, %154, %155 : vector<4x128xi32>
    %157 = arith.select %156, %151, %152 : vector<4x128xi1>, vector<4x128xf32>
    %158 = arith.addf %150, %157 : vector<4x128xf32>
    %c120_i32_52 = arith.constant 120 : i32
    %159 = tpu.dynamic_rotate %158 by %c120_i32_52 dim 1 : vector<4x128xf32>, i32 -> vector<4x128xf32>
    %c8_i32_53 = arith.constant 8 : i32
    %160 = tpu.dynamic_rotate %158 by %c8_i32_53 dim 1 : vector<4x128xf32>, i32 -> vector<4x128xf32>
    %c8_i32_54 = arith.constant 8 : i32
    %161 = vector.broadcast %c8_i32_54 : i32 to vector<4x128xi32>
    %162 = arith.andi %72, %161 : vector<4x128xi32>
    %c0_i32_55 = arith.constant 0 : i32
    %163 = vector.broadcast %c0_i32_55 : i32 to vector<4x128xi32>
    %164 = arith.cmpi eq, %162, %163 : vector<4x128xi32>
    %165 = arith.select %164, %159, %160 : vector<4x128xi1>, vector<4x128xf32>
    %166 = arith.addf %158, %165 : vector<4x128xf32>
    %c112_i32_56 = arith.constant 112 : i32
    %167 = tpu.dynamic_rotate %166 by %c112_i32_56 dim 1 : vector<4x128xf32>, i32 -> vector<4x128xf32>
    %c16_i32_57 = arith.constant 16 : i32
    %168 = tpu.dynamic_rotate %166 by %c16_i32_57 dim 1 : vector<4x128xf32>, i32 -> vector<4x128xf32>
    %c16_i32_58 = arith.constant 16 : i32
    %169 = vector.broadcast %c16_i32_58 : i32 to vector<4x128xi32>
    %170 = arith.andi %72, %169 : vector<4x128xi32>
    %c0_i32_59 = arith.constant 0 : i32
    %171 = vector.broadcast %c0_i32_59 : i32 to vector<4x128xi32>
    %172 = arith.cmpi eq, %170, %171 : vector<4x128xi32>
    %173 = arith.select %172, %167, %168 : vector<4x128xi1>, vector<4x128xf32>
    %174 = arith.addf %166, %173 : vector<4x128xf32>
    %c96_i32_60 = arith.constant 96 : i32
    %175 = tpu.dynamic_rotate %174 by %c96_i32_60 dim 1 : vector<4x128xf32>, i32 -> vector<4x128xf32>
    %c32_i32_61 = arith.constant 32 : i32
    %176 = tpu.dynamic_rotate %174 by %c32_i32_61 dim 1 : vector<4x128xf32>, i32 -> vector<4x128xf32>
    %c32_i32_62 = arith.constant 32 : i32
    %177 = vector.broadcast %c32_i32_62 : i32 to vector<4x128xi32>
    %178 = arith.andi %72, %177 : vector<4x128xi32>
    %c0_i32_63 = arith.constant 0 : i32
    %179 = vector.broadcast %c0_i32_63 : i32 to vector<4x128xi32>
    %180 = arith.cmpi eq, %178, %179 : vector<4x128xi32>
    %181 = arith.select %180, %175, %176 : vector<4x128xi1>, vector<4x128xf32>
    %182 = arith.addf %174, %181 : vector<4x128xf32>
    %cst_64 = arith.constant 1.000000e+00 : f32
    %183 = vector.broadcast %cst_64 : f32 to vector<4x128xf32>
    %184 = arith.cmpf oge, %182, %183 : vector<4x128xf32>
    %185 = arith.select %184, %131, %129 : vector<4x128xi1>, vector<4x128xf32>
    %cst_65 = arith.constant 2.500000e-01 : f32
    %186 = vector.broadcast %cst_65 : f32 to vector<4x128xf32>
    %187 = arith.addf %185, %186 : vector<4x128xf32>
    %188 = arith.subf %71, %187 : vector<4x128xf32>
    %cst_66 = arith.constant 0.000000e+00 : f32
    %189 = vector.broadcast %cst_66 : f32 to vector<4x128xf32>
    %190 = arith.maximumf %188, %189 : vector<4x128xf32>
    %c127_i32_67 = arith.constant 127 : i32
    %191 = tpu.dynamic_rotate %190 by %c127_i32_67 dim 1 : vector<4x128xf32>, i32 -> vector<4x128xf32>
    %c1_i32_68 = arith.constant 1 : i32
    %192 = tpu.dynamic_rotate %190 by %c1_i32_68 dim 1 : vector<4x128xf32>, i32 -> vector<4x128xf32>
    %c1_i32_69 = arith.constant 1 : i32
    %193 = vector.broadcast %c1_i32_69 : i32 to vector<4x128xi32>
    %194 = arith.andi %72, %193 : vector<4x128xi32>
    %c0_i32_70 = arith.constant 0 : i32
    %195 = vector.broadcast %c0_i32_70 : i32 to vector<4x128xi32>
    %196 = arith.cmpi eq, %194, %195 : vector<4x128xi32>
    %197 = arith.select %196, %191, %192 : vector<4x128xi1>, vector<4x128xf32>
    %198 = arith.addf %190, %197 : vector<4x128xf32>
    %c126_i32_71 = arith.constant 126 : i32
    %199 = tpu.dynamic_rotate %198 by %c126_i32_71 dim 1 : vector<4x128xf32>, i32 -> vector<4x128xf32>
    %c2_i32_72 = arith.constant 2 : i32
    %200 = tpu.dynamic_rotate %198 by %c2_i32_72 dim 1 : vector<4x128xf32>, i32 -> vector<4x128xf32>
    %c2_i32_73 = arith.constant 2 : i32
    %201 = vector.broadcast %c2_i32_73 : i32 to vector<4x128xi32>
    %202 = arith.andi %72, %201 : vector<4x128xi32>
    %c0_i32_74 = arith.constant 0 : i32
    %203 = vector.broadcast %c0_i32_74 : i32 to vector<4x128xi32>
    %204 = arith.cmpi eq, %202, %203 : vector<4x128xi32>
    %205 = arith.select %204, %199, %200 : vector<4x128xi1>, vector<4x128xf32>
    %206 = arith.addf %198, %205 : vector<4x128xf32>
    %c124_i32_75 = arith.constant 124 : i32
    %207 = tpu.dynamic_rotate %206 by %c124_i32_75 dim 1 : vector<4x128xf32>, i32 -> vector<4x128xf32>
    %c4_i32_76 = arith.constant 4 : i32
    %208 = tpu.dynamic_rotate %206 by %c4_i32_76 dim 1 : vector<4x128xf32>, i32 -> vector<4x128xf32>
    %c4_i32_77 = arith.constant 4 : i32
    %209 = vector.broadcast %c4_i32_77 : i32 to vector<4x128xi32>
    %210 = arith.andi %72, %209 : vector<4x128xi32>
    %c0_i32_78 = arith.constant 0 : i32
    %211 = vector.broadcast %c0_i32_78 : i32 to vector<4x128xi32>
    %212 = arith.cmpi eq, %210, %211 : vector<4x128xi32>
    %213 = arith.select %212, %207, %208 : vector<4x128xi1>, vector<4x128xf32>
    %214 = arith.addf %206, %213 : vector<4x128xf32>
    %c120_i32_79 = arith.constant 120 : i32
    %215 = tpu.dynamic_rotate %214 by %c120_i32_79 dim 1 : vector<4x128xf32>, i32 -> vector<4x128xf32>
    %c8_i32_80 = arith.constant 8 : i32
    %216 = tpu.dynamic_rotate %214 by %c8_i32_80 dim 1 : vector<4x128xf32>, i32 -> vector<4x128xf32>
    %c8_i32_81 = arith.constant 8 : i32
    %217 = vector.broadcast %c8_i32_81 : i32 to vector<4x128xi32>
    %218 = arith.andi %72, %217 : vector<4x128xi32>
    %c0_i32_82 = arith.constant 0 : i32
    %219 = vector.broadcast %c0_i32_82 : i32 to vector<4x128xi32>
    %220 = arith.cmpi eq, %218, %219 : vector<4x128xi32>
    %221 = arith.select %220, %215, %216 : vector<4x128xi1>, vector<4x128xf32>
    %222 = arith.addf %214, %221 : vector<4x128xf32>
    %c112_i32_83 = arith.constant 112 : i32
    %223 = tpu.dynamic_rotate %222 by %c112_i32_83 dim 1 : vector<4x128xf32>, i32 -> vector<4x128xf32>
    %c16_i32_84 = arith.constant 16 : i32
    %224 = tpu.dynamic_rotate %222 by %c16_i32_84 dim 1 : vector<4x128xf32>, i32 -> vector<4x128xf32>
    %c16_i32_85 = arith.constant 16 : i32
    %225 = vector.broadcast %c16_i32_85 : i32 to vector<4x128xi32>
    %226 = arith.andi %72, %225 : vector<4x128xi32>
    %c0_i32_86 = arith.constant 0 : i32
    %227 = vector.broadcast %c0_i32_86 : i32 to vector<4x128xi32>
    %228 = arith.cmpi eq, %226, %227 : vector<4x128xi32>
    %229 = arith.select %228, %223, %224 : vector<4x128xi1>, vector<4x128xf32>
    %230 = arith.addf %222, %229 : vector<4x128xf32>
    %c96_i32_87 = arith.constant 96 : i32
    %231 = tpu.dynamic_rotate %230 by %c96_i32_87 dim 1 : vector<4x128xf32>, i32 -> vector<4x128xf32>
    %c32_i32_88 = arith.constant 32 : i32
    %232 = tpu.dynamic_rotate %230 by %c32_i32_88 dim 1 : vector<4x128xf32>, i32 -> vector<4x128xf32>
    %c32_i32_89 = arith.constant 32 : i32
    %233 = vector.broadcast %c32_i32_89 : i32 to vector<4x128xi32>
    %234 = arith.andi %72, %233 : vector<4x128xi32>
    %c0_i32_90 = arith.constant 0 : i32
    %235 = vector.broadcast %c0_i32_90 : i32 to vector<4x128xi32>
    %236 = arith.cmpi eq, %234, %235 : vector<4x128xi32>
    %237 = arith.select %236, %231, %232 : vector<4x128xi1>, vector<4x128xf32>
    %238 = arith.addf %230, %237 : vector<4x128xf32>
    %cst_91 = arith.constant 1.000000e+00 : f32
    %239 = vector.broadcast %cst_91 : f32 to vector<4x128xf32>
    %240 = arith.cmpf oge, %238, %239 : vector<4x128xf32>
    %241 = arith.select %240, %187, %185 : vector<4x128xi1>, vector<4x128xf32>
    %cst_92 = arith.constant 1.250000e-01 : f32
    %242 = vector.broadcast %cst_92 : f32 to vector<4x128xf32>
    %243 = arith.addf %241, %242 : vector<4x128xf32>
    %244 = arith.subf %71, %243 : vector<4x128xf32>
    %cst_93 = arith.constant 0.000000e+00 : f32
    %245 = vector.broadcast %cst_93 : f32 to vector<4x128xf32>
    %246 = arith.maximumf %244, %245 : vector<4x128xf32>
    %c127_i32_94 = arith.constant 127 : i32
    %247 = tpu.dynamic_rotate %246 by %c127_i32_94 dim 1 : vector<4x128xf32>, i32 -> vector<4x128xf32>
    %c1_i32_95 = arith.constant 1 : i32
    %248 = tpu.dynamic_rotate %246 by %c1_i32_95 dim 1 : vector<4x128xf32>, i32 -> vector<4x128xf32>
    %c1_i32_96 = arith.constant 1 : i32
    %249 = vector.broadcast %c1_i32_96 : i32 to vector<4x128xi32>
    %250 = arith.andi %72, %249 : vector<4x128xi32>
    %c0_i32_97 = arith.constant 0 : i32
    %251 = vector.broadcast %c0_i32_97 : i32 to vector<4x128xi32>
    %252 = arith.cmpi eq, %250, %251 : vector<4x128xi32>
    %253 = arith.select %252, %247, %248 : vector<4x128xi1>, vector<4x128xf32>
    %254 = arith.addf %246, %253 : vector<4x128xf32>
    %c126_i32_98 = arith.constant 126 : i32
    %255 = tpu.dynamic_rotate %254 by %c126_i32_98 dim 1 : vector<4x128xf32>, i32 -> vector<4x128xf32>
    %c2_i32_99 = arith.constant 2 : i32
    %256 = tpu.dynamic_rotate %254 by %c2_i32_99 dim 1 : vector<4x128xf32>, i32 -> vector<4x128xf32>
    %c2_i32_100 = arith.constant 2 : i32
    %257 = vector.broadcast %c2_i32_100 : i32 to vector<4x128xi32>
    %258 = arith.andi %72, %257 : vector<4x128xi32>
    %c0_i32_101 = arith.constant 0 : i32
    %259 = vector.broadcast %c0_i32_101 : i32 to vector<4x128xi32>
    %260 = arith.cmpi eq, %258, %259 : vector<4x128xi32>
    %261 = arith.select %260, %255, %256 : vector<4x128xi1>, vector<4x128xf32>
    %262 = arith.addf %254, %261 : vector<4x128xf32>
    %c124_i32_102 = arith.constant 124 : i32
    %263 = tpu.dynamic_rotate %262 by %c124_i32_102 dim 1 : vector<4x128xf32>, i32 -> vector<4x128xf32>
    %c4_i32_103 = arith.constant 4 : i32
    %264 = tpu.dynamic_rotate %262 by %c4_i32_103 dim 1 : vector<4x128xf32>, i32 -> vector<4x128xf32>
    %c4_i32_104 = arith.constant 4 : i32
    %265 = vector.broadcast %c4_i32_104 : i32 to vector<4x128xi32>
    %266 = arith.andi %72, %265 : vector<4x128xi32>
    %c0_i32_105 = arith.constant 0 : i32
    %267 = vector.broadcast %c0_i32_105 : i32 to vector<4x128xi32>
    %268 = arith.cmpi eq, %266, %267 : vector<4x128xi32>
    %269 = arith.select %268, %263, %264 : vector<4x128xi1>, vector<4x128xf32>
    %270 = arith.addf %262, %269 : vector<4x128xf32>
    %c120_i32_106 = arith.constant 120 : i32
    %271 = tpu.dynamic_rotate %270 by %c120_i32_106 dim 1 : vector<4x128xf32>, i32 -> vector<4x128xf32>
    %c8_i32_107 = arith.constant 8 : i32
    %272 = tpu.dynamic_rotate %270 by %c8_i32_107 dim 1 : vector<4x128xf32>, i32 -> vector<4x128xf32>
    %c8_i32_108 = arith.constant 8 : i32
    %273 = vector.broadcast %c8_i32_108 : i32 to vector<4x128xi32>
    %274 = arith.andi %72, %273 : vector<4x128xi32>
    %c0_i32_109 = arith.constant 0 : i32
    %275 = vector.broadcast %c0_i32_109 : i32 to vector<4x128xi32>
    %276 = arith.cmpi eq, %274, %275 : vector<4x128xi32>
    %277 = arith.select %276, %271, %272 : vector<4x128xi1>, vector<4x128xf32>
    %278 = arith.addf %270, %277 : vector<4x128xf32>
    %c112_i32_110 = arith.constant 112 : i32
    %279 = tpu.dynamic_rotate %278 by %c112_i32_110 dim 1 : vector<4x128xf32>, i32 -> vector<4x128xf32>
    %c16_i32_111 = arith.constant 16 : i32
    %280 = tpu.dynamic_rotate %278 by %c16_i32_111 dim 1 : vector<4x128xf32>, i32 -> vector<4x128xf32>
    %c16_i32_112 = arith.constant 16 : i32
    %281 = vector.broadcast %c16_i32_112 : i32 to vector<4x128xi32>
    %282 = arith.andi %72, %281 : vector<4x128xi32>
    %c0_i32_113 = arith.constant 0 : i32
    %283 = vector.broadcast %c0_i32_113 : i32 to vector<4x128xi32>
    %284 = arith.cmpi eq, %282, %283 : vector<4x128xi32>
    %285 = arith.select %284, %279, %280 : vector<4x128xi1>, vector<4x128xf32>
    %286 = arith.addf %278, %285 : vector<4x128xf32>
    %c96_i32_114 = arith.constant 96 : i32
    %287 = tpu.dynamic_rotate %286 by %c96_i32_114 dim 1 : vector<4x128xf32>, i32 -> vector<4x128xf32>
    %c32_i32_115 = arith.constant 32 : i32
    %288 = tpu.dynamic_rotate %286 by %c32_i32_115 dim 1 : vector<4x128xf32>, i32 -> vector<4x128xf32>
    %c32_i32_116 = arith.constant 32 : i32
    %289 = vector.broadcast %c32_i32_116 : i32 to vector<4x128xi32>
    %290 = arith.andi %72, %289 : vector<4x128xi32>
    %c0_i32_117 = arith.constant 0 : i32
    %291 = vector.broadcast %c0_i32_117 : i32 to vector<4x128xi32>
    %292 = arith.cmpi eq, %290, %291 : vector<4x128xi32>
    %293 = arith.select %292, %287, %288 : vector<4x128xi1>, vector<4x128xf32>
    %294 = arith.addf %286, %293 : vector<4x128xf32>
    %cst_118 = arith.constant 1.000000e+00 : f32
    %295 = vector.broadcast %cst_118 : f32 to vector<4x128xf32>
    %296 = arith.cmpf oge, %294, %295 : vector<4x128xf32>
    %297 = arith.select %296, %243, %241 : vector<4x128xi1>, vector<4x128xf32>
    %cst_119 = arith.constant 6.250000e-02 : f32
    %298 = vector.broadcast %cst_119 : f32 to vector<4x128xf32>
    %299 = arith.addf %297, %298 : vector<4x128xf32>
    %300 = arith.subf %71, %299 : vector<4x128xf32>
    %cst_120 = arith.constant 0.000000e+00 : f32
    %301 = vector.broadcast %cst_120 : f32 to vector<4x128xf32>
    %302 = arith.maximumf %300, %301 : vector<4x128xf32>
    %c127_i32_121 = arith.constant 127 : i32
    %303 = tpu.dynamic_rotate %302 by %c127_i32_121 dim 1 : vector<4x128xf32>, i32 -> vector<4x128xf32>
    %c1_i32_122 = arith.constant 1 : i32
    %304 = tpu.dynamic_rotate %302 by %c1_i32_122 dim 1 : vector<4x128xf32>, i32 -> vector<4x128xf32>
    %c1_i32_123 = arith.constant 1 : i32
    %305 = vector.broadcast %c1_i32_123 : i32 to vector<4x128xi32>
    %306 = arith.andi %72, %305 : vector<4x128xi32>
    %c0_i32_124 = arith.constant 0 : i32
    %307 = vector.broadcast %c0_i32_124 : i32 to vector<4x128xi32>
    %308 = arith.cmpi eq, %306, %307 : vector<4x128xi32>
    %309 = arith.select %308, %303, %304 : vector<4x128xi1>, vector<4x128xf32>
    %310 = arith.addf %302, %309 : vector<4x128xf32>
    %c126_i32_125 = arith.constant 126 : i32
    %311 = tpu.dynamic_rotate %310 by %c126_i32_125 dim 1 : vector<4x128xf32>, i32 -> vector<4x128xf32>
    %c2_i32_126 = arith.constant 2 : i32
    %312 = tpu.dynamic_rotate %310 by %c2_i32_126 dim 1 : vector<4x128xf32>, i32 -> vector<4x128xf32>
    %c2_i32_127 = arith.constant 2 : i32
    %313 = vector.broadcast %c2_i32_127 : i32 to vector<4x128xi32>
    %314 = arith.andi %72, %313 : vector<4x128xi32>
    %c0_i32_128 = arith.constant 0 : i32
    %315 = vector.broadcast %c0_i32_128 : i32 to vector<4x128xi32>
    %316 = arith.cmpi eq, %314, %315 : vector<4x128xi32>
    %317 = arith.select %316, %311, %312 : vector<4x128xi1>, vector<4x128xf32>
    %318 = arith.addf %310, %317 : vector<4x128xf32>
    %c124_i32_129 = arith.constant 124 : i32
    %319 = tpu.dynamic_rotate %318 by %c124_i32_129 dim 1 : vector<4x128xf32>, i32 -> vector<4x128xf32>
    %c4_i32_130 = arith.constant 4 : i32
    %320 = tpu.dynamic_rotate %318 by %c4_i32_130 dim 1 : vector<4x128xf32>, i32 -> vector<4x128xf32>
    %c4_i32_131 = arith.constant 4 : i32
    %321 = vector.broadcast %c4_i32_131 : i32 to vector<4x128xi32>
    %322 = arith.andi %72, %321 : vector<4x128xi32>
    %c0_i32_132 = arith.constant 0 : i32
    %323 = vector.broadcast %c0_i32_132 : i32 to vector<4x128xi32>
    %324 = arith.cmpi eq, %322, %323 : vector<4x128xi32>
    %325 = arith.select %324, %319, %320 : vector<4x128xi1>, vector<4x128xf32>
    %326 = arith.addf %318, %325 : vector<4x128xf32>
    %c120_i32_133 = arith.constant 120 : i32
    %327 = tpu.dynamic_rotate %326 by %c120_i32_133 dim 1 : vector<4x128xf32>, i32 -> vector<4x128xf32>
    %c8_i32_134 = arith.constant 8 : i32
    %328 = tpu.dynamic_rotate %326 by %c8_i32_134 dim 1 : vector<4x128xf32>, i32 -> vector<4x128xf32>
    %c8_i32_135 = arith.constant 8 : i32
    %329 = vector.broadcast %c8_i32_135 : i32 to vector<4x128xi32>
    %330 = arith.andi %72, %329 : vector<4x128xi32>
    %c0_i32_136 = arith.constant 0 : i32
    %331 = vector.broadcast %c0_i32_136 : i32 to vector<4x128xi32>
    %332 = arith.cmpi eq, %330, %331 : vector<4x128xi32>
    %333 = arith.select %332, %327, %328 : vector<4x128xi1>, vector<4x128xf32>
    %334 = arith.addf %326, %333 : vector<4x128xf32>
    %c112_i32_137 = arith.constant 112 : i32
    %335 = tpu.dynamic_rotate %334 by %c112_i32_137 dim 1 : vector<4x128xf32>, i32 -> vector<4x128xf32>
    %c16_i32_138 = arith.constant 16 : i32
    %336 = tpu.dynamic_rotate %334 by %c16_i32_138 dim 1 : vector<4x128xf32>, i32 -> vector<4x128xf32>
    %c16_i32_139 = arith.constant 16 : i32
    %337 = vector.broadcast %c16_i32_139 : i32 to vector<4x128xi32>
    %338 = arith.andi %72, %337 : vector<4x128xi32>
    %c0_i32_140 = arith.constant 0 : i32
    %339 = vector.broadcast %c0_i32_140 : i32 to vector<4x128xi32>
    %340 = arith.cmpi eq, %338, %339 : vector<4x128xi32>
    %341 = arith.select %340, %335, %336 : vector<4x128xi1>, vector<4x128xf32>
    %342 = arith.addf %334, %341 : vector<4x128xf32>
    %c96_i32_141 = arith.constant 96 : i32
    %343 = tpu.dynamic_rotate %342 by %c96_i32_141 dim 1 : vector<4x128xf32>, i32 -> vector<4x128xf32>
    %c32_i32_142 = arith.constant 32 : i32
    %344 = tpu.dynamic_rotate %342 by %c32_i32_142 dim 1 : vector<4x128xf32>, i32 -> vector<4x128xf32>
    %c32_i32_143 = arith.constant 32 : i32
    %345 = vector.broadcast %c32_i32_143 : i32 to vector<4x128xi32>
    %346 = arith.andi %72, %345 : vector<4x128xi32>
    %c0_i32_144 = arith.constant 0 : i32
    %347 = vector.broadcast %c0_i32_144 : i32 to vector<4x128xi32>
    %348 = arith.cmpi eq, %346, %347 : vector<4x128xi32>
    %349 = arith.select %348, %343, %344 : vector<4x128xi1>, vector<4x128xf32>
    %350 = arith.addf %342, %349 : vector<4x128xf32>
    %cst_145 = arith.constant 1.000000e+00 : f32
    %351 = vector.broadcast %cst_145 : f32 to vector<4x128xf32>
    %352 = arith.cmpf oge, %350, %351 : vector<4x128xf32>
    %353 = arith.select %352, %299, %297 : vector<4x128xi1>, vector<4x128xf32>
    %cst_146 = arith.constant 3.125000e-02 : f32
    %354 = vector.broadcast %cst_146 : f32 to vector<4x128xf32>
    %355 = arith.addf %353, %354 : vector<4x128xf32>
    %356 = arith.subf %71, %355 : vector<4x128xf32>
    %cst_147 = arith.constant 0.000000e+00 : f32
    %357 = vector.broadcast %cst_147 : f32 to vector<4x128xf32>
    %358 = arith.maximumf %356, %357 : vector<4x128xf32>
    %c127_i32_148 = arith.constant 127 : i32
    %359 = tpu.dynamic_rotate %358 by %c127_i32_148 dim 1 : vector<4x128xf32>, i32 -> vector<4x128xf32>
    %c1_i32_149 = arith.constant 1 : i32
    %360 = tpu.dynamic_rotate %358 by %c1_i32_149 dim 1 : vector<4x128xf32>, i32 -> vector<4x128xf32>
    %c1_i32_150 = arith.constant 1 : i32
    %361 = vector.broadcast %c1_i32_150 : i32 to vector<4x128xi32>
    %362 = arith.andi %72, %361 : vector<4x128xi32>
    %c0_i32_151 = arith.constant 0 : i32
    %363 = vector.broadcast %c0_i32_151 : i32 to vector<4x128xi32>
    %364 = arith.cmpi eq, %362, %363 : vector<4x128xi32>
    %365 = arith.select %364, %359, %360 : vector<4x128xi1>, vector<4x128xf32>
    %366 = arith.addf %358, %365 : vector<4x128xf32>
    %c126_i32_152 = arith.constant 126 : i32
    %367 = tpu.dynamic_rotate %366 by %c126_i32_152 dim 1 : vector<4x128xf32>, i32 -> vector<4x128xf32>
    %c2_i32_153 = arith.constant 2 : i32
    %368 = tpu.dynamic_rotate %366 by %c2_i32_153 dim 1 : vector<4x128xf32>, i32 -> vector<4x128xf32>
    %c2_i32_154 = arith.constant 2 : i32
    %369 = vector.broadcast %c2_i32_154 : i32 to vector<4x128xi32>
    %370 = arith.andi %72, %369 : vector<4x128xi32>
    %c0_i32_155 = arith.constant 0 : i32
    %371 = vector.broadcast %c0_i32_155 : i32 to vector<4x128xi32>
    %372 = arith.cmpi eq, %370, %371 : vector<4x128xi32>
    %373 = arith.select %372, %367, %368 : vector<4x128xi1>, vector<4x128xf32>
    %374 = arith.addf %366, %373 : vector<4x128xf32>
    %c124_i32_156 = arith.constant 124 : i32
    %375 = tpu.dynamic_rotate %374 by %c124_i32_156 dim 1 : vector<4x128xf32>, i32 -> vector<4x128xf32>
    %c4_i32_157 = arith.constant 4 : i32
    %376 = tpu.dynamic_rotate %374 by %c4_i32_157 dim 1 : vector<4x128xf32>, i32 -> vector<4x128xf32>
    %c4_i32_158 = arith.constant 4 : i32
    %377 = vector.broadcast %c4_i32_158 : i32 to vector<4x128xi32>
    %378 = arith.andi %72, %377 : vector<4x128xi32>
    %c0_i32_159 = arith.constant 0 : i32
    %379 = vector.broadcast %c0_i32_159 : i32 to vector<4x128xi32>
    %380 = arith.cmpi eq, %378, %379 : vector<4x128xi32>
    %381 = arith.select %380, %375, %376 : vector<4x128xi1>, vector<4x128xf32>
    %382 = arith.addf %374, %381 : vector<4x128xf32>
    %c120_i32_160 = arith.constant 120 : i32
    %383 = tpu.dynamic_rotate %382 by %c120_i32_160 dim 1 : vector<4x128xf32>, i32 -> vector<4x128xf32>
    %c8_i32_161 = arith.constant 8 : i32
    %384 = tpu.dynamic_rotate %382 by %c8_i32_161 dim 1 : vector<4x128xf32>, i32 -> vector<4x128xf32>
    %c8_i32_162 = arith.constant 8 : i32
    %385 = vector.broadcast %c8_i32_162 : i32 to vector<4x128xi32>
    %386 = arith.andi %72, %385 : vector<4x128xi32>
    %c0_i32_163 = arith.constant 0 : i32
    %387 = vector.broadcast %c0_i32_163 : i32 to vector<4x128xi32>
    %388 = arith.cmpi eq, %386, %387 : vector<4x128xi32>
    %389 = arith.select %388, %383, %384 : vector<4x128xi1>, vector<4x128xf32>
    %390 = arith.addf %382, %389 : vector<4x128xf32>
    %c112_i32_164 = arith.constant 112 : i32
    %391 = tpu.dynamic_rotate %390 by %c112_i32_164 dim 1 : vector<4x128xf32>, i32 -> vector<4x128xf32>
    %c16_i32_165 = arith.constant 16 : i32
    %392 = tpu.dynamic_rotate %390 by %c16_i32_165 dim 1 : vector<4x128xf32>, i32 -> vector<4x128xf32>
    %c16_i32_166 = arith.constant 16 : i32
    %393 = vector.broadcast %c16_i32_166 : i32 to vector<4x128xi32>
    %394 = arith.andi %72, %393 : vector<4x128xi32>
    %c0_i32_167 = arith.constant 0 : i32
    %395 = vector.broadcast %c0_i32_167 : i32 to vector<4x128xi32>
    %396 = arith.cmpi eq, %394, %395 : vector<4x128xi32>
    %397 = arith.select %396, %391, %392 : vector<4x128xi1>, vector<4x128xf32>
    %398 = arith.addf %390, %397 : vector<4x128xf32>
    %c96_i32_168 = arith.constant 96 : i32
    %399 = tpu.dynamic_rotate %398 by %c96_i32_168 dim 1 : vector<4x128xf32>, i32 -> vector<4x128xf32>
    %c32_i32_169 = arith.constant 32 : i32
    %400 = tpu.dynamic_rotate %398 by %c32_i32_169 dim 1 : vector<4x128xf32>, i32 -> vector<4x128xf32>
    %c32_i32_170 = arith.constant 32 : i32
    %401 = vector.broadcast %c32_i32_170 : i32 to vector<4x128xi32>
    %402 = arith.andi %72, %401 : vector<4x128xi32>
    %c0_i32_171 = arith.constant 0 : i32
    %403 = vector.broadcast %c0_i32_171 : i32 to vector<4x128xi32>
    %404 = arith.cmpi eq, %402, %403 : vector<4x128xi32>
    %405 = arith.select %404, %399, %400 : vector<4x128xi1>, vector<4x128xf32>
    %406 = arith.addf %398, %405 : vector<4x128xf32>
    %cst_172 = arith.constant 1.000000e+00 : f32
    %407 = vector.broadcast %cst_172 : f32 to vector<4x128xf32>
    %408 = arith.cmpf oge, %406, %407 : vector<4x128xf32>
    %409 = arith.select %408, %355, %353 : vector<4x128xi1>, vector<4x128xf32>
    %cst_173 = arith.constant 1.562500e-02 : f32
    %410 = vector.broadcast %cst_173 : f32 to vector<4x128xf32>
    %411 = arith.addf %409, %410 : vector<4x128xf32>
    %412 = arith.subf %71, %411 : vector<4x128xf32>
    %cst_174 = arith.constant 0.000000e+00 : f32
    %413 = vector.broadcast %cst_174 : f32 to vector<4x128xf32>
    %414 = arith.maximumf %412, %413 : vector<4x128xf32>
    %c127_i32_175 = arith.constant 127 : i32
    %415 = tpu.dynamic_rotate %414 by %c127_i32_175 dim 1 : vector<4x128xf32>, i32 -> vector<4x128xf32>
    %c1_i32_176 = arith.constant 1 : i32
    %416 = tpu.dynamic_rotate %414 by %c1_i32_176 dim 1 : vector<4x128xf32>, i32 -> vector<4x128xf32>
    %c1_i32_177 = arith.constant 1 : i32
    %417 = vector.broadcast %c1_i32_177 : i32 to vector<4x128xi32>
    %418 = arith.andi %72, %417 : vector<4x128xi32>
    %c0_i32_178 = arith.constant 0 : i32
    %419 = vector.broadcast %c0_i32_178 : i32 to vector<4x128xi32>
    %420 = arith.cmpi eq, %418, %419 : vector<4x128xi32>
    %421 = arith.select %420, %415, %416 : vector<4x128xi1>, vector<4x128xf32>
    %422 = arith.addf %414, %421 : vector<4x128xf32>
    %c126_i32_179 = arith.constant 126 : i32
    %423 = tpu.dynamic_rotate %422 by %c126_i32_179 dim 1 : vector<4x128xf32>, i32 -> vector<4x128xf32>
    %c2_i32_180 = arith.constant 2 : i32
    %424 = tpu.dynamic_rotate %422 by %c2_i32_180 dim 1 : vector<4x128xf32>, i32 -> vector<4x128xf32>
    %c2_i32_181 = arith.constant 2 : i32
    %425 = vector.broadcast %c2_i32_181 : i32 to vector<4x128xi32>
    %426 = arith.andi %72, %425 : vector<4x128xi32>
    %c0_i32_182 = arith.constant 0 : i32
    %427 = vector.broadcast %c0_i32_182 : i32 to vector<4x128xi32>
    %428 = arith.cmpi eq, %426, %427 : vector<4x128xi32>
    %429 = arith.select %428, %423, %424 : vector<4x128xi1>, vector<4x128xf32>
    %430 = arith.addf %422, %429 : vector<4x128xf32>
    %c124_i32_183 = arith.constant 124 : i32
    %431 = tpu.dynamic_rotate %430 by %c124_i32_183 dim 1 : vector<4x128xf32>, i32 -> vector<4x128xf32>
    %c4_i32_184 = arith.constant 4 : i32
    %432 = tpu.dynamic_rotate %430 by %c4_i32_184 dim 1 : vector<4x128xf32>, i32 -> vector<4x128xf32>
    %c4_i32_185 = arith.constant 4 : i32
    %433 = vector.broadcast %c4_i32_185 : i32 to vector<4x128xi32>
    %434 = arith.andi %72, %433 : vector<4x128xi32>
    %c0_i32_186 = arith.constant 0 : i32
    %435 = vector.broadcast %c0_i32_186 : i32 to vector<4x128xi32>
    %436 = arith.cmpi eq, %434, %435 : vector<4x128xi32>
    %437 = arith.select %436, %431, %432 : vector<4x128xi1>, vector<4x128xf32>
    %438 = arith.addf %430, %437 : vector<4x128xf32>
    %c120_i32_187 = arith.constant 120 : i32
    %439 = tpu.dynamic_rotate %438 by %c120_i32_187 dim 1 : vector<4x128xf32>, i32 -> vector<4x128xf32>
    %c8_i32_188 = arith.constant 8 : i32
    %440 = tpu.dynamic_rotate %438 by %c8_i32_188 dim 1 : vector<4x128xf32>, i32 -> vector<4x128xf32>
    %c8_i32_189 = arith.constant 8 : i32
    %441 = vector.broadcast %c8_i32_189 : i32 to vector<4x128xi32>
    %442 = arith.andi %72, %441 : vector<4x128xi32>
    %c0_i32_190 = arith.constant 0 : i32
    %443 = vector.broadcast %c0_i32_190 : i32 to vector<4x128xi32>
    %444 = arith.cmpi eq, %442, %443 : vector<4x128xi32>
    %445 = arith.select %444, %439, %440 : vector<4x128xi1>, vector<4x128xf32>
    %446 = arith.addf %438, %445 : vector<4x128xf32>
    %c112_i32_191 = arith.constant 112 : i32
    %447 = tpu.dynamic_rotate %446 by %c112_i32_191 dim 1 : vector<4x128xf32>, i32 -> vector<4x128xf32>
    %c16_i32_192 = arith.constant 16 : i32
    %448 = tpu.dynamic_rotate %446 by %c16_i32_192 dim 1 : vector<4x128xf32>, i32 -> vector<4x128xf32>
    %c16_i32_193 = arith.constant 16 : i32
    %449 = vector.broadcast %c16_i32_193 : i32 to vector<4x128xi32>
    %450 = arith.andi %72, %449 : vector<4x128xi32>
    %c0_i32_194 = arith.constant 0 : i32
    %451 = vector.broadcast %c0_i32_194 : i32 to vector<4x128xi32>
    %452 = arith.cmpi eq, %450, %451 : vector<4x128xi32>
    %453 = arith.select %452, %447, %448 : vector<4x128xi1>, vector<4x128xf32>
    %454 = arith.addf %446, %453 : vector<4x128xf32>
    %c96_i32_195 = arith.constant 96 : i32
    %455 = tpu.dynamic_rotate %454 by %c96_i32_195 dim 1 : vector<4x128xf32>, i32 -> vector<4x128xf32>
    %c32_i32_196 = arith.constant 32 : i32
    %456 = tpu.dynamic_rotate %454 by %c32_i32_196 dim 1 : vector<4x128xf32>, i32 -> vector<4x128xf32>
    %c32_i32_197 = arith.constant 32 : i32
    %457 = vector.broadcast %c32_i32_197 : i32 to vector<4x128xi32>
    %458 = arith.andi %72, %457 : vector<4x128xi32>
    %c0_i32_198 = arith.constant 0 : i32
    %459 = vector.broadcast %c0_i32_198 : i32 to vector<4x128xi32>
    %460 = arith.cmpi eq, %458, %459 : vector<4x128xi32>
    %461 = arith.select %460, %455, %456 : vector<4x128xi1>, vector<4x128xf32>
    %462 = arith.addf %454, %461 : vector<4x128xf32>
    %cst_199 = arith.constant 1.000000e+00 : f32
    %463 = vector.broadcast %cst_199 : f32 to vector<4x128xf32>
    %464 = arith.cmpf oge, %462, %463 : vector<4x128xf32>
    %465 = arith.select %464, %411, %409 : vector<4x128xi1>, vector<4x128xf32>
    %cst_200 = arith.constant 7.812500e-03 : f32
    %466 = vector.broadcast %cst_200 : f32 to vector<4x128xf32>
    %467 = arith.addf %465, %466 : vector<4x128xf32>
    %468 = arith.subf %71, %467 : vector<4x128xf32>
    %cst_201 = arith.constant 0.000000e+00 : f32
    %469 = vector.broadcast %cst_201 : f32 to vector<4x128xf32>
    %470 = arith.maximumf %468, %469 : vector<4x128xf32>
    %c127_i32_202 = arith.constant 127 : i32
    %471 = tpu.dynamic_rotate %470 by %c127_i32_202 dim 1 : vector<4x128xf32>, i32 -> vector<4x128xf32>
    %c1_i32_203 = arith.constant 1 : i32
    %472 = tpu.dynamic_rotate %470 by %c1_i32_203 dim 1 : vector<4x128xf32>, i32 -> vector<4x128xf32>
    %c1_i32_204 = arith.constant 1 : i32
    %473 = vector.broadcast %c1_i32_204 : i32 to vector<4x128xi32>
    %474 = arith.andi %72, %473 : vector<4x128xi32>
    %c0_i32_205 = arith.constant 0 : i32
    %475 = vector.broadcast %c0_i32_205 : i32 to vector<4x128xi32>
    %476 = arith.cmpi eq, %474, %475 : vector<4x128xi32>
    %477 = arith.select %476, %471, %472 : vector<4x128xi1>, vector<4x128xf32>
    %478 = arith.addf %470, %477 : vector<4x128xf32>
    %c126_i32_206 = arith.constant 126 : i32
    %479 = tpu.dynamic_rotate %478 by %c126_i32_206 dim 1 : vector<4x128xf32>, i32 -> vector<4x128xf32>
    %c2_i32_207 = arith.constant 2 : i32
    %480 = tpu.dynamic_rotate %478 by %c2_i32_207 dim 1 : vector<4x128xf32>, i32 -> vector<4x128xf32>
    %c2_i32_208 = arith.constant 2 : i32
    %481 = vector.broadcast %c2_i32_208 : i32 to vector<4x128xi32>
    %482 = arith.andi %72, %481 : vector<4x128xi32>
    %c0_i32_209 = arith.constant 0 : i32
    %483 = vector.broadcast %c0_i32_209 : i32 to vector<4x128xi32>
    %484 = arith.cmpi eq, %482, %483 : vector<4x128xi32>
    %485 = arith.select %484, %479, %480 : vector<4x128xi1>, vector<4x128xf32>
    %486 = arith.addf %478, %485 : vector<4x128xf32>
    %c124_i32_210 = arith.constant 124 : i32
    %487 = tpu.dynamic_rotate %486 by %c124_i32_210 dim 1 : vector<4x128xf32>, i32 -> vector<4x128xf32>
    %c4_i32_211 = arith.constant 4 : i32
    %488 = tpu.dynamic_rotate %486 by %c4_i32_211 dim 1 : vector<4x128xf32>, i32 -> vector<4x128xf32>
    %c4_i32_212 = arith.constant 4 : i32
    %489 = vector.broadcast %c4_i32_212 : i32 to vector<4x128xi32>
    %490 = arith.andi %72, %489 : vector<4x128xi32>
    %c0_i32_213 = arith.constant 0 : i32
    %491 = vector.broadcast %c0_i32_213 : i32 to vector<4x128xi32>
    %492 = arith.cmpi eq, %490, %491 : vector<4x128xi32>
    %493 = arith.select %492, %487, %488 : vector<4x128xi1>, vector<4x128xf32>
    %494 = arith.addf %486, %493 : vector<4x128xf32>
    %c120_i32_214 = arith.constant 120 : i32
    %495 = tpu.dynamic_rotate %494 by %c120_i32_214 dim 1 : vector<4x128xf32>, i32 -> vector<4x128xf32>
    %c8_i32_215 = arith.constant 8 : i32
    %496 = tpu.dynamic_rotate %494 by %c8_i32_215 dim 1 : vector<4x128xf32>, i32 -> vector<4x128xf32>
    %c8_i32_216 = arith.constant 8 : i32
    %497 = vector.broadcast %c8_i32_216 : i32 to vector<4x128xi32>
    %498 = arith.andi %72, %497 : vector<4x128xi32>
    %c0_i32_217 = arith.constant 0 : i32
    %499 = vector.broadcast %c0_i32_217 : i32 to vector<4x128xi32>
    %500 = arith.cmpi eq, %498, %499 : vector<4x128xi32>
    %501 = arith.select %500, %495, %496 : vector<4x128xi1>, vector<4x128xf32>
    %502 = arith.addf %494, %501 : vector<4x128xf32>
    %c112_i32_218 = arith.constant 112 : i32
    %503 = tpu.dynamic_rotate %502 by %c112_i32_218 dim 1 : vector<4x128xf32>, i32 -> vector<4x128xf32>
    %c16_i32_219 = arith.constant 16 : i32
    %504 = tpu.dynamic_rotate %502 by %c16_i32_219 dim 1 : vector<4x128xf32>, i32 -> vector<4x128xf32>
    %c16_i32_220 = arith.constant 16 : i32
    %505 = vector.broadcast %c16_i32_220 : i32 to vector<4x128xi32>
    %506 = arith.andi %72, %505 : vector<4x128xi32>
    %c0_i32_221 = arith.constant 0 : i32
    %507 = vector.broadcast %c0_i32_221 : i32 to vector<4x128xi32>
    %508 = arith.cmpi eq, %506, %507 : vector<4x128xi32>
    %509 = arith.select %508, %503, %504 : vector<4x128xi1>, vector<4x128xf32>
    %510 = arith.addf %502, %509 : vector<4x128xf32>
    %c96_i32_222 = arith.constant 96 : i32
    %511 = tpu.dynamic_rotate %510 by %c96_i32_222 dim 1 : vector<4x128xf32>, i32 -> vector<4x128xf32>
    %c32_i32_223 = arith.constant 32 : i32
    %512 = tpu.dynamic_rotate %510 by %c32_i32_223 dim 1 : vector<4x128xf32>, i32 -> vector<4x128xf32>
    %c32_i32_224 = arith.constant 32 : i32
    %513 = vector.broadcast %c32_i32_224 : i32 to vector<4x128xi32>
    %514 = arith.andi %72, %513 : vector<4x128xi32>
    %c0_i32_225 = arith.constant 0 : i32
    %515 = vector.broadcast %c0_i32_225 : i32 to vector<4x128xi32>
    %516 = arith.cmpi eq, %514, %515 : vector<4x128xi32>
    %517 = arith.select %516, %511, %512 : vector<4x128xi1>, vector<4x128xf32>
    %518 = arith.addf %510, %517 : vector<4x128xf32>
    %cst_226 = arith.constant 1.000000e+00 : f32
    %519 = vector.broadcast %cst_226 : f32 to vector<4x128xf32>
    %520 = arith.cmpf oge, %518, %519 : vector<4x128xf32>
    %521 = arith.select %520, %467, %465 : vector<4x128xi1>, vector<4x128xf32>
    %cst_227 = arith.constant 3.906250e-03 : f32
    %522 = vector.broadcast %cst_227 : f32 to vector<4x128xf32>
    %523 = arith.addf %521, %522 : vector<4x128xf32>
    %524 = arith.subf %71, %523 : vector<4x128xf32>
    %cst_228 = arith.constant 0.000000e+00 : f32
    %525 = vector.broadcast %cst_228 : f32 to vector<4x128xf32>
    %526 = arith.maximumf %524, %525 : vector<4x128xf32>
    %c127_i32_229 = arith.constant 127 : i32
    %527 = tpu.dynamic_rotate %526 by %c127_i32_229 dim 1 : vector<4x128xf32>, i32 -> vector<4x128xf32>
    %c1_i32_230 = arith.constant 1 : i32
    %528 = tpu.dynamic_rotate %526 by %c1_i32_230 dim 1 : vector<4x128xf32>, i32 -> vector<4x128xf32>
    %c1_i32_231 = arith.constant 1 : i32
    %529 = vector.broadcast %c1_i32_231 : i32 to vector<4x128xi32>
    %530 = arith.andi %72, %529 : vector<4x128xi32>
    %c0_i32_232 = arith.constant 0 : i32
    %531 = vector.broadcast %c0_i32_232 : i32 to vector<4x128xi32>
    %532 = arith.cmpi eq, %530, %531 : vector<4x128xi32>
    %533 = arith.select %532, %527, %528 : vector<4x128xi1>, vector<4x128xf32>
    %534 = arith.addf %526, %533 : vector<4x128xf32>
    %c126_i32_233 = arith.constant 126 : i32
    %535 = tpu.dynamic_rotate %534 by %c126_i32_233 dim 1 : vector<4x128xf32>, i32 -> vector<4x128xf32>
    %c2_i32_234 = arith.constant 2 : i32
    %536 = tpu.dynamic_rotate %534 by %c2_i32_234 dim 1 : vector<4x128xf32>, i32 -> vector<4x128xf32>
    %c2_i32_235 = arith.constant 2 : i32
    %537 = vector.broadcast %c2_i32_235 : i32 to vector<4x128xi32>
    %538 = arith.andi %72, %537 : vector<4x128xi32>
    %c0_i32_236 = arith.constant 0 : i32
    %539 = vector.broadcast %c0_i32_236 : i32 to vector<4x128xi32>
    %540 = arith.cmpi eq, %538, %539 : vector<4x128xi32>
    %541 = arith.select %540, %535, %536 : vector<4x128xi1>, vector<4x128xf32>
    %542 = arith.addf %534, %541 : vector<4x128xf32>
    %c124_i32_237 = arith.constant 124 : i32
    %543 = tpu.dynamic_rotate %542 by %c124_i32_237 dim 1 : vector<4x128xf32>, i32 -> vector<4x128xf32>
    %c4_i32_238 = arith.constant 4 : i32
    %544 = tpu.dynamic_rotate %542 by %c4_i32_238 dim 1 : vector<4x128xf32>, i32 -> vector<4x128xf32>
    %c4_i32_239 = arith.constant 4 : i32
    %545 = vector.broadcast %c4_i32_239 : i32 to vector<4x128xi32>
    %546 = arith.andi %72, %545 : vector<4x128xi32>
    %c0_i32_240 = arith.constant 0 : i32
    %547 = vector.broadcast %c0_i32_240 : i32 to vector<4x128xi32>
    %548 = arith.cmpi eq, %546, %547 : vector<4x128xi32>
    %549 = arith.select %548, %543, %544 : vector<4x128xi1>, vector<4x128xf32>
    %550 = arith.addf %542, %549 : vector<4x128xf32>
    %c120_i32_241 = arith.constant 120 : i32
    %551 = tpu.dynamic_rotate %550 by %c120_i32_241 dim 1 : vector<4x128xf32>, i32 -> vector<4x128xf32>
    %c8_i32_242 = arith.constant 8 : i32
    %552 = tpu.dynamic_rotate %550 by %c8_i32_242 dim 1 : vector<4x128xf32>, i32 -> vector<4x128xf32>
    %c8_i32_243 = arith.constant 8 : i32
    %553 = vector.broadcast %c8_i32_243 : i32 to vector<4x128xi32>
    %554 = arith.andi %72, %553 : vector<4x128xi32>
    %c0_i32_244 = arith.constant 0 : i32
    %555 = vector.broadcast %c0_i32_244 : i32 to vector<4x128xi32>
    %556 = arith.cmpi eq, %554, %555 : vector<4x128xi32>
    %557 = arith.select %556, %551, %552 : vector<4x128xi1>, vector<4x128xf32>
    %558 = arith.addf %550, %557 : vector<4x128xf32>
    %c112_i32_245 = arith.constant 112 : i32
    %559 = tpu.dynamic_rotate %558 by %c112_i32_245 dim 1 : vector<4x128xf32>, i32 -> vector<4x128xf32>
    %c16_i32_246 = arith.constant 16 : i32
    %560 = tpu.dynamic_rotate %558 by %c16_i32_246 dim 1 : vector<4x128xf32>, i32 -> vector<4x128xf32>
    %c16_i32_247 = arith.constant 16 : i32
    %561 = vector.broadcast %c16_i32_247 : i32 to vector<4x128xi32>
    %562 = arith.andi %72, %561 : vector<4x128xi32>
    %c0_i32_248 = arith.constant 0 : i32
    %563 = vector.broadcast %c0_i32_248 : i32 to vector<4x128xi32>
    %564 = arith.cmpi eq, %562, %563 : vector<4x128xi32>
    %565 = arith.select %564, %559, %560 : vector<4x128xi1>, vector<4x128xf32>
    %566 = arith.addf %558, %565 : vector<4x128xf32>
    %c96_i32_249 = arith.constant 96 : i32
    %567 = tpu.dynamic_rotate %566 by %c96_i32_249 dim 1 : vector<4x128xf32>, i32 -> vector<4x128xf32>
    %c32_i32_250 = arith.constant 32 : i32
    %568 = tpu.dynamic_rotate %566 by %c32_i32_250 dim 1 : vector<4x128xf32>, i32 -> vector<4x128xf32>
    %c32_i32_251 = arith.constant 32 : i32
    %569 = vector.broadcast %c32_i32_251 : i32 to vector<4x128xi32>
    %570 = arith.andi %72, %569 : vector<4x128xi32>
    %c0_i32_252 = arith.constant 0 : i32
    %571 = vector.broadcast %c0_i32_252 : i32 to vector<4x128xi32>
    %572 = arith.cmpi eq, %570, %571 : vector<4x128xi32>
    %573 = arith.select %572, %567, %568 : vector<4x128xi1>, vector<4x128xf32>
    %574 = arith.addf %566, %573 : vector<4x128xf32>
    %cst_253 = arith.constant 1.000000e+00 : f32
    %575 = vector.broadcast %cst_253 : f32 to vector<4x128xf32>
    %576 = arith.cmpf oge, %574, %575 : vector<4x128xf32>
    %577 = arith.select %576, %523, %521 : vector<4x128xi1>, vector<4x128xf32>
    %cst_254 = arith.constant 0.001953125 : f32
    %578 = vector.broadcast %cst_254 : f32 to vector<4x128xf32>
    %579 = arith.addf %577, %578 : vector<4x128xf32>
    %580 = arith.subf %71, %579 : vector<4x128xf32>
    %cst_255 = arith.constant 0.000000e+00 : f32
    %581 = vector.broadcast %cst_255 : f32 to vector<4x128xf32>
    %582 = arith.maximumf %580, %581 : vector<4x128xf32>
    %c127_i32_256 = arith.constant 127 : i32
    %583 = tpu.dynamic_rotate %582 by %c127_i32_256 dim 1 : vector<4x128xf32>, i32 -> vector<4x128xf32>
    %c1_i32_257 = arith.constant 1 : i32
    %584 = tpu.dynamic_rotate %582 by %c1_i32_257 dim 1 : vector<4x128xf32>, i32 -> vector<4x128xf32>
    %c1_i32_258 = arith.constant 1 : i32
    %585 = vector.broadcast %c1_i32_258 : i32 to vector<4x128xi32>
    %586 = arith.andi %72, %585 : vector<4x128xi32>
    %c0_i32_259 = arith.constant 0 : i32
    %587 = vector.broadcast %c0_i32_259 : i32 to vector<4x128xi32>
    %588 = arith.cmpi eq, %586, %587 : vector<4x128xi32>
    %589 = arith.select %588, %583, %584 : vector<4x128xi1>, vector<4x128xf32>
    %590 = arith.addf %582, %589 : vector<4x128xf32>
    %c126_i32_260 = arith.constant 126 : i32
    %591 = tpu.dynamic_rotate %590 by %c126_i32_260 dim 1 : vector<4x128xf32>, i32 -> vector<4x128xf32>
    %c2_i32_261 = arith.constant 2 : i32
    %592 = tpu.dynamic_rotate %590 by %c2_i32_261 dim 1 : vector<4x128xf32>, i32 -> vector<4x128xf32>
    %c2_i32_262 = arith.constant 2 : i32
    %593 = vector.broadcast %c2_i32_262 : i32 to vector<4x128xi32>
    %594 = arith.andi %72, %593 : vector<4x128xi32>
    %c0_i32_263 = arith.constant 0 : i32
    %595 = vector.broadcast %c0_i32_263 : i32 to vector<4x128xi32>
    %596 = arith.cmpi eq, %594, %595 : vector<4x128xi32>
    %597 = arith.select %596, %591, %592 : vector<4x128xi1>, vector<4x128xf32>
    %598 = arith.addf %590, %597 : vector<4x128xf32>
    %c124_i32_264 = arith.constant 124 : i32
    %599 = tpu.dynamic_rotate %598 by %c124_i32_264 dim 1 : vector<4x128xf32>, i32 -> vector<4x128xf32>
    %c4_i32_265 = arith.constant 4 : i32
    %600 = tpu.dynamic_rotate %598 by %c4_i32_265 dim 1 : vector<4x128xf32>, i32 -> vector<4x128xf32>
    %c4_i32_266 = arith.constant 4 : i32
    %601 = vector.broadcast %c4_i32_266 : i32 to vector<4x128xi32>
    %602 = arith.andi %72, %601 : vector<4x128xi32>
    %c0_i32_267 = arith.constant 0 : i32
    %603 = vector.broadcast %c0_i32_267 : i32 to vector<4x128xi32>
    %604 = arith.cmpi eq, %602, %603 : vector<4x128xi32>
    %605 = arith.select %604, %599, %600 : vector<4x128xi1>, vector<4x128xf32>
    %606 = arith.addf %598, %605 : vector<4x128xf32>
    %c120_i32_268 = arith.constant 120 : i32
    %607 = tpu.dynamic_rotate %606 by %c120_i32_268 dim 1 : vector<4x128xf32>, i32 -> vector<4x128xf32>
    %c8_i32_269 = arith.constant 8 : i32
    %608 = tpu.dynamic_rotate %606 by %c8_i32_269 dim 1 : vector<4x128xf32>, i32 -> vector<4x128xf32>
    %c8_i32_270 = arith.constant 8 : i32
    %609 = vector.broadcast %c8_i32_270 : i32 to vector<4x128xi32>
    %610 = arith.andi %72, %609 : vector<4x128xi32>
    %c0_i32_271 = arith.constant 0 : i32
    %611 = vector.broadcast %c0_i32_271 : i32 to vector<4x128xi32>
    %612 = arith.cmpi eq, %610, %611 : vector<4x128xi32>
    %613 = arith.select %612, %607, %608 : vector<4x128xi1>, vector<4x128xf32>
    %614 = arith.addf %606, %613 : vector<4x128xf32>
    %c112_i32_272 = arith.constant 112 : i32
    %615 = tpu.dynamic_rotate %614 by %c112_i32_272 dim 1 : vector<4x128xf32>, i32 -> vector<4x128xf32>
    %c16_i32_273 = arith.constant 16 : i32
    %616 = tpu.dynamic_rotate %614 by %c16_i32_273 dim 1 : vector<4x128xf32>, i32 -> vector<4x128xf32>
    %c16_i32_274 = arith.constant 16 : i32
    %617 = vector.broadcast %c16_i32_274 : i32 to vector<4x128xi32>
    %618 = arith.andi %72, %617 : vector<4x128xi32>
    %c0_i32_275 = arith.constant 0 : i32
    %619 = vector.broadcast %c0_i32_275 : i32 to vector<4x128xi32>
    %620 = arith.cmpi eq, %618, %619 : vector<4x128xi32>
    %621 = arith.select %620, %615, %616 : vector<4x128xi1>, vector<4x128xf32>
    %622 = arith.addf %614, %621 : vector<4x128xf32>
    %c96_i32_276 = arith.constant 96 : i32
    %623 = tpu.dynamic_rotate %622 by %c96_i32_276 dim 1 : vector<4x128xf32>, i32 -> vector<4x128xf32>
    %c32_i32_277 = arith.constant 32 : i32
    %624 = tpu.dynamic_rotate %622 by %c32_i32_277 dim 1 : vector<4x128xf32>, i32 -> vector<4x128xf32>
    %c32_i32_278 = arith.constant 32 : i32
    %625 = vector.broadcast %c32_i32_278 : i32 to vector<4x128xi32>
    %626 = arith.andi %72, %625 : vector<4x128xi32>
    %c0_i32_279 = arith.constant 0 : i32
    %627 = vector.broadcast %c0_i32_279 : i32 to vector<4x128xi32>
    %628 = arith.cmpi eq, %626, %627 : vector<4x128xi32>
    %629 = arith.select %628, %623, %624 : vector<4x128xi1>, vector<4x128xf32>
    %630 = arith.addf %622, %629 : vector<4x128xf32>
    %cst_280 = arith.constant 1.000000e+00 : f32
    %631 = vector.broadcast %cst_280 : f32 to vector<4x128xf32>
    %632 = arith.cmpf oge, %630, %631 : vector<4x128xf32>
    %633 = arith.select %632, %579, %577 : vector<4x128xi1>, vector<4x128xf32>
    %cst_281 = arith.constant 9.765625E-4 : f32
    %634 = vector.broadcast %cst_281 : f32 to vector<4x128xf32>
    %635 = arith.addf %633, %634 : vector<4x128xf32>
    %636 = arith.subf %71, %635 : vector<4x128xf32>
    %cst_282 = arith.constant 0.000000e+00 : f32
    %637 = vector.broadcast %cst_282 : f32 to vector<4x128xf32>
    %638 = arith.maximumf %636, %637 : vector<4x128xf32>
    %c127_i32_283 = arith.constant 127 : i32
    %639 = tpu.dynamic_rotate %638 by %c127_i32_283 dim 1 : vector<4x128xf32>, i32 -> vector<4x128xf32>
    %c1_i32_284 = arith.constant 1 : i32
    %640 = tpu.dynamic_rotate %638 by %c1_i32_284 dim 1 : vector<4x128xf32>, i32 -> vector<4x128xf32>
    %c1_i32_285 = arith.constant 1 : i32
    %641 = vector.broadcast %c1_i32_285 : i32 to vector<4x128xi32>
    %642 = arith.andi %72, %641 : vector<4x128xi32>
    %c0_i32_286 = arith.constant 0 : i32
    %643 = vector.broadcast %c0_i32_286 : i32 to vector<4x128xi32>
    %644 = arith.cmpi eq, %642, %643 : vector<4x128xi32>
    %645 = arith.select %644, %639, %640 : vector<4x128xi1>, vector<4x128xf32>
    %646 = arith.addf %638, %645 : vector<4x128xf32>
    %c126_i32_287 = arith.constant 126 : i32
    %647 = tpu.dynamic_rotate %646 by %c126_i32_287 dim 1 : vector<4x128xf32>, i32 -> vector<4x128xf32>
    %c2_i32_288 = arith.constant 2 : i32
    %648 = tpu.dynamic_rotate %646 by %c2_i32_288 dim 1 : vector<4x128xf32>, i32 -> vector<4x128xf32>
    %c2_i32_289 = arith.constant 2 : i32
    %649 = vector.broadcast %c2_i32_289 : i32 to vector<4x128xi32>
    %650 = arith.andi %72, %649 : vector<4x128xi32>
    %c0_i32_290 = arith.constant 0 : i32
    %651 = vector.broadcast %c0_i32_290 : i32 to vector<4x128xi32>
    %652 = arith.cmpi eq, %650, %651 : vector<4x128xi32>
    %653 = arith.select %652, %647, %648 : vector<4x128xi1>, vector<4x128xf32>
    %654 = arith.addf %646, %653 : vector<4x128xf32>
    %c124_i32_291 = arith.constant 124 : i32
    %655 = tpu.dynamic_rotate %654 by %c124_i32_291 dim 1 : vector<4x128xf32>, i32 -> vector<4x128xf32>
    %c4_i32_292 = arith.constant 4 : i32
    %656 = tpu.dynamic_rotate %654 by %c4_i32_292 dim 1 : vector<4x128xf32>, i32 -> vector<4x128xf32>
    %c4_i32_293 = arith.constant 4 : i32
    %657 = vector.broadcast %c4_i32_293 : i32 to vector<4x128xi32>
    %658 = arith.andi %72, %657 : vector<4x128xi32>
    %c0_i32_294 = arith.constant 0 : i32
    %659 = vector.broadcast %c0_i32_294 : i32 to vector<4x128xi32>
    %660 = arith.cmpi eq, %658, %659 : vector<4x128xi32>
    %661 = arith.select %660, %655, %656 : vector<4x128xi1>, vector<4x128xf32>
    %662 = arith.addf %654, %661 : vector<4x128xf32>
    %c120_i32_295 = arith.constant 120 : i32
    %663 = tpu.dynamic_rotate %662 by %c120_i32_295 dim 1 : vector<4x128xf32>, i32 -> vector<4x128xf32>
    %c8_i32_296 = arith.constant 8 : i32
    %664 = tpu.dynamic_rotate %662 by %c8_i32_296 dim 1 : vector<4x128xf32>, i32 -> vector<4x128xf32>
    %c8_i32_297 = arith.constant 8 : i32
    %665 = vector.broadcast %c8_i32_297 : i32 to vector<4x128xi32>
    %666 = arith.andi %72, %665 : vector<4x128xi32>
    %c0_i32_298 = arith.constant 0 : i32
    %667 = vector.broadcast %c0_i32_298 : i32 to vector<4x128xi32>
    %668 = arith.cmpi eq, %666, %667 : vector<4x128xi32>
    %669 = arith.select %668, %663, %664 : vector<4x128xi1>, vector<4x128xf32>
    %670 = arith.addf %662, %669 : vector<4x128xf32>
    %c112_i32_299 = arith.constant 112 : i32
    %671 = tpu.dynamic_rotate %670 by %c112_i32_299 dim 1 : vector<4x128xf32>, i32 -> vector<4x128xf32>
    %c16_i32_300 = arith.constant 16 : i32
    %672 = tpu.dynamic_rotate %670 by %c16_i32_300 dim 1 : vector<4x128xf32>, i32 -> vector<4x128xf32>
    %c16_i32_301 = arith.constant 16 : i32
    %673 = vector.broadcast %c16_i32_301 : i32 to vector<4x128xi32>
    %674 = arith.andi %72, %673 : vector<4x128xi32>
    %c0_i32_302 = arith.constant 0 : i32
    %675 = vector.broadcast %c0_i32_302 : i32 to vector<4x128xi32>
    %676 = arith.cmpi eq, %674, %675 : vector<4x128xi32>
    %677 = arith.select %676, %671, %672 : vector<4x128xi1>, vector<4x128xf32>
    %678 = arith.addf %670, %677 : vector<4x128xf32>
    %c96_i32_303 = arith.constant 96 : i32
    %679 = tpu.dynamic_rotate %678 by %c96_i32_303 dim 1 : vector<4x128xf32>, i32 -> vector<4x128xf32>
    %c32_i32_304 = arith.constant 32 : i32
    %680 = tpu.dynamic_rotate %678 by %c32_i32_304 dim 1 : vector<4x128xf32>, i32 -> vector<4x128xf32>
    %c32_i32_305 = arith.constant 32 : i32
    %681 = vector.broadcast %c32_i32_305 : i32 to vector<4x128xi32>
    %682 = arith.andi %72, %681 : vector<4x128xi32>
    %c0_i32_306 = arith.constant 0 : i32
    %683 = vector.broadcast %c0_i32_306 : i32 to vector<4x128xi32>
    %684 = arith.cmpi eq, %682, %683 : vector<4x128xi32>
    %685 = arith.select %684, %679, %680 : vector<4x128xi1>, vector<4x128xf32>
    %686 = arith.addf %678, %685 : vector<4x128xf32>
    %cst_307 = arith.constant 1.000000e+00 : f32
    %687 = vector.broadcast %cst_307 : f32 to vector<4x128xf32>
    %688 = arith.cmpf oge, %686, %687 : vector<4x128xf32>
    %689 = arith.select %688, %635, %633 : vector<4x128xi1>, vector<4x128xf32>
    %cst_308 = arith.constant 4.8828125E-4 : f32
    %690 = vector.broadcast %cst_308 : f32 to vector<4x128xf32>
    %691 = arith.addf %689, %690 : vector<4x128xf32>
    %692 = arith.subf %71, %691 : vector<4x128xf32>
    %cst_309 = arith.constant 0.000000e+00 : f32
    %693 = vector.broadcast %cst_309 : f32 to vector<4x128xf32>
    %694 = arith.maximumf %692, %693 : vector<4x128xf32>
    %c127_i32_310 = arith.constant 127 : i32
    %695 = tpu.dynamic_rotate %694 by %c127_i32_310 dim 1 : vector<4x128xf32>, i32 -> vector<4x128xf32>
    %c1_i32_311 = arith.constant 1 : i32
    %696 = tpu.dynamic_rotate %694 by %c1_i32_311 dim 1 : vector<4x128xf32>, i32 -> vector<4x128xf32>
    %c1_i32_312 = arith.constant 1 : i32
    %697 = vector.broadcast %c1_i32_312 : i32 to vector<4x128xi32>
    %698 = arith.andi %72, %697 : vector<4x128xi32>
    %c0_i32_313 = arith.constant 0 : i32
    %699 = vector.broadcast %c0_i32_313 : i32 to vector<4x128xi32>
    %700 = arith.cmpi eq, %698, %699 : vector<4x128xi32>
    %701 = arith.select %700, %695, %696 : vector<4x128xi1>, vector<4x128xf32>
    %702 = arith.addf %694, %701 : vector<4x128xf32>
    %c126_i32_314 = arith.constant 126 : i32
    %703 = tpu.dynamic_rotate %702 by %c126_i32_314 dim 1 : vector<4x128xf32>, i32 -> vector<4x128xf32>
    %c2_i32_315 = arith.constant 2 : i32
    %704 = tpu.dynamic_rotate %702 by %c2_i32_315 dim 1 : vector<4x128xf32>, i32 -> vector<4x128xf32>
    %c2_i32_316 = arith.constant 2 : i32
    %705 = vector.broadcast %c2_i32_316 : i32 to vector<4x128xi32>
    %706 = arith.andi %72, %705 : vector<4x128xi32>
    %c0_i32_317 = arith.constant 0 : i32
    %707 = vector.broadcast %c0_i32_317 : i32 to vector<4x128xi32>
    %708 = arith.cmpi eq, %706, %707 : vector<4x128xi32>
    %709 = arith.select %708, %703, %704 : vector<4x128xi1>, vector<4x128xf32>
    %710 = arith.addf %702, %709 : vector<4x128xf32>
    %c124_i32_318 = arith.constant 124 : i32
    %711 = tpu.dynamic_rotate %710 by %c124_i32_318 dim 1 : vector<4x128xf32>, i32 -> vector<4x128xf32>
    %c4_i32_319 = arith.constant 4 : i32
    %712 = tpu.dynamic_rotate %710 by %c4_i32_319 dim 1 : vector<4x128xf32>, i32 -> vector<4x128xf32>
    %c4_i32_320 = arith.constant 4 : i32
    %713 = vector.broadcast %c4_i32_320 : i32 to vector<4x128xi32>
    %714 = arith.andi %72, %713 : vector<4x128xi32>
    %c0_i32_321 = arith.constant 0 : i32
    %715 = vector.broadcast %c0_i32_321 : i32 to vector<4x128xi32>
    %716 = arith.cmpi eq, %714, %715 : vector<4x128xi32>
    %717 = arith.select %716, %711, %712 : vector<4x128xi1>, vector<4x128xf32>
    %718 = arith.addf %710, %717 : vector<4x128xf32>
    %c120_i32_322 = arith.constant 120 : i32
    %719 = tpu.dynamic_rotate %718 by %c120_i32_322 dim 1 : vector<4x128xf32>, i32 -> vector<4x128xf32>
    %c8_i32_323 = arith.constant 8 : i32
    %720 = tpu.dynamic_rotate %718 by %c8_i32_323 dim 1 : vector<4x128xf32>, i32 -> vector<4x128xf32>
    %c8_i32_324 = arith.constant 8 : i32
    %721 = vector.broadcast %c8_i32_324 : i32 to vector<4x128xi32>
    %722 = arith.andi %72, %721 : vector<4x128xi32>
    %c0_i32_325 = arith.constant 0 : i32
    %723 = vector.broadcast %c0_i32_325 : i32 to vector<4x128xi32>
    %724 = arith.cmpi eq, %722, %723 : vector<4x128xi32>
    %725 = arith.select %724, %719, %720 : vector<4x128xi1>, vector<4x128xf32>
    %726 = arith.addf %718, %725 : vector<4x128xf32>
    %c112_i32_326 = arith.constant 112 : i32
    %727 = tpu.dynamic_rotate %726 by %c112_i32_326 dim 1 : vector<4x128xf32>, i32 -> vector<4x128xf32>
    %c16_i32_327 = arith.constant 16 : i32
    %728 = tpu.dynamic_rotate %726 by %c16_i32_327 dim 1 : vector<4x128xf32>, i32 -> vector<4x128xf32>
    %c16_i32_328 = arith.constant 16 : i32
    %729 = vector.broadcast %c16_i32_328 : i32 to vector<4x128xi32>
    %730 = arith.andi %72, %729 : vector<4x128xi32>
    %c0_i32_329 = arith.constant 0 : i32
    %731 = vector.broadcast %c0_i32_329 : i32 to vector<4x128xi32>
    %732 = arith.cmpi eq, %730, %731 : vector<4x128xi32>
    %733 = arith.select %732, %727, %728 : vector<4x128xi1>, vector<4x128xf32>
    %734 = arith.addf %726, %733 : vector<4x128xf32>
    %c96_i32_330 = arith.constant 96 : i32
    %735 = tpu.dynamic_rotate %734 by %c96_i32_330 dim 1 : vector<4x128xf32>, i32 -> vector<4x128xf32>
    %c32_i32_331 = arith.constant 32 : i32
    %736 = tpu.dynamic_rotate %734 by %c32_i32_331 dim 1 : vector<4x128xf32>, i32 -> vector<4x128xf32>
    %c32_i32_332 = arith.constant 32 : i32
    %737 = vector.broadcast %c32_i32_332 : i32 to vector<4x128xi32>
    %738 = arith.andi %72, %737 : vector<4x128xi32>
    %c0_i32_333 = arith.constant 0 : i32
    %739 = vector.broadcast %c0_i32_333 : i32 to vector<4x128xi32>
    %740 = arith.cmpi eq, %738, %739 : vector<4x128xi32>
    %741 = arith.select %740, %735, %736 : vector<4x128xi1>, vector<4x128xf32>
    %742 = arith.addf %734, %741 : vector<4x128xf32>
    %cst_334 = arith.constant 1.000000e+00 : f32
    %743 = vector.broadcast %cst_334 : f32 to vector<4x128xf32>
    %744 = arith.cmpf oge, %742, %743 : vector<4x128xf32>
    %745 = arith.select %744, %691, %689 : vector<4x128xi1>, vector<4x128xf32>
    %cst_335 = arith.constant 2.44140625E-4 : f32
    %746 = vector.broadcast %cst_335 : f32 to vector<4x128xf32>
    %747 = arith.addf %745, %746 : vector<4x128xf32>
    %748 = arith.subf %71, %747 : vector<4x128xf32>
    %cst_336 = arith.constant 0.000000e+00 : f32
    %749 = vector.broadcast %cst_336 : f32 to vector<4x128xf32>
    %750 = arith.maximumf %748, %749 : vector<4x128xf32>
    %c127_i32_337 = arith.constant 127 : i32
    %751 = tpu.dynamic_rotate %750 by %c127_i32_337 dim 1 : vector<4x128xf32>, i32 -> vector<4x128xf32>
    %c1_i32_338 = arith.constant 1 : i32
    %752 = tpu.dynamic_rotate %750 by %c1_i32_338 dim 1 : vector<4x128xf32>, i32 -> vector<4x128xf32>
    %c1_i32_339 = arith.constant 1 : i32
    %753 = vector.broadcast %c1_i32_339 : i32 to vector<4x128xi32>
    %754 = arith.andi %72, %753 : vector<4x128xi32>
    %c0_i32_340 = arith.constant 0 : i32
    %755 = vector.broadcast %c0_i32_340 : i32 to vector<4x128xi32>
    %756 = arith.cmpi eq, %754, %755 : vector<4x128xi32>
    %757 = arith.select %756, %751, %752 : vector<4x128xi1>, vector<4x128xf32>
    %758 = arith.addf %750, %757 : vector<4x128xf32>
    %c126_i32_341 = arith.constant 126 : i32
    %759 = tpu.dynamic_rotate %758 by %c126_i32_341 dim 1 : vector<4x128xf32>, i32 -> vector<4x128xf32>
    %c2_i32_342 = arith.constant 2 : i32
    %760 = tpu.dynamic_rotate %758 by %c2_i32_342 dim 1 : vector<4x128xf32>, i32 -> vector<4x128xf32>
    %c2_i32_343 = arith.constant 2 : i32
    %761 = vector.broadcast %c2_i32_343 : i32 to vector<4x128xi32>
    %762 = arith.andi %72, %761 : vector<4x128xi32>
    %c0_i32_344 = arith.constant 0 : i32
    %763 = vector.broadcast %c0_i32_344 : i32 to vector<4x128xi32>
    %764 = arith.cmpi eq, %762, %763 : vector<4x128xi32>
    %765 = arith.select %764, %759, %760 : vector<4x128xi1>, vector<4x128xf32>
    %766 = arith.addf %758, %765 : vector<4x128xf32>
    %c124_i32_345 = arith.constant 124 : i32
    %767 = tpu.dynamic_rotate %766 by %c124_i32_345 dim 1 : vector<4x128xf32>, i32 -> vector<4x128xf32>
    %c4_i32_346 = arith.constant 4 : i32
    %768 = tpu.dynamic_rotate %766 by %c4_i32_346 dim 1 : vector<4x128xf32>, i32 -> vector<4x128xf32>
    %c4_i32_347 = arith.constant 4 : i32
    %769 = vector.broadcast %c4_i32_347 : i32 to vector<4x128xi32>
    %770 = arith.andi %72, %769 : vector<4x128xi32>
    %c0_i32_348 = arith.constant 0 : i32
    %771 = vector.broadcast %c0_i32_348 : i32 to vector<4x128xi32>
    %772 = arith.cmpi eq, %770, %771 : vector<4x128xi32>
    %773 = arith.select %772, %767, %768 : vector<4x128xi1>, vector<4x128xf32>
    %774 = arith.addf %766, %773 : vector<4x128xf32>
    %c120_i32_349 = arith.constant 120 : i32
    %775 = tpu.dynamic_rotate %774 by %c120_i32_349 dim 1 : vector<4x128xf32>, i32 -> vector<4x128xf32>
    %c8_i32_350 = arith.constant 8 : i32
    %776 = tpu.dynamic_rotate %774 by %c8_i32_350 dim 1 : vector<4x128xf32>, i32 -> vector<4x128xf32>
    %c8_i32_351 = arith.constant 8 : i32
    %777 = vector.broadcast %c8_i32_351 : i32 to vector<4x128xi32>
    %778 = arith.andi %72, %777 : vector<4x128xi32>
    %c0_i32_352 = arith.constant 0 : i32
    %779 = vector.broadcast %c0_i32_352 : i32 to vector<4x128xi32>
    %780 = arith.cmpi eq, %778, %779 : vector<4x128xi32>
    %781 = arith.select %780, %775, %776 : vector<4x128xi1>, vector<4x128xf32>
    %782 = arith.addf %774, %781 : vector<4x128xf32>
    %c112_i32_353 = arith.constant 112 : i32
    %783 = tpu.dynamic_rotate %782 by %c112_i32_353 dim 1 : vector<4x128xf32>, i32 -> vector<4x128xf32>
    %c16_i32_354 = arith.constant 16 : i32
    %784 = tpu.dynamic_rotate %782 by %c16_i32_354 dim 1 : vector<4x128xf32>, i32 -> vector<4x128xf32>
    %c16_i32_355 = arith.constant 16 : i32
    %785 = vector.broadcast %c16_i32_355 : i32 to vector<4x128xi32>
    %786 = arith.andi %72, %785 : vector<4x128xi32>
    %c0_i32_356 = arith.constant 0 : i32
    %787 = vector.broadcast %c0_i32_356 : i32 to vector<4x128xi32>
    %788 = arith.cmpi eq, %786, %787 : vector<4x128xi32>
    %789 = arith.select %788, %783, %784 : vector<4x128xi1>, vector<4x128xf32>
    %790 = arith.addf %782, %789 : vector<4x128xf32>
    %c96_i32_357 = arith.constant 96 : i32
    %791 = tpu.dynamic_rotate %790 by %c96_i32_357 dim 1 : vector<4x128xf32>, i32 -> vector<4x128xf32>
    %c32_i32_358 = arith.constant 32 : i32
    %792 = tpu.dynamic_rotate %790 by %c32_i32_358 dim 1 : vector<4x128xf32>, i32 -> vector<4x128xf32>
    %c32_i32_359 = arith.constant 32 : i32
    %793 = vector.broadcast %c32_i32_359 : i32 to vector<4x128xi32>
    %794 = arith.andi %72, %793 : vector<4x128xi32>
    %c0_i32_360 = arith.constant 0 : i32
    %795 = vector.broadcast %c0_i32_360 : i32 to vector<4x128xi32>
    %796 = arith.cmpi eq, %794, %795 : vector<4x128xi32>
    %797 = arith.select %796, %791, %792 : vector<4x128xi1>, vector<4x128xf32>
    %798 = arith.addf %790, %797 : vector<4x128xf32>
    %cst_361 = arith.constant 1.000000e+00 : f32
    %799 = vector.broadcast %cst_361 : f32 to vector<4x128xf32>
    %800 = arith.cmpf oge, %798, %799 : vector<4x128xf32>
    %801 = arith.select %800, %747, %745 : vector<4x128xi1>, vector<4x128xf32>
    %cst_362 = arith.constant 1.22070313E-4 : f32
    %802 = vector.broadcast %cst_362 : f32 to vector<4x128xf32>
    %803 = arith.addf %801, %802 : vector<4x128xf32>
    %804 = arith.subf %71, %803 : vector<4x128xf32>
    %cst_363 = arith.constant 0.000000e+00 : f32
    %805 = vector.broadcast %cst_363 : f32 to vector<4x128xf32>
    %806 = arith.maximumf %804, %805 : vector<4x128xf32>
    %c127_i32_364 = arith.constant 127 : i32
    %807 = tpu.dynamic_rotate %806 by %c127_i32_364 dim 1 : vector<4x128xf32>, i32 -> vector<4x128xf32>
    %c1_i32_365 = arith.constant 1 : i32
    %808 = tpu.dynamic_rotate %806 by %c1_i32_365 dim 1 : vector<4x128xf32>, i32 -> vector<4x128xf32>
    %c1_i32_366 = arith.constant 1 : i32
    %809 = vector.broadcast %c1_i32_366 : i32 to vector<4x128xi32>
    %810 = arith.andi %72, %809 : vector<4x128xi32>
    %c0_i32_367 = arith.constant 0 : i32
    %811 = vector.broadcast %c0_i32_367 : i32 to vector<4x128xi32>
    %812 = arith.cmpi eq, %810, %811 : vector<4x128xi32>
    %813 = arith.select %812, %807, %808 : vector<4x128xi1>, vector<4x128xf32>
    %814 = arith.addf %806, %813 : vector<4x128xf32>
    %c126_i32_368 = arith.constant 126 : i32
    %815 = tpu.dynamic_rotate %814 by %c126_i32_368 dim 1 : vector<4x128xf32>, i32 -> vector<4x128xf32>
    %c2_i32_369 = arith.constant 2 : i32
    %816 = tpu.dynamic_rotate %814 by %c2_i32_369 dim 1 : vector<4x128xf32>, i32 -> vector<4x128xf32>
    %c2_i32_370 = arith.constant 2 : i32
    %817 = vector.broadcast %c2_i32_370 : i32 to vector<4x128xi32>
    %818 = arith.andi %72, %817 : vector<4x128xi32>
    %c0_i32_371 = arith.constant 0 : i32
    %819 = vector.broadcast %c0_i32_371 : i32 to vector<4x128xi32>
    %820 = arith.cmpi eq, %818, %819 : vector<4x128xi32>
    %821 = arith.select %820, %815, %816 : vector<4x128xi1>, vector<4x128xf32>
    %822 = arith.addf %814, %821 : vector<4x128xf32>
    %c124_i32_372 = arith.constant 124 : i32
    %823 = tpu.dynamic_rotate %822 by %c124_i32_372 dim 1 : vector<4x128xf32>, i32 -> vector<4x128xf32>
    %c4_i32_373 = arith.constant 4 : i32
    %824 = tpu.dynamic_rotate %822 by %c4_i32_373 dim 1 : vector<4x128xf32>, i32 -> vector<4x128xf32>
    %c4_i32_374 = arith.constant 4 : i32
    %825 = vector.broadcast %c4_i32_374 : i32 to vector<4x128xi32>
    %826 = arith.andi %72, %825 : vector<4x128xi32>
    %c0_i32_375 = arith.constant 0 : i32
    %827 = vector.broadcast %c0_i32_375 : i32 to vector<4x128xi32>
    %828 = arith.cmpi eq, %826, %827 : vector<4x128xi32>
    %829 = arith.select %828, %823, %824 : vector<4x128xi1>, vector<4x128xf32>
    %830 = arith.addf %822, %829 : vector<4x128xf32>
    %c120_i32_376 = arith.constant 120 : i32
    %831 = tpu.dynamic_rotate %830 by %c120_i32_376 dim 1 : vector<4x128xf32>, i32 -> vector<4x128xf32>
    %c8_i32_377 = arith.constant 8 : i32
    %832 = tpu.dynamic_rotate %830 by %c8_i32_377 dim 1 : vector<4x128xf32>, i32 -> vector<4x128xf32>
    %c8_i32_378 = arith.constant 8 : i32
    %833 = vector.broadcast %c8_i32_378 : i32 to vector<4x128xi32>
    %834 = arith.andi %72, %833 : vector<4x128xi32>
    %c0_i32_379 = arith.constant 0 : i32
    %835 = vector.broadcast %c0_i32_379 : i32 to vector<4x128xi32>
    %836 = arith.cmpi eq, %834, %835 : vector<4x128xi32>
    %837 = arith.select %836, %831, %832 : vector<4x128xi1>, vector<4x128xf32>
    %838 = arith.addf %830, %837 : vector<4x128xf32>
    %c112_i32_380 = arith.constant 112 : i32
    %839 = tpu.dynamic_rotate %838 by %c112_i32_380 dim 1 : vector<4x128xf32>, i32 -> vector<4x128xf32>
    %c16_i32_381 = arith.constant 16 : i32
    %840 = tpu.dynamic_rotate %838 by %c16_i32_381 dim 1 : vector<4x128xf32>, i32 -> vector<4x128xf32>
    %c16_i32_382 = arith.constant 16 : i32
    %841 = vector.broadcast %c16_i32_382 : i32 to vector<4x128xi32>
    %842 = arith.andi %72, %841 : vector<4x128xi32>
    %c0_i32_383 = arith.constant 0 : i32
    %843 = vector.broadcast %c0_i32_383 : i32 to vector<4x128xi32>
    %844 = arith.cmpi eq, %842, %843 : vector<4x128xi32>
    %845 = arith.select %844, %839, %840 : vector<4x128xi1>, vector<4x128xf32>
    %846 = arith.addf %838, %845 : vector<4x128xf32>
    %c96_i32_384 = arith.constant 96 : i32
    %847 = tpu.dynamic_rotate %846 by %c96_i32_384 dim 1 : vector<4x128xf32>, i32 -> vector<4x128xf32>
    %c32_i32_385 = arith.constant 32 : i32
    %848 = tpu.dynamic_rotate %846 by %c32_i32_385 dim 1 : vector<4x128xf32>, i32 -> vector<4x128xf32>
    %c32_i32_386 = arith.constant 32 : i32
    %849 = vector.broadcast %c32_i32_386 : i32 to vector<4x128xi32>
    %850 = arith.andi %72, %849 : vector<4x128xi32>
    %c0_i32_387 = arith.constant 0 : i32
    %851 = vector.broadcast %c0_i32_387 : i32 to vector<4x128xi32>
    %852 = arith.cmpi eq, %850, %851 : vector<4x128xi32>
    %853 = arith.select %852, %847, %848 : vector<4x128xi1>, vector<4x128xf32>
    %854 = arith.addf %846, %853 : vector<4x128xf32>
    %cst_388 = arith.constant 1.000000e+00 : f32
    %855 = vector.broadcast %cst_388 : f32 to vector<4x128xf32>
    %856 = arith.cmpf oge, %854, %855 : vector<4x128xf32>
    %857 = arith.select %856, %803, %801 : vector<4x128xi1>, vector<4x128xf32>
    %cst_389 = arith.constant 6.10351563E-5 : f32
    %858 = vector.broadcast %cst_389 : f32 to vector<4x128xf32>
    %859 = arith.addf %857, %858 : vector<4x128xf32>
    %860 = arith.subf %71, %859 : vector<4x128xf32>
    %cst_390 = arith.constant 0.000000e+00 : f32
    %861 = vector.broadcast %cst_390 : f32 to vector<4x128xf32>
    %862 = arith.maximumf %860, %861 : vector<4x128xf32>
    %c127_i32_391 = arith.constant 127 : i32
    %863 = tpu.dynamic_rotate %862 by %c127_i32_391 dim 1 : vector<4x128xf32>, i32 -> vector<4x128xf32>
    %c1_i32_392 = arith.constant 1 : i32
    %864 = tpu.dynamic_rotate %862 by %c1_i32_392 dim 1 : vector<4x128xf32>, i32 -> vector<4x128xf32>
    %c1_i32_393 = arith.constant 1 : i32
    %865 = vector.broadcast %c1_i32_393 : i32 to vector<4x128xi32>
    %866 = arith.andi %72, %865 : vector<4x128xi32>
    %c0_i32_394 = arith.constant 0 : i32
    %867 = vector.broadcast %c0_i32_394 : i32 to vector<4x128xi32>
    %868 = arith.cmpi eq, %866, %867 : vector<4x128xi32>
    %869 = arith.select %868, %863, %864 : vector<4x128xi1>, vector<4x128xf32>
    %870 = arith.addf %862, %869 : vector<4x128xf32>
    %c126_i32_395 = arith.constant 126 : i32
    %871 = tpu.dynamic_rotate %870 by %c126_i32_395 dim 1 : vector<4x128xf32>, i32 -> vector<4x128xf32>
    %c2_i32_396 = arith.constant 2 : i32
    %872 = tpu.dynamic_rotate %870 by %c2_i32_396 dim 1 : vector<4x128xf32>, i32 -> vector<4x128xf32>
    %c2_i32_397 = arith.constant 2 : i32
    %873 = vector.broadcast %c2_i32_397 : i32 to vector<4x128xi32>
    %874 = arith.andi %72, %873 : vector<4x128xi32>
    %c0_i32_398 = arith.constant 0 : i32
    %875 = vector.broadcast %c0_i32_398 : i32 to vector<4x128xi32>
    %876 = arith.cmpi eq, %874, %875 : vector<4x128xi32>
    %877 = arith.select %876, %871, %872 : vector<4x128xi1>, vector<4x128xf32>
    %878 = arith.addf %870, %877 : vector<4x128xf32>
    %c124_i32_399 = arith.constant 124 : i32
    %879 = tpu.dynamic_rotate %878 by %c124_i32_399 dim 1 : vector<4x128xf32>, i32 -> vector<4x128xf32>
    %c4_i32_400 = arith.constant 4 : i32
    %880 = tpu.dynamic_rotate %878 by %c4_i32_400 dim 1 : vector<4x128xf32>, i32 -> vector<4x128xf32>
    %c4_i32_401 = arith.constant 4 : i32
    %881 = vector.broadcast %c4_i32_401 : i32 to vector<4x128xi32>
    %882 = arith.andi %72, %881 : vector<4x128xi32>
    %c0_i32_402 = arith.constant 0 : i32
    %883 = vector.broadcast %c0_i32_402 : i32 to vector<4x128xi32>
    %884 = arith.cmpi eq, %882, %883 : vector<4x128xi32>
    %885 = arith.select %884, %879, %880 : vector<4x128xi1>, vector<4x128xf32>
    %886 = arith.addf %878, %885 : vector<4x128xf32>
    %c120_i32_403 = arith.constant 120 : i32
    %887 = tpu.dynamic_rotate %886 by %c120_i32_403 dim 1 : vector<4x128xf32>, i32 -> vector<4x128xf32>
    %c8_i32_404 = arith.constant 8 : i32
    %888 = tpu.dynamic_rotate %886 by %c8_i32_404 dim 1 : vector<4x128xf32>, i32 -> vector<4x128xf32>
    %c8_i32_405 = arith.constant 8 : i32
    %889 = vector.broadcast %c8_i32_405 : i32 to vector<4x128xi32>
    %890 = arith.andi %72, %889 : vector<4x128xi32>
    %c0_i32_406 = arith.constant 0 : i32
    %891 = vector.broadcast %c0_i32_406 : i32 to vector<4x128xi32>
    %892 = arith.cmpi eq, %890, %891 : vector<4x128xi32>
    %893 = arith.select %892, %887, %888 : vector<4x128xi1>, vector<4x128xf32>
    %894 = arith.addf %886, %893 : vector<4x128xf32>
    %c112_i32_407 = arith.constant 112 : i32
    %895 = tpu.dynamic_rotate %894 by %c112_i32_407 dim 1 : vector<4x128xf32>, i32 -> vector<4x128xf32>
    %c16_i32_408 = arith.constant 16 : i32
    %896 = tpu.dynamic_rotate %894 by %c16_i32_408 dim 1 : vector<4x128xf32>, i32 -> vector<4x128xf32>
    %c16_i32_409 = arith.constant 16 : i32
    %897 = vector.broadcast %c16_i32_409 : i32 to vector<4x128xi32>
    %898 = arith.andi %72, %897 : vector<4x128xi32>
    %c0_i32_410 = arith.constant 0 : i32
    %899 = vector.broadcast %c0_i32_410 : i32 to vector<4x128xi32>
    %900 = arith.cmpi eq, %898, %899 : vector<4x128xi32>
    %901 = arith.select %900, %895, %896 : vector<4x128xi1>, vector<4x128xf32>
    %902 = arith.addf %894, %901 : vector<4x128xf32>
    %c96_i32_411 = arith.constant 96 : i32
    %903 = tpu.dynamic_rotate %902 by %c96_i32_411 dim 1 : vector<4x128xf32>, i32 -> vector<4x128xf32>
    %c32_i32_412 = arith.constant 32 : i32
    %904 = tpu.dynamic_rotate %902 by %c32_i32_412 dim 1 : vector<4x128xf32>, i32 -> vector<4x128xf32>
    %c32_i32_413 = arith.constant 32 : i32
    %905 = vector.broadcast %c32_i32_413 : i32 to vector<4x128xi32>
    %906 = arith.andi %72, %905 : vector<4x128xi32>
    %c0_i32_414 = arith.constant 0 : i32
    %907 = vector.broadcast %c0_i32_414 : i32 to vector<4x128xi32>
    %908 = arith.cmpi eq, %906, %907 : vector<4x128xi32>
    %909 = arith.select %908, %903, %904 : vector<4x128xi1>, vector<4x128xf32>
    %910 = arith.addf %902, %909 : vector<4x128xf32>
    %cst_415 = arith.constant 1.000000e+00 : f32
    %911 = vector.broadcast %cst_415 : f32 to vector<4x128xf32>
    %912 = arith.cmpf oge, %910, %911 : vector<4x128xf32>
    %913 = arith.select %912, %859, %857 : vector<4x128xi1>, vector<4x128xf32>
    %cst_416 = arith.constant 3.05175781E-5 : f32
    %914 = vector.broadcast %cst_416 : f32 to vector<4x128xf32>
    %915 = arith.addf %913, %914 : vector<4x128xf32>
    %916 = arith.subf %71, %915 : vector<4x128xf32>
    %cst_417 = arith.constant 0.000000e+00 : f32
    %917 = vector.broadcast %cst_417 : f32 to vector<4x128xf32>
    %918 = arith.maximumf %916, %917 : vector<4x128xf32>
    %c127_i32_418 = arith.constant 127 : i32
    %919 = tpu.dynamic_rotate %918 by %c127_i32_418 dim 1 : vector<4x128xf32>, i32 -> vector<4x128xf32>
    %c1_i32_419 = arith.constant 1 : i32
    %920 = tpu.dynamic_rotate %918 by %c1_i32_419 dim 1 : vector<4x128xf32>, i32 -> vector<4x128xf32>
    %c1_i32_420 = arith.constant 1 : i32
    %921 = vector.broadcast %c1_i32_420 : i32 to vector<4x128xi32>
    %922 = arith.andi %72, %921 : vector<4x128xi32>
    %c0_i32_421 = arith.constant 0 : i32
    %923 = vector.broadcast %c0_i32_421 : i32 to vector<4x128xi32>
    %924 = arith.cmpi eq, %922, %923 : vector<4x128xi32>
    %925 = arith.select %924, %919, %920 : vector<4x128xi1>, vector<4x128xf32>
    %926 = arith.addf %918, %925 : vector<4x128xf32>
    %c126_i32_422 = arith.constant 126 : i32
    %927 = tpu.dynamic_rotate %926 by %c126_i32_422 dim 1 : vector<4x128xf32>, i32 -> vector<4x128xf32>
    %c2_i32_423 = arith.constant 2 : i32
    %928 = tpu.dynamic_rotate %926 by %c2_i32_423 dim 1 : vector<4x128xf32>, i32 -> vector<4x128xf32>
    %c2_i32_424 = arith.constant 2 : i32
    %929 = vector.broadcast %c2_i32_424 : i32 to vector<4x128xi32>
    %930 = arith.andi %72, %929 : vector<4x128xi32>
    %c0_i32_425 = arith.constant 0 : i32
    %931 = vector.broadcast %c0_i32_425 : i32 to vector<4x128xi32>
    %932 = arith.cmpi eq, %930, %931 : vector<4x128xi32>
    %933 = arith.select %932, %927, %928 : vector<4x128xi1>, vector<4x128xf32>
    %934 = arith.addf %926, %933 : vector<4x128xf32>
    %c124_i32_426 = arith.constant 124 : i32
    %935 = tpu.dynamic_rotate %934 by %c124_i32_426 dim 1 : vector<4x128xf32>, i32 -> vector<4x128xf32>
    %c4_i32_427 = arith.constant 4 : i32
    %936 = tpu.dynamic_rotate %934 by %c4_i32_427 dim 1 : vector<4x128xf32>, i32 -> vector<4x128xf32>
    %c4_i32_428 = arith.constant 4 : i32
    %937 = vector.broadcast %c4_i32_428 : i32 to vector<4x128xi32>
    %938 = arith.andi %72, %937 : vector<4x128xi32>
    %c0_i32_429 = arith.constant 0 : i32
    %939 = vector.broadcast %c0_i32_429 : i32 to vector<4x128xi32>
    %940 = arith.cmpi eq, %938, %939 : vector<4x128xi32>
    %941 = arith.select %940, %935, %936 : vector<4x128xi1>, vector<4x128xf32>
    %942 = arith.addf %934, %941 : vector<4x128xf32>
    %c120_i32_430 = arith.constant 120 : i32
    %943 = tpu.dynamic_rotate %942 by %c120_i32_430 dim 1 : vector<4x128xf32>, i32 -> vector<4x128xf32>
    %c8_i32_431 = arith.constant 8 : i32
    %944 = tpu.dynamic_rotate %942 by %c8_i32_431 dim 1 : vector<4x128xf32>, i32 -> vector<4x128xf32>
    %c8_i32_432 = arith.constant 8 : i32
    %945 = vector.broadcast %c8_i32_432 : i32 to vector<4x128xi32>
    %946 = arith.andi %72, %945 : vector<4x128xi32>
    %c0_i32_433 = arith.constant 0 : i32
    %947 = vector.broadcast %c0_i32_433 : i32 to vector<4x128xi32>
    %948 = arith.cmpi eq, %946, %947 : vector<4x128xi32>
    %949 = arith.select %948, %943, %944 : vector<4x128xi1>, vector<4x128xf32>
    %950 = arith.addf %942, %949 : vector<4x128xf32>
    %c112_i32_434 = arith.constant 112 : i32
    %951 = tpu.dynamic_rotate %950 by %c112_i32_434 dim 1 : vector<4x128xf32>, i32 -> vector<4x128xf32>
    %c16_i32_435 = arith.constant 16 : i32
    %952 = tpu.dynamic_rotate %950 by %c16_i32_435 dim 1 : vector<4x128xf32>, i32 -> vector<4x128xf32>
    %c16_i32_436 = arith.constant 16 : i32
    %953 = vector.broadcast %c16_i32_436 : i32 to vector<4x128xi32>
    %954 = arith.andi %72, %953 : vector<4x128xi32>
    %c0_i32_437 = arith.constant 0 : i32
    %955 = vector.broadcast %c0_i32_437 : i32 to vector<4x128xi32>
    %956 = arith.cmpi eq, %954, %955 : vector<4x128xi32>
    %957 = arith.select %956, %951, %952 : vector<4x128xi1>, vector<4x128xf32>
    %958 = arith.addf %950, %957 : vector<4x128xf32>
    %c96_i32_438 = arith.constant 96 : i32
    %959 = tpu.dynamic_rotate %958 by %c96_i32_438 dim 1 : vector<4x128xf32>, i32 -> vector<4x128xf32>
    %c32_i32_439 = arith.constant 32 : i32
    %960 = tpu.dynamic_rotate %958 by %c32_i32_439 dim 1 : vector<4x128xf32>, i32 -> vector<4x128xf32>
    %c32_i32_440 = arith.constant 32 : i32
    %961 = vector.broadcast %c32_i32_440 : i32 to vector<4x128xi32>
    %962 = arith.andi %72, %961 : vector<4x128xi32>
    %c0_i32_441 = arith.constant 0 : i32
    %963 = vector.broadcast %c0_i32_441 : i32 to vector<4x128xi32>
    %964 = arith.cmpi eq, %962, %963 : vector<4x128xi32>
    %965 = arith.select %964, %959, %960 : vector<4x128xi1>, vector<4x128xf32>
    %966 = arith.addf %958, %965 : vector<4x128xf32>
    %cst_442 = arith.constant 1.000000e+00 : f32
    %967 = vector.broadcast %cst_442 : f32 to vector<4x128xf32>
    %968 = arith.cmpf oge, %966, %967 : vector<4x128xf32>
    %969 = arith.select %968, %915, %913 : vector<4x128xi1>, vector<4x128xf32>
    %cst_443 = arith.constant 1.52587891E-5 : f32
    %970 = vector.broadcast %cst_443 : f32 to vector<4x128xf32>
    %971 = arith.addf %969, %970 : vector<4x128xf32>
    %972 = arith.subf %71, %971 : vector<4x128xf32>
    %cst_444 = arith.constant 0.000000e+00 : f32
    %973 = vector.broadcast %cst_444 : f32 to vector<4x128xf32>
    %974 = arith.maximumf %972, %973 : vector<4x128xf32>
    %c127_i32_445 = arith.constant 127 : i32
    %975 = tpu.dynamic_rotate %974 by %c127_i32_445 dim 1 : vector<4x128xf32>, i32 -> vector<4x128xf32>
    %c1_i32_446 = arith.constant 1 : i32
    %976 = tpu.dynamic_rotate %974 by %c1_i32_446 dim 1 : vector<4x128xf32>, i32 -> vector<4x128xf32>
    %c1_i32_447 = arith.constant 1 : i32
    %977 = vector.broadcast %c1_i32_447 : i32 to vector<4x128xi32>
    %978 = arith.andi %72, %977 : vector<4x128xi32>
    %c0_i32_448 = arith.constant 0 : i32
    %979 = vector.broadcast %c0_i32_448 : i32 to vector<4x128xi32>
    %980 = arith.cmpi eq, %978, %979 : vector<4x128xi32>
    %981 = arith.select %980, %975, %976 : vector<4x128xi1>, vector<4x128xf32>
    %982 = arith.addf %974, %981 : vector<4x128xf32>
    %c126_i32_449 = arith.constant 126 : i32
    %983 = tpu.dynamic_rotate %982 by %c126_i32_449 dim 1 : vector<4x128xf32>, i32 -> vector<4x128xf32>
    %c2_i32_450 = arith.constant 2 : i32
    %984 = tpu.dynamic_rotate %982 by %c2_i32_450 dim 1 : vector<4x128xf32>, i32 -> vector<4x128xf32>
    %c2_i32_451 = arith.constant 2 : i32
    %985 = vector.broadcast %c2_i32_451 : i32 to vector<4x128xi32>
    %986 = arith.andi %72, %985 : vector<4x128xi32>
    %c0_i32_452 = arith.constant 0 : i32
    %987 = vector.broadcast %c0_i32_452 : i32 to vector<4x128xi32>
    %988 = arith.cmpi eq, %986, %987 : vector<4x128xi32>
    %989 = arith.select %988, %983, %984 : vector<4x128xi1>, vector<4x128xf32>
    %990 = arith.addf %982, %989 : vector<4x128xf32>
    %c124_i32_453 = arith.constant 124 : i32
    %991 = tpu.dynamic_rotate %990 by %c124_i32_453 dim 1 : vector<4x128xf32>, i32 -> vector<4x128xf32>
    %c4_i32_454 = arith.constant 4 : i32
    %992 = tpu.dynamic_rotate %990 by %c4_i32_454 dim 1 : vector<4x128xf32>, i32 -> vector<4x128xf32>
    %c4_i32_455 = arith.constant 4 : i32
    %993 = vector.broadcast %c4_i32_455 : i32 to vector<4x128xi32>
    %994 = arith.andi %72, %993 : vector<4x128xi32>
    %c0_i32_456 = arith.constant 0 : i32
    %995 = vector.broadcast %c0_i32_456 : i32 to vector<4x128xi32>
    %996 = arith.cmpi eq, %994, %995 : vector<4x128xi32>
    %997 = arith.select %996, %991, %992 : vector<4x128xi1>, vector<4x128xf32>
    %998 = arith.addf %990, %997 : vector<4x128xf32>
    %c120_i32_457 = arith.constant 120 : i32
    %999 = tpu.dynamic_rotate %998 by %c120_i32_457 dim 1 : vector<4x128xf32>, i32 -> vector<4x128xf32>
    %c8_i32_458 = arith.constant 8 : i32
    %1000 = tpu.dynamic_rotate %998 by %c8_i32_458 dim 1 : vector<4x128xf32>, i32 -> vector<4x128xf32>
    %c8_i32_459 = arith.constant 8 : i32
    %1001 = vector.broadcast %c8_i32_459 : i32 to vector<4x128xi32>
    %1002 = arith.andi %72, %1001 : vector<4x128xi32>
    %c0_i32_460 = arith.constant 0 : i32
    %1003 = vector.broadcast %c0_i32_460 : i32 to vector<4x128xi32>
    %1004 = arith.cmpi eq, %1002, %1003 : vector<4x128xi32>
    %1005 = arith.select %1004, %999, %1000 : vector<4x128xi1>, vector<4x128xf32>
    %1006 = arith.addf %998, %1005 : vector<4x128xf32>
    %c112_i32_461 = arith.constant 112 : i32
    %1007 = tpu.dynamic_rotate %1006 by %c112_i32_461 dim 1 : vector<4x128xf32>, i32 -> vector<4x128xf32>
    %c16_i32_462 = arith.constant 16 : i32
    %1008 = tpu.dynamic_rotate %1006 by %c16_i32_462 dim 1 : vector<4x128xf32>, i32 -> vector<4x128xf32>
    %c16_i32_463 = arith.constant 16 : i32
    %1009 = vector.broadcast %c16_i32_463 : i32 to vector<4x128xi32>
    %1010 = arith.andi %72, %1009 : vector<4x128xi32>
    %c0_i32_464 = arith.constant 0 : i32
    %1011 = vector.broadcast %c0_i32_464 : i32 to vector<4x128xi32>
    %1012 = arith.cmpi eq, %1010, %1011 : vector<4x128xi32>
    %1013 = arith.select %1012, %1007, %1008 : vector<4x128xi1>, vector<4x128xf32>
    %1014 = arith.addf %1006, %1013 : vector<4x128xf32>
    %c96_i32_465 = arith.constant 96 : i32
    %1015 = tpu.dynamic_rotate %1014 by %c96_i32_465 dim 1 : vector<4x128xf32>, i32 -> vector<4x128xf32>
    %c32_i32_466 = arith.constant 32 : i32
    %1016 = tpu.dynamic_rotate %1014 by %c32_i32_466 dim 1 : vector<4x128xf32>, i32 -> vector<4x128xf32>
    %c32_i32_467 = arith.constant 32 : i32
    %1017 = vector.broadcast %c32_i32_467 : i32 to vector<4x128xi32>
    %1018 = arith.andi %72, %1017 : vector<4x128xi32>
    %c0_i32_468 = arith.constant 0 : i32
    %1019 = vector.broadcast %c0_i32_468 : i32 to vector<4x128xi32>
    %1020 = arith.cmpi eq, %1018, %1019 : vector<4x128xi32>
    %1021 = arith.select %1020, %1015, %1016 : vector<4x128xi1>, vector<4x128xf32>
    %1022 = arith.addf %1014, %1021 : vector<4x128xf32>
    %cst_469 = arith.constant 1.000000e+00 : f32
    %1023 = vector.broadcast %cst_469 : f32 to vector<4x128xf32>
    %1024 = arith.cmpf oge, %1022, %1023 : vector<4x128xf32>
    %1025 = arith.select %1024, %971, %969 : vector<4x128xi1>, vector<4x128xf32>
    %cst_470 = arith.constant 7.62939453E-6 : f32
    %1026 = vector.broadcast %cst_470 : f32 to vector<4x128xf32>
    %1027 = arith.addf %1025, %1026 : vector<4x128xf32>
    %1028 = arith.subf %71, %1027 : vector<4x128xf32>
    %cst_471 = arith.constant 0.000000e+00 : f32
    %1029 = vector.broadcast %cst_471 : f32 to vector<4x128xf32>
    %1030 = arith.maximumf %1028, %1029 : vector<4x128xf32>
    %c127_i32_472 = arith.constant 127 : i32
    %1031 = tpu.dynamic_rotate %1030 by %c127_i32_472 dim 1 : vector<4x128xf32>, i32 -> vector<4x128xf32>
    %c1_i32_473 = arith.constant 1 : i32
    %1032 = tpu.dynamic_rotate %1030 by %c1_i32_473 dim 1 : vector<4x128xf32>, i32 -> vector<4x128xf32>
    %c1_i32_474 = arith.constant 1 : i32
    %1033 = vector.broadcast %c1_i32_474 : i32 to vector<4x128xi32>
    %1034 = arith.andi %72, %1033 : vector<4x128xi32>
    %c0_i32_475 = arith.constant 0 : i32
    %1035 = vector.broadcast %c0_i32_475 : i32 to vector<4x128xi32>
    %1036 = arith.cmpi eq, %1034, %1035 : vector<4x128xi32>
    %1037 = arith.select %1036, %1031, %1032 : vector<4x128xi1>, vector<4x128xf32>
    %1038 = arith.addf %1030, %1037 : vector<4x128xf32>
    %c126_i32_476 = arith.constant 126 : i32
    %1039 = tpu.dynamic_rotate %1038 by %c126_i32_476 dim 1 : vector<4x128xf32>, i32 -> vector<4x128xf32>
    %c2_i32_477 = arith.constant 2 : i32
    %1040 = tpu.dynamic_rotate %1038 by %c2_i32_477 dim 1 : vector<4x128xf32>, i32 -> vector<4x128xf32>
    %c2_i32_478 = arith.constant 2 : i32
    %1041 = vector.broadcast %c2_i32_478 : i32 to vector<4x128xi32>
    %1042 = arith.andi %72, %1041 : vector<4x128xi32>
    %c0_i32_479 = arith.constant 0 : i32
    %1043 = vector.broadcast %c0_i32_479 : i32 to vector<4x128xi32>
    %1044 = arith.cmpi eq, %1042, %1043 : vector<4x128xi32>
    %1045 = arith.select %1044, %1039, %1040 : vector<4x128xi1>, vector<4x128xf32>
    %1046 = arith.addf %1038, %1045 : vector<4x128xf32>
    %c124_i32_480 = arith.constant 124 : i32
    %1047 = tpu.dynamic_rotate %1046 by %c124_i32_480 dim 1 : vector<4x128xf32>, i32 -> vector<4x128xf32>
    %c4_i32_481 = arith.constant 4 : i32
    %1048 = tpu.dynamic_rotate %1046 by %c4_i32_481 dim 1 : vector<4x128xf32>, i32 -> vector<4x128xf32>
    %c4_i32_482 = arith.constant 4 : i32
    %1049 = vector.broadcast %c4_i32_482 : i32 to vector<4x128xi32>
    %1050 = arith.andi %72, %1049 : vector<4x128xi32>
    %c0_i32_483 = arith.constant 0 : i32
    %1051 = vector.broadcast %c0_i32_483 : i32 to vector<4x128xi32>
    %1052 = arith.cmpi eq, %1050, %1051 : vector<4x128xi32>
    %1053 = arith.select %1052, %1047, %1048 : vector<4x128xi1>, vector<4x128xf32>
    %1054 = arith.addf %1046, %1053 : vector<4x128xf32>
    %c120_i32_484 = arith.constant 120 : i32
    %1055 = tpu.dynamic_rotate %1054 by %c120_i32_484 dim 1 : vector<4x128xf32>, i32 -> vector<4x128xf32>
    %c8_i32_485 = arith.constant 8 : i32
    %1056 = tpu.dynamic_rotate %1054 by %c8_i32_485 dim 1 : vector<4x128xf32>, i32 -> vector<4x128xf32>
    %c8_i32_486 = arith.constant 8 : i32
    %1057 = vector.broadcast %c8_i32_486 : i32 to vector<4x128xi32>
    %1058 = arith.andi %72, %1057 : vector<4x128xi32>
    %c0_i32_487 = arith.constant 0 : i32
    %1059 = vector.broadcast %c0_i32_487 : i32 to vector<4x128xi32>
    %1060 = arith.cmpi eq, %1058, %1059 : vector<4x128xi32>
    %1061 = arith.select %1060, %1055, %1056 : vector<4x128xi1>, vector<4x128xf32>
    %1062 = arith.addf %1054, %1061 : vector<4x128xf32>
    %c112_i32_488 = arith.constant 112 : i32
    %1063 = tpu.dynamic_rotate %1062 by %c112_i32_488 dim 1 : vector<4x128xf32>, i32 -> vector<4x128xf32>
    %c16_i32_489 = arith.constant 16 : i32
    %1064 = tpu.dynamic_rotate %1062 by %c16_i32_489 dim 1 : vector<4x128xf32>, i32 -> vector<4x128xf32>
    %c16_i32_490 = arith.constant 16 : i32
    %1065 = vector.broadcast %c16_i32_490 : i32 to vector<4x128xi32>
    %1066 = arith.andi %72, %1065 : vector<4x128xi32>
    %c0_i32_491 = arith.constant 0 : i32
    %1067 = vector.broadcast %c0_i32_491 : i32 to vector<4x128xi32>
    %1068 = arith.cmpi eq, %1066, %1067 : vector<4x128xi32>
    %1069 = arith.select %1068, %1063, %1064 : vector<4x128xi1>, vector<4x128xf32>
    %1070 = arith.addf %1062, %1069 : vector<4x128xf32>
    %c96_i32_492 = arith.constant 96 : i32
    %1071 = tpu.dynamic_rotate %1070 by %c96_i32_492 dim 1 : vector<4x128xf32>, i32 -> vector<4x128xf32>
    %c32_i32_493 = arith.constant 32 : i32
    %1072 = tpu.dynamic_rotate %1070 by %c32_i32_493 dim 1 : vector<4x128xf32>, i32 -> vector<4x128xf32>
    %c32_i32_494 = arith.constant 32 : i32
    %1073 = vector.broadcast %c32_i32_494 : i32 to vector<4x128xi32>
    %1074 = arith.andi %72, %1073 : vector<4x128xi32>
    %c0_i32_495 = arith.constant 0 : i32
    %1075 = vector.broadcast %c0_i32_495 : i32 to vector<4x128xi32>
    %1076 = arith.cmpi eq, %1074, %1075 : vector<4x128xi32>
    %1077 = arith.select %1076, %1071, %1072 : vector<4x128xi1>, vector<4x128xf32>
    %1078 = arith.addf %1070, %1077 : vector<4x128xf32>
    %cst_496 = arith.constant 1.000000e+00 : f32
    %1079 = vector.broadcast %cst_496 : f32 to vector<4x128xf32>
    %1080 = arith.cmpf oge, %1078, %1079 : vector<4x128xf32>
    %1081 = arith.select %1080, %1027, %1025 : vector<4x128xi1>, vector<4x128xf32>
    %cst_497 = arith.constant 3.81469727E-6 : f32
    %1082 = vector.broadcast %cst_497 : f32 to vector<4x128xf32>
    %1083 = arith.addf %1081, %1082 : vector<4x128xf32>
    %1084 = arith.subf %71, %1083 : vector<4x128xf32>
    %cst_498 = arith.constant 0.000000e+00 : f32
    %1085 = vector.broadcast %cst_498 : f32 to vector<4x128xf32>
    %1086 = arith.maximumf %1084, %1085 : vector<4x128xf32>
    %c127_i32_499 = arith.constant 127 : i32
    %1087 = tpu.dynamic_rotate %1086 by %c127_i32_499 dim 1 : vector<4x128xf32>, i32 -> vector<4x128xf32>
    %c1_i32_500 = arith.constant 1 : i32
    %1088 = tpu.dynamic_rotate %1086 by %c1_i32_500 dim 1 : vector<4x128xf32>, i32 -> vector<4x128xf32>
    %c1_i32_501 = arith.constant 1 : i32
    %1089 = vector.broadcast %c1_i32_501 : i32 to vector<4x128xi32>
    %1090 = arith.andi %72, %1089 : vector<4x128xi32>
    %c0_i32_502 = arith.constant 0 : i32
    %1091 = vector.broadcast %c0_i32_502 : i32 to vector<4x128xi32>
    %1092 = arith.cmpi eq, %1090, %1091 : vector<4x128xi32>
    %1093 = arith.select %1092, %1087, %1088 : vector<4x128xi1>, vector<4x128xf32>
    %1094 = arith.addf %1086, %1093 : vector<4x128xf32>
    %c126_i32_503 = arith.constant 126 : i32
    %1095 = tpu.dynamic_rotate %1094 by %c126_i32_503 dim 1 : vector<4x128xf32>, i32 -> vector<4x128xf32>
    %c2_i32_504 = arith.constant 2 : i32
    %1096 = tpu.dynamic_rotate %1094 by %c2_i32_504 dim 1 : vector<4x128xf32>, i32 -> vector<4x128xf32>
    %c2_i32_505 = arith.constant 2 : i32
    %1097 = vector.broadcast %c2_i32_505 : i32 to vector<4x128xi32>
    %1098 = arith.andi %72, %1097 : vector<4x128xi32>
    %c0_i32_506 = arith.constant 0 : i32
    %1099 = vector.broadcast %c0_i32_506 : i32 to vector<4x128xi32>
    %1100 = arith.cmpi eq, %1098, %1099 : vector<4x128xi32>
    %1101 = arith.select %1100, %1095, %1096 : vector<4x128xi1>, vector<4x128xf32>
    %1102 = arith.addf %1094, %1101 : vector<4x128xf32>
    %c124_i32_507 = arith.constant 124 : i32
    %1103 = tpu.dynamic_rotate %1102 by %c124_i32_507 dim 1 : vector<4x128xf32>, i32 -> vector<4x128xf32>
    %c4_i32_508 = arith.constant 4 : i32
    %1104 = tpu.dynamic_rotate %1102 by %c4_i32_508 dim 1 : vector<4x128xf32>, i32 -> vector<4x128xf32>
    %c4_i32_509 = arith.constant 4 : i32
    %1105 = vector.broadcast %c4_i32_509 : i32 to vector<4x128xi32>
    %1106 = arith.andi %72, %1105 : vector<4x128xi32>
    %c0_i32_510 = arith.constant 0 : i32
    %1107 = vector.broadcast %c0_i32_510 : i32 to vector<4x128xi32>
    %1108 = arith.cmpi eq, %1106, %1107 : vector<4x128xi32>
    %1109 = arith.select %1108, %1103, %1104 : vector<4x128xi1>, vector<4x128xf32>
    %1110 = arith.addf %1102, %1109 : vector<4x128xf32>
    %c120_i32_511 = arith.constant 120 : i32
    %1111 = tpu.dynamic_rotate %1110 by %c120_i32_511 dim 1 : vector<4x128xf32>, i32 -> vector<4x128xf32>
    %c8_i32_512 = arith.constant 8 : i32
    %1112 = tpu.dynamic_rotate %1110 by %c8_i32_512 dim 1 : vector<4x128xf32>, i32 -> vector<4x128xf32>
    %c8_i32_513 = arith.constant 8 : i32
    %1113 = vector.broadcast %c8_i32_513 : i32 to vector<4x128xi32>
    %1114 = arith.andi %72, %1113 : vector<4x128xi32>
    %c0_i32_514 = arith.constant 0 : i32
    %1115 = vector.broadcast %c0_i32_514 : i32 to vector<4x128xi32>
    %1116 = arith.cmpi eq, %1114, %1115 : vector<4x128xi32>
    %1117 = arith.select %1116, %1111, %1112 : vector<4x128xi1>, vector<4x128xf32>
    %1118 = arith.addf %1110, %1117 : vector<4x128xf32>
    %c112_i32_515 = arith.constant 112 : i32
    %1119 = tpu.dynamic_rotate %1118 by %c112_i32_515 dim 1 : vector<4x128xf32>, i32 -> vector<4x128xf32>
    %c16_i32_516 = arith.constant 16 : i32
    %1120 = tpu.dynamic_rotate %1118 by %c16_i32_516 dim 1 : vector<4x128xf32>, i32 -> vector<4x128xf32>
    %c16_i32_517 = arith.constant 16 : i32
    %1121 = vector.broadcast %c16_i32_517 : i32 to vector<4x128xi32>
    %1122 = arith.andi %72, %1121 : vector<4x128xi32>
    %c0_i32_518 = arith.constant 0 : i32
    %1123 = vector.broadcast %c0_i32_518 : i32 to vector<4x128xi32>
    %1124 = arith.cmpi eq, %1122, %1123 : vector<4x128xi32>
    %1125 = arith.select %1124, %1119, %1120 : vector<4x128xi1>, vector<4x128xf32>
    %1126 = arith.addf %1118, %1125 : vector<4x128xf32>
    %c96_i32_519 = arith.constant 96 : i32
    %1127 = tpu.dynamic_rotate %1126 by %c96_i32_519 dim 1 : vector<4x128xf32>, i32 -> vector<4x128xf32>
    %c32_i32_520 = arith.constant 32 : i32
    %1128 = tpu.dynamic_rotate %1126 by %c32_i32_520 dim 1 : vector<4x128xf32>, i32 -> vector<4x128xf32>
    %c32_i32_521 = arith.constant 32 : i32
    %1129 = vector.broadcast %c32_i32_521 : i32 to vector<4x128xi32>
    %1130 = arith.andi %72, %1129 : vector<4x128xi32>
    %c0_i32_522 = arith.constant 0 : i32
    %1131 = vector.broadcast %c0_i32_522 : i32 to vector<4x128xi32>
    %1132 = arith.cmpi eq, %1130, %1131 : vector<4x128xi32>
    %1133 = arith.select %1132, %1127, %1128 : vector<4x128xi1>, vector<4x128xf32>
    %1134 = arith.addf %1126, %1133 : vector<4x128xf32>
    %cst_523 = arith.constant 1.000000e+00 : f32
    %1135 = vector.broadcast %cst_523 : f32 to vector<4x128xf32>
    %1136 = arith.cmpf oge, %1134, %1135 : vector<4x128xf32>
    %1137 = arith.select %1136, %1083, %1081 : vector<4x128xi1>, vector<4x128xf32>
    %cst_524 = arith.constant 1.90734863E-6 : f32
    %1138 = vector.broadcast %cst_524 : f32 to vector<4x128xf32>
    %1139 = arith.addf %1137, %1138 : vector<4x128xf32>
    %1140 = arith.subf %71, %1139 : vector<4x128xf32>
    %cst_525 = arith.constant 0.000000e+00 : f32
    %1141 = vector.broadcast %cst_525 : f32 to vector<4x128xf32>
    %1142 = arith.maximumf %1140, %1141 : vector<4x128xf32>
    %c127_i32_526 = arith.constant 127 : i32
    %1143 = tpu.dynamic_rotate %1142 by %c127_i32_526 dim 1 : vector<4x128xf32>, i32 -> vector<4x128xf32>
    %c1_i32_527 = arith.constant 1 : i32
    %1144 = tpu.dynamic_rotate %1142 by %c1_i32_527 dim 1 : vector<4x128xf32>, i32 -> vector<4x128xf32>
    %c1_i32_528 = arith.constant 1 : i32
    %1145 = vector.broadcast %c1_i32_528 : i32 to vector<4x128xi32>
    %1146 = arith.andi %72, %1145 : vector<4x128xi32>
    %c0_i32_529 = arith.constant 0 : i32
    %1147 = vector.broadcast %c0_i32_529 : i32 to vector<4x128xi32>
    %1148 = arith.cmpi eq, %1146, %1147 : vector<4x128xi32>
    %1149 = arith.select %1148, %1143, %1144 : vector<4x128xi1>, vector<4x128xf32>
    %1150 = arith.addf %1142, %1149 : vector<4x128xf32>
    %c126_i32_530 = arith.constant 126 : i32
    %1151 = tpu.dynamic_rotate %1150 by %c126_i32_530 dim 1 : vector<4x128xf32>, i32 -> vector<4x128xf32>
    %c2_i32_531 = arith.constant 2 : i32
    %1152 = tpu.dynamic_rotate %1150 by %c2_i32_531 dim 1 : vector<4x128xf32>, i32 -> vector<4x128xf32>
    %c2_i32_532 = arith.constant 2 : i32
    %1153 = vector.broadcast %c2_i32_532 : i32 to vector<4x128xi32>
    %1154 = arith.andi %72, %1153 : vector<4x128xi32>
    %c0_i32_533 = arith.constant 0 : i32
    %1155 = vector.broadcast %c0_i32_533 : i32 to vector<4x128xi32>
    %1156 = arith.cmpi eq, %1154, %1155 : vector<4x128xi32>
    %1157 = arith.select %1156, %1151, %1152 : vector<4x128xi1>, vector<4x128xf32>
    %1158 = arith.addf %1150, %1157 : vector<4x128xf32>
    %c124_i32_534 = arith.constant 124 : i32
    %1159 = tpu.dynamic_rotate %1158 by %c124_i32_534 dim 1 : vector<4x128xf32>, i32 -> vector<4x128xf32>
    %c4_i32_535 = arith.constant 4 : i32
    %1160 = tpu.dynamic_rotate %1158 by %c4_i32_535 dim 1 : vector<4x128xf32>, i32 -> vector<4x128xf32>
    %c4_i32_536 = arith.constant 4 : i32
    %1161 = vector.broadcast %c4_i32_536 : i32 to vector<4x128xi32>
    %1162 = arith.andi %72, %1161 : vector<4x128xi32>
    %c0_i32_537 = arith.constant 0 : i32
    %1163 = vector.broadcast %c0_i32_537 : i32 to vector<4x128xi32>
    %1164 = arith.cmpi eq, %1162, %1163 : vector<4x128xi32>
    %1165 = arith.select %1164, %1159, %1160 : vector<4x128xi1>, vector<4x128xf32>
    %1166 = arith.addf %1158, %1165 : vector<4x128xf32>
    %c120_i32_538 = arith.constant 120 : i32
    %1167 = tpu.dynamic_rotate %1166 by %c120_i32_538 dim 1 : vector<4x128xf32>, i32 -> vector<4x128xf32>
    %c8_i32_539 = arith.constant 8 : i32
    %1168 = tpu.dynamic_rotate %1166 by %c8_i32_539 dim 1 : vector<4x128xf32>, i32 -> vector<4x128xf32>
    %c8_i32_540 = arith.constant 8 : i32
    %1169 = vector.broadcast %c8_i32_540 : i32 to vector<4x128xi32>
    %1170 = arith.andi %72, %1169 : vector<4x128xi32>
    %c0_i32_541 = arith.constant 0 : i32
    %1171 = vector.broadcast %c0_i32_541 : i32 to vector<4x128xi32>
    %1172 = arith.cmpi eq, %1170, %1171 : vector<4x128xi32>
    %1173 = arith.select %1172, %1167, %1168 : vector<4x128xi1>, vector<4x128xf32>
    %1174 = arith.addf %1166, %1173 : vector<4x128xf32>
    %c112_i32_542 = arith.constant 112 : i32
    %1175 = tpu.dynamic_rotate %1174 by %c112_i32_542 dim 1 : vector<4x128xf32>, i32 -> vector<4x128xf32>
    %c16_i32_543 = arith.constant 16 : i32
    %1176 = tpu.dynamic_rotate %1174 by %c16_i32_543 dim 1 : vector<4x128xf32>, i32 -> vector<4x128xf32>
    %c16_i32_544 = arith.constant 16 : i32
    %1177 = vector.broadcast %c16_i32_544 : i32 to vector<4x128xi32>
    %1178 = arith.andi %72, %1177 : vector<4x128xi32>
    %c0_i32_545 = arith.constant 0 : i32
    %1179 = vector.broadcast %c0_i32_545 : i32 to vector<4x128xi32>
    %1180 = arith.cmpi eq, %1178, %1179 : vector<4x128xi32>
    %1181 = arith.select %1180, %1175, %1176 : vector<4x128xi1>, vector<4x128xf32>
    %1182 = arith.addf %1174, %1181 : vector<4x128xf32>
    %c96_i32_546 = arith.constant 96 : i32
    %1183 = tpu.dynamic_rotate %1182 by %c96_i32_546 dim 1 : vector<4x128xf32>, i32 -> vector<4x128xf32>
    %c32_i32_547 = arith.constant 32 : i32
    %1184 = tpu.dynamic_rotate %1182 by %c32_i32_547 dim 1 : vector<4x128xf32>, i32 -> vector<4x128xf32>
    %c32_i32_548 = arith.constant 32 : i32
    %1185 = vector.broadcast %c32_i32_548 : i32 to vector<4x128xi32>
    %1186 = arith.andi %72, %1185 : vector<4x128xi32>
    %c0_i32_549 = arith.constant 0 : i32
    %1187 = vector.broadcast %c0_i32_549 : i32 to vector<4x128xi32>
    %1188 = arith.cmpi eq, %1186, %1187 : vector<4x128xi32>
    %1189 = arith.select %1188, %1183, %1184 : vector<4x128xi1>, vector<4x128xf32>
    %1190 = arith.addf %1182, %1189 : vector<4x128xf32>
    %cst_550 = arith.constant 1.000000e+00 : f32
    %1191 = vector.broadcast %cst_550 : f32 to vector<4x128xf32>
    %1192 = arith.cmpf oge, %1190, %1191 : vector<4x128xf32>
    %1193 = arith.select %1192, %1139, %1137 : vector<4x128xi1>, vector<4x128xf32>
    %cst_551 = arith.constant 9.53674316E-7 : f32
    %1194 = vector.broadcast %cst_551 : f32 to vector<4x128xf32>
    %1195 = arith.addf %1193, %1194 : vector<4x128xf32>
    %1196 = arith.cmpf ogt, %71, %1195 : vector<4x128xf32>
    %cst_552 = arith.constant 1.000000e+00 : f32
    %cst_553 = arith.constant 0.000000e+00 : f32
    %1197 = vector.broadcast %cst_552 : f32 to vector<4x128xf32>
    %1198 = vector.broadcast %cst_553 : f32 to vector<4x128xf32>
    %1199 = arith.select %1196, %1197, %1198 : vector<4x128xi1>, vector<4x128xf32>
    %c127_i32_554 = arith.constant 127 : i32
    %1200 = tpu.dynamic_rotate %1199 by %c127_i32_554 dim 1 : vector<4x128xf32>, i32 -> vector<4x128xf32>
    %c1_i32_555 = arith.constant 1 : i32
    %1201 = tpu.dynamic_rotate %1199 by %c1_i32_555 dim 1 : vector<4x128xf32>, i32 -> vector<4x128xf32>
    %c1_i32_556 = arith.constant 1 : i32
    %1202 = vector.broadcast %c1_i32_556 : i32 to vector<4x128xi32>
    %1203 = arith.andi %72, %1202 : vector<4x128xi32>
    %c0_i32_557 = arith.constant 0 : i32
    %1204 = vector.broadcast %c0_i32_557 : i32 to vector<4x128xi32>
    %1205 = arith.cmpi eq, %1203, %1204 : vector<4x128xi32>
    %1206 = arith.select %1205, %1200, %1201 : vector<4x128xi1>, vector<4x128xf32>
    %1207 = arith.addf %1199, %1206 : vector<4x128xf32>
    %c126_i32_558 = arith.constant 126 : i32
    %1208 = tpu.dynamic_rotate %1207 by %c126_i32_558 dim 1 : vector<4x128xf32>, i32 -> vector<4x128xf32>
    %c2_i32_559 = arith.constant 2 : i32
    %1209 = tpu.dynamic_rotate %1207 by %c2_i32_559 dim 1 : vector<4x128xf32>, i32 -> vector<4x128xf32>
    %c2_i32_560 = arith.constant 2 : i32
    %1210 = vector.broadcast %c2_i32_560 : i32 to vector<4x128xi32>
    %1211 = arith.andi %72, %1210 : vector<4x128xi32>
    %c0_i32_561 = arith.constant 0 : i32
    %1212 = vector.broadcast %c0_i32_561 : i32 to vector<4x128xi32>
    %1213 = arith.cmpi eq, %1211, %1212 : vector<4x128xi32>
    %1214 = arith.select %1213, %1208, %1209 : vector<4x128xi1>, vector<4x128xf32>
    %1215 = arith.addf %1207, %1214 : vector<4x128xf32>
    %c124_i32_562 = arith.constant 124 : i32
    %1216 = tpu.dynamic_rotate %1215 by %c124_i32_562 dim 1 : vector<4x128xf32>, i32 -> vector<4x128xf32>
    %c4_i32_563 = arith.constant 4 : i32
    %1217 = tpu.dynamic_rotate %1215 by %c4_i32_563 dim 1 : vector<4x128xf32>, i32 -> vector<4x128xf32>
    %c4_i32_564 = arith.constant 4 : i32
    %1218 = vector.broadcast %c4_i32_564 : i32 to vector<4x128xi32>
    %1219 = arith.andi %72, %1218 : vector<4x128xi32>
    %c0_i32_565 = arith.constant 0 : i32
    %1220 = vector.broadcast %c0_i32_565 : i32 to vector<4x128xi32>
    %1221 = arith.cmpi eq, %1219, %1220 : vector<4x128xi32>
    %1222 = arith.select %1221, %1216, %1217 : vector<4x128xi1>, vector<4x128xf32>
    %1223 = arith.addf %1215, %1222 : vector<4x128xf32>
    %c120_i32_566 = arith.constant 120 : i32
    %1224 = tpu.dynamic_rotate %1223 by %c120_i32_566 dim 1 : vector<4x128xf32>, i32 -> vector<4x128xf32>
    %c8_i32_567 = arith.constant 8 : i32
    %1225 = tpu.dynamic_rotate %1223 by %c8_i32_567 dim 1 : vector<4x128xf32>, i32 -> vector<4x128xf32>
    %c8_i32_568 = arith.constant 8 : i32
    %1226 = vector.broadcast %c8_i32_568 : i32 to vector<4x128xi32>
    %1227 = arith.andi %72, %1226 : vector<4x128xi32>
    %c0_i32_569 = arith.constant 0 : i32
    %1228 = vector.broadcast %c0_i32_569 : i32 to vector<4x128xi32>
    %1229 = arith.cmpi eq, %1227, %1228 : vector<4x128xi32>
    %1230 = arith.select %1229, %1224, %1225 : vector<4x128xi1>, vector<4x128xf32>
    %1231 = arith.addf %1223, %1230 : vector<4x128xf32>
    %c112_i32_570 = arith.constant 112 : i32
    %1232 = tpu.dynamic_rotate %1231 by %c112_i32_570 dim 1 : vector<4x128xf32>, i32 -> vector<4x128xf32>
    %c16_i32_571 = arith.constant 16 : i32
    %1233 = tpu.dynamic_rotate %1231 by %c16_i32_571 dim 1 : vector<4x128xf32>, i32 -> vector<4x128xf32>
    %c16_i32_572 = arith.constant 16 : i32
    %1234 = vector.broadcast %c16_i32_572 : i32 to vector<4x128xi32>
    %1235 = arith.andi %72, %1234 : vector<4x128xi32>
    %c0_i32_573 = arith.constant 0 : i32
    %1236 = vector.broadcast %c0_i32_573 : i32 to vector<4x128xi32>
    %1237 = arith.cmpi eq, %1235, %1236 : vector<4x128xi32>
    %1238 = arith.select %1237, %1232, %1233 : vector<4x128xi1>, vector<4x128xf32>
    %1239 = arith.addf %1231, %1238 : vector<4x128xf32>
    %c96_i32_574 = arith.constant 96 : i32
    %1240 = tpu.dynamic_rotate %1239 by %c96_i32_574 dim 1 : vector<4x128xf32>, i32 -> vector<4x128xf32>
    %c32_i32_575 = arith.constant 32 : i32
    %1241 = tpu.dynamic_rotate %1239 by %c32_i32_575 dim 1 : vector<4x128xf32>, i32 -> vector<4x128xf32>
    %c32_i32_576 = arith.constant 32 : i32
    %1242 = vector.broadcast %c32_i32_576 : i32 to vector<4x128xi32>
    %1243 = arith.andi %72, %1242 : vector<4x128xi32>
    %c0_i32_577 = arith.constant 0 : i32
    %1244 = vector.broadcast %c0_i32_577 : i32 to vector<4x128xi32>
    %1245 = arith.cmpi eq, %1243, %1244 : vector<4x128xi32>
    %1246 = arith.select %1245, %1240, %1241 : vector<4x128xi1>, vector<4x128xf32>
    %1247 = arith.addf %1239, %1246 : vector<4x128xf32>
    %cst_578 = arith.constant 0.000000e+00 : f32
    %1248 = vector.broadcast %cst_578 : f32 to vector<4x128xf32>
    %1249 = arith.select %1196, %71, %1248 : vector<4x128xi1>, vector<4x128xf32>
    %c127_i32_579 = arith.constant 127 : i32
    %1250 = tpu.dynamic_rotate %1249 by %c127_i32_579 dim 1 : vector<4x128xf32>, i32 -> vector<4x128xf32>
    %c1_i32_580 = arith.constant 1 : i32
    %1251 = tpu.dynamic_rotate %1249 by %c1_i32_580 dim 1 : vector<4x128xf32>, i32 -> vector<4x128xf32>
    %c1_i32_581 = arith.constant 1 : i32
    %1252 = vector.broadcast %c1_i32_581 : i32 to vector<4x128xi32>
    %1253 = arith.andi %72, %1252 : vector<4x128xi32>
    %c0_i32_582 = arith.constant 0 : i32
    %1254 = vector.broadcast %c0_i32_582 : i32 to vector<4x128xi32>
    %1255 = arith.cmpi eq, %1253, %1254 : vector<4x128xi32>
    %1256 = arith.select %1255, %1250, %1251 : vector<4x128xi1>, vector<4x128xf32>
    %1257 = arith.addf %1249, %1256 : vector<4x128xf32>
    %c126_i32_583 = arith.constant 126 : i32
    %1258 = tpu.dynamic_rotate %1257 by %c126_i32_583 dim 1 : vector<4x128xf32>, i32 -> vector<4x128xf32>
    %c2_i32_584 = arith.constant 2 : i32
    %1259 = tpu.dynamic_rotate %1257 by %c2_i32_584 dim 1 : vector<4x128xf32>, i32 -> vector<4x128xf32>
    %c2_i32_585 = arith.constant 2 : i32
    %1260 = vector.broadcast %c2_i32_585 : i32 to vector<4x128xi32>
    %1261 = arith.andi %72, %1260 : vector<4x128xi32>
    %c0_i32_586 = arith.constant 0 : i32
    %1262 = vector.broadcast %c0_i32_586 : i32 to vector<4x128xi32>
    %1263 = arith.cmpi eq, %1261, %1262 : vector<4x128xi32>
    %1264 = arith.select %1263, %1258, %1259 : vector<4x128xi1>, vector<4x128xf32>
    %1265 = arith.addf %1257, %1264 : vector<4x128xf32>
    %c124_i32_587 = arith.constant 124 : i32
    %1266 = tpu.dynamic_rotate %1265 by %c124_i32_587 dim 1 : vector<4x128xf32>, i32 -> vector<4x128xf32>
    %c4_i32_588 = arith.constant 4 : i32
    %1267 = tpu.dynamic_rotate %1265 by %c4_i32_588 dim 1 : vector<4x128xf32>, i32 -> vector<4x128xf32>
    %c4_i32_589 = arith.constant 4 : i32
    %1268 = vector.broadcast %c4_i32_589 : i32 to vector<4x128xi32>
    %1269 = arith.andi %72, %1268 : vector<4x128xi32>
    %c0_i32_590 = arith.constant 0 : i32
    %1270 = vector.broadcast %c0_i32_590 : i32 to vector<4x128xi32>
    %1271 = arith.cmpi eq, %1269, %1270 : vector<4x128xi32>
    %1272 = arith.select %1271, %1266, %1267 : vector<4x128xi1>, vector<4x128xf32>
    %1273 = arith.addf %1265, %1272 : vector<4x128xf32>
    %c120_i32_591 = arith.constant 120 : i32
    %1274 = tpu.dynamic_rotate %1273 by %c120_i32_591 dim 1 : vector<4x128xf32>, i32 -> vector<4x128xf32>
    %c8_i32_592 = arith.constant 8 : i32
    %1275 = tpu.dynamic_rotate %1273 by %c8_i32_592 dim 1 : vector<4x128xf32>, i32 -> vector<4x128xf32>
    %c8_i32_593 = arith.constant 8 : i32
    %1276 = vector.broadcast %c8_i32_593 : i32 to vector<4x128xi32>
    %1277 = arith.andi %72, %1276 : vector<4x128xi32>
    %c0_i32_594 = arith.constant 0 : i32
    %1278 = vector.broadcast %c0_i32_594 : i32 to vector<4x128xi32>
    %1279 = arith.cmpi eq, %1277, %1278 : vector<4x128xi32>
    %1280 = arith.select %1279, %1274, %1275 : vector<4x128xi1>, vector<4x128xf32>
    %1281 = arith.addf %1273, %1280 : vector<4x128xf32>
    %c112_i32_595 = arith.constant 112 : i32
    %1282 = tpu.dynamic_rotate %1281 by %c112_i32_595 dim 1 : vector<4x128xf32>, i32 -> vector<4x128xf32>
    %c16_i32_596 = arith.constant 16 : i32
    %1283 = tpu.dynamic_rotate %1281 by %c16_i32_596 dim 1 : vector<4x128xf32>, i32 -> vector<4x128xf32>
    %c16_i32_597 = arith.constant 16 : i32
    %1284 = vector.broadcast %c16_i32_597 : i32 to vector<4x128xi32>
    %1285 = arith.andi %72, %1284 : vector<4x128xi32>
    %c0_i32_598 = arith.constant 0 : i32
    %1286 = vector.broadcast %c0_i32_598 : i32 to vector<4x128xi32>
    %1287 = arith.cmpi eq, %1285, %1286 : vector<4x128xi32>
    %1288 = arith.select %1287, %1282, %1283 : vector<4x128xi1>, vector<4x128xf32>
    %1289 = arith.addf %1281, %1288 : vector<4x128xf32>
    %c96_i32_599 = arith.constant 96 : i32
    %1290 = tpu.dynamic_rotate %1289 by %c96_i32_599 dim 1 : vector<4x128xf32>, i32 -> vector<4x128xf32>
    %c32_i32_600 = arith.constant 32 : i32
    %1291 = tpu.dynamic_rotate %1289 by %c32_i32_600 dim 1 : vector<4x128xf32>, i32 -> vector<4x128xf32>
    %c32_i32_601 = arith.constant 32 : i32
    %1292 = vector.broadcast %c32_i32_601 : i32 to vector<4x128xi32>
    %1293 = arith.andi %72, %1292 : vector<4x128xi32>
    %c0_i32_602 = arith.constant 0 : i32
    %1294 = vector.broadcast %c0_i32_602 : i32 to vector<4x128xi32>
    %1295 = arith.cmpi eq, %1293, %1294 : vector<4x128xi32>
    %1296 = arith.select %1295, %1290, %1291 : vector<4x128xi1>, vector<4x128xf32>
    %1297 = arith.addf %1289, %1296 : vector<4x128xf32>
    %cst_603 = arith.constant 1.000000e+00 : f32
    %1298 = vector.broadcast %cst_603 : f32 to vector<4x128xf32>
    %1299 = arith.subf %1297, %1298 : vector<4x128xf32>
    %cst_604 = arith.constant 1.000000e+00 : f32
    %1300 = vector.broadcast %cst_604 : f32 to vector<4x128xf32>
    %1301 = arith.maximumf %1247, %1300 : vector<4x128xf32>
    %1302 = arith.divf %1299, %1301 : vector<4x128xf32>
    %1303 = arith.subf %71, %1302 : vector<4x128xf32>
    %cst_605 = arith.constant 0.000000e+00 : f32
    %1304 = vector.broadcast %cst_605 : f32 to vector<4x128xf32>
    %1305 = arith.maximumf %1303, %1304 : vector<4x128xf32>
    %c0_606 = arith.constant 0 : index
    %c0_607 = arith.constant 0 : index
    %c0_608 = arith.constant 0 : index
    %1306 = vector.load %arg3[%c0_606, %c0_607, %c0_608] : memref<1x4x128xf32, #tpu.memory_space<vmem>>, vector<1x4x128xf32>
    %1307 = vector.shape_cast %1306 : vector<1x4x128xf32> to vector<4x128xf32>
    %1308 = vector.shape_cast %1305 : vector<4x128xf32> to vector<1x4x128xf32>
    tpu.vector_store %arg3[%c0_606, %c0_607, %c0_608], %1308 {strides = array<i32>} : memref<1x4x128xf32, #tpu.memory_space<vmem>>, vector<1x4x128xf32>,
    return
  }
  func.func @transform_0(%arg0: i32, %arg1: i32) -> (i32, i32, i32) {
    %c0_i32 = arith.constant 0 : i32
    %c0_i32_0 = arith.constant 0 : i32
    return %arg0, %c0_i32, %arg1 : i32, i32, i32
  }
  func.func @transform_1(%arg0: i32, %arg1: i32) -> (i32, i32, i32) {
    %c0_i32 = arith.constant 0 : i32
    %c0_i32_0 = arith.constant 0 : i32
    return %arg0, %c0_i32, %arg1 : i32, i32, i32
  }
}

</mosaic_0001>

<bundles_post_ra>
// kernel: sequential_sparsemax.1
= control target key start
LH: loop header
LB: loop body
LE: loop exit
PB: predicated region body
PF: predicated region fallthrough
CT: control target
= control target key end

     0   :  { %6 = vsyncpa [#allocation3], 0  ;;  %s2073_s0 = inlined_call_operand.vmem [shape: f32[2,4,128], index: 0, kind: input, shape index: {}]   ;;  %s2074_s1 = inlined_call_operand.hbm [shape: f32[2,4,128], index: 1, kind: output, shape index: {}]  }
   0x1   :  { %8 = vsyncpa [#allocation3 + $0x1], 0  ;;  %s1389_s6 = smov 0   ;;  %s1391_s7 = smov 0  }
   0x2   :  { %s1393_s8 = smov 0   ;;  %s1395_s9 = smov 0  }
   0x3   :  { %s1397_s10 = smov 0   ;;  %s1399_s11 = smov 0  }
   0x4 LB: > { %s1200_s12 = sadd.s32 4294967295, %s1362_s11   ;;  %s1201_s13 = sadd.s32 4294967294, %s1362_s11   ;;  %s1362_s11 = sphi %s1399_s11, %s14_s11   ;;  %s1358_s10 = sphi %s1397_s10, %s2093_s10   ;;  %s1354_s9 = sphi %s1395_s9, %s2092_s9   ;;  %s1350_s8 = sphi %s1393_s8, %s2091_s8   ;;  %s1346_s7 = sphi %s1391_s7, %s2090_s7   ;;  %s1342_s6 = sphi %s1389_s6, %s2089_s6  }
   0x5   : > { %s26_s14 = sadd.s32 1, %s1358_s10  ;;  %s63_s15 = sadd.s32 1, %s1350_s8 }
   0x6   : > { %p28_p0 = scmp.ge.s32.totalorder %s26_s14, 2  ;;  %p73_p1 = scmp.ne.s32.totalorder %s1350_s8, %s1346_s7 }
   0x7   : > { %p74_p2 = scmp.eq.s32.totalorder %s1200_s12, 1  ;;  %p79_p3 = scmp.ne.s32.totalorder %s1346_s7, %s1342_s6 }
   0x8   : > { %s2095_s14 = smov (%p28_p0, %s26_s14), 0  ;;  %p80_p5 = scmp.eq.s32.totalorder %s1201_s13, 1 }
   0x9   : > { %p1429_p4 = por %p74_p2, %p73_p1  ;;  %s58_s17 = ssub.s32 %s1358_s10, %s2095_s14 }
   0xa   : > { %p1204_p6 = scmp.ge.s32.totalorder %s1362_s11, 1  ;;  %p61_p7 = scmp.eq.s32.totalorder %s58_s17, 0 }
   0xb   : > { %p1436_p8 = por %p80_p5, %p79_p3  ;;  %p108_p9 = scmp.lt.s32.totalorder %s1362_s11, 3 }
   0xc   : > { %s1442_s19 = scalar_select %p61_p7, %s1350_s8, %s63_s15  }
   0xd   : > { %p109_p10 = pnand %p1204_p6, %p108_p9 }
   0xe   : > { %p130_p11 = scmp.lt.s32.totalorder (!%p109_p10), %s1354_s9, 1  ;;  %s1365_s25 = smov (!%p109_p10), 127  }
   0xf   : > { %112 = sbr.rel (%p109_p10) target bundleno = 15146 (0x3b2a), region = 24  ;;  %s1366_s26 = smov (!%p109_p10), 1  }
  0x10   : > { %s1367_s27 = smov (!%p109_p10), 126   ;;  %s1368_s28 = smov (!%p109_p10), 2  }
  0x11   : > { %s1369_s29 = smov (!%p109_p10), 4   ;;  %s1370_s30 = smov (!%p109_p10), 124  }
  0x12   : > { %s1371_s2 = smov (!%p109_p10), 8   ;;  %s1372_s3 = smov (!%p109_p10), 120  }
  0x13   : > { %s1373_s4 = smov (!%p109_p10), 16   ;;  %s1374_s5 = smov (!%p109_p10), 112  }
  0x14   : > { %v138_v0 = vlaneseq  ;;  %s131_s20 = scalar_select %p130_p11, %s1354_s9, 1  ;;  %v1364_v11 = vmov 0.0   ;;  %vm178_vm4 = vcmask 1043456  }
  0x15   : > { %s1375_s12 = smov 32   ;;  %s1376_s13 = smov 96  }
  0x16   : > { %v139_v1 = vshrl.u32 %v138_v0, 7  ;;  %s1206_s21 = sshll.u32 %s131_s20, 2  ;;  %v200_v50 = vand.u32 127, %v138_v0  ;;  %s127_s15 = sand.u32 1, %s1346_s7  }
  0x17   : > { %s136_s24 = scalar_lea.vmem %s2073_s0, %s1206_s21  ;;  %s1205_s17 = sshll.u32 %s127_s15, 2 }
  0x18   : > { %v140_v2 = vsub.s32 0, %v139_v1  ;;  %v149_v3 = vsub.s32 1, %v139_v1  ;;  %v158_v4 = vsub.s32 2, %v139_v1  ;;  %v167_v5 = vsub.s32 3, %v139_v1  ;;  %v137_v6 = vld [vmem:[%s136_s24] sm:$0xf] }
  0x19   : > { %v206_v51 = vand.u32 1, %v200_v50  ;;  %v214_v57 = vand.u32 2, %v200_v50  ;;  %v222_v63 = vand.u32 4, %v200_v50  ;;  %s1210_s20 = sshll.u32 %s1354_s9, 6  ;;  %s129_s21 = scalar_lea.vmem [#allocation2], %s1205_s17 }
  0x1a   : > { %v141_v7 = vrot.slane %v137_v6, %v140_v2  ;;  %v150_v8 = vrot.slane %v137_v6, %v149_v3  ;;  %v159_v9 = vrot.slane %v137_v6, %v158_v4  ;;  %v168_v10 = vrot.slane %v137_v6, %v167_v5  ;;  %s1129_s22 = sshll.u32 %s129_s21, 4  ;;  %s1130_s22 = int_to_ptr.vmem [resolvable:$true] %s1129_s22 }
  0x1b   : > { %vm1461_vm6 = vcmp.eq.s32.totalorder %v206_v51, 0  ;;  %vm1469_vm7 = vcmp.eq.s32.totalorder %v214_v57, 0  ;;  %vm1477_vm8 = vcmp.eq.s32.totalorder %v222_v63, 0  ;;  %v230_v5 = vand.u32 8, %v200_v50 }
  0x1c   : > { %vm142_vm0 = vcmp.ge.f32.partialorder %v141_v7, %v137_v6  ;;  %vm151_vm1 = vcmp.ge.f32.partialorder %v150_v8, %v137_v6  ;;  %vm160_vm2 = vcmp.ge.f32.partialorder %v159_v9, %v137_v6  ;;  %vm169_vm3 = vcmp.ge.f32.partialorder %v168_v10, %v137_v6 }
  0x1d   : > { %v143_v12 = vsel %vm142_vm0, 1.0, %v1364_v11  ;;  %v145_v13 = vsel %vm142_vm0, %v141_v7, 0.0  ;;  %v152_v14 = vsel %vm151_vm1, 1.0, %v1364_v11  ;;  %v154_v15 = vsel %vm151_vm1, %v150_v8, 0.0 }
  0x1e   : > { %v153_v16 = vadd.f32 %v152_v14, %v143_v12  ;;  %v155_v17 = vadd.f32 %v154_v15, %v145_v13  ;;  %v161_v18 = vsel %vm160_vm2, 1.0, %v1364_v11  ;;  %v163_v19 = vsel %vm160_vm2, %v159_v9, 0.0 }
  0x1f   : > { %v170_v20 = vsel %vm169_vm3, 1.0, %v1364_v11  ;;  %v172_v23 = vsel %vm169_vm3, %v168_v10, 0.0  ;;  %vm1485_vm9 = vcmp.eq.s32.totalorder %v230_v5, 0  ;;  %v238_v12 = vand.u32 16, %v200_v50 }
  0x20   : > { %v162_v21 = vadd.f32 %v161_v18, %v153_v16  ;;  %v164_v22 = vadd.f32 %v163_v19, %v155_v17  ;;  %v246_v18 = vand.u32 32, %v200_v50 }
  0x21   : > { %vm1493_vm10 = vcmp.eq.s32.totalorder %v238_v12, 0 }
  0x22   : > { %v171_v24 = vadd.f32 %v170_v20, %v162_v21  ;;  %v173_v25 = vadd.f32 %v172_v23, %v164_v22  ;;  %vm1501_vm11 = vcmp.eq.s32.totalorder %v246_v18, 0 }
  0x24   : > { %v174_v26 = vmul.f32 %v171_v24, %v137_v6  ;;  %v1377_v24 = vmov -1.0  }
  0x26   : > { %v175_v27 = vadd.f32 1.0, %v174_v26 }
  0x28   : > { %vm176_vm5 = vcmp.gt.f32.partialorder %v175_v27, %v173_v25 }
  0x29   : > { %v177_v28 = vsel %vm176_vm5, 1.0, %v1364_v11  ;;  %v186_v29 = vsel %vm176_vm5, %v137_v6, 0.0 }
  0x2a   : > { %v179_v30 = vsel %vm178_vm4, %v177_v28, 0.0  ;;  %v187_v31 = vsel %vm178_vm4, %v186_v29, 0.0 }
  0x2b   : > { %v180_v32 = vrot.slane %v179_v30, 4  ;;  %v188_v33 = vrot.slane %v187_v31, 4 }
  0x2d   : > { %v181_v34 = vadd.f32 %v180_v32, %v179_v30  ;;  %v189_v35 = vadd.f32 %v188_v33, %v187_v31 }
  0x2f   : > { %v182_v36 = vrot.slane %v181_v34, 2  ;;  %v190_v38 = vrot.slane %v189_v35, 2 }
  0x31   : > { %v183_v37 = vadd.f32 %v182_v36, %v181_v34  ;;  %v191_v41 = vadd.f32 %v190_v38, %v189_v35 }
  0x33   : > { %v184_v39 = vrot.slane %v183_v37, 1  ;;  %v192_v42 = vrot.slane %v191_v41, 1 }
  0x35   : > { %v185_v40 = vadd.f32 %v184_v39, %v183_v37  ;;  %v193_v43 = vadd.f32 %v192_v42, %v191_v41 }
  0x37   : > { %1282 = vrcp.f32 %v185_v40  ;;  %v1207_v44 = vadd.f32 -1.0, %v193_v43 }
  0x44   : > { %v1283_v45 = vpop.eup %1282 }
  0x45   : > { %v196_v46 = vmul.f32 %v1283_v45, %v1207_v44 }
  0x47   : > { %v197_v47 = vsub.f32 %v137_v6, %v196_v46 }
  0x49   : > { %v1455_v48 = vmax.f32 %v197_v47, 0.0 }
  0x4b   : > { %v201_v49 = vmax.f32 %v1455_v48, 0.0 }
  0x4d   : > { %202 = vrot.lane.b32.xlu0 %v201_v49, %s1365_s25 }
  0x51   : > { %204 = vrot.lane.b32.xlu0 %v201_v49, %s1366_s26 }
  0xbf   : > { %v203_v52 = vpop.permute.xlu0 %202 }
  0xc3   : > { %v205_v54 = vpop.permute.xlu0 %204 }
  0xc4   : > { %v208_v55 = vsel %vm1461_vm6, %v203_v52, %v205_v54 }
  0xc5   : > { %v209_v56 = vadd.f32 %v208_v55, %v201_v49 }
  0xc7   : > { %210 = vrot.lane.b32.xlu1 %v209_v56, %s1367_s27 }
  0xcb   : > { %212 = vrot.lane.b32.xlu1 %v209_v56, %s1368_s28 }
 0x139   : > { %v211_v58 = vpop.permute.xlu1 %210 }
 0x13d   : > { %v213_v60 = vpop.permute.xlu1 %212 }
 0x13e   : > { %v216_v61 = vsel %vm1469_vm7, %v211_v58, %v213_v60 }
 0x13f   : > { %v217_v62 = vadd.f32 %v216_v61, %v209_v56 }
 0x141   : > { %220 = vrot.lane.b32.xlu1 %v217_v62, %s1369_s29  ;;  %218 = vrot.lane.b32.xlu0 %v217_v62, %s1370_s30 }
 0x1b3   : > { %v221_v1 = vpop.permute.xlu1 %220  ;;  %v219_v2 = vpop.permute.xlu0 %218 }
 0x1b4   : > { %v224_v3 = vsel %vm1477_vm8, %v219_v2, %v221_v1 }
 0x1b5   : > { %v225_v4 = vadd.f32 %v224_v3, %v217_v62 }
 0x1b7   : > { %228 = vrot.lane.b32.xlu1 %v225_v4, %s1371_s2  ;;  %226 = vrot.lane.b32.xlu0 %v225_v4, %s1372_s3 }
 0x229   : > { %v229_v7 = vpop.permute.xlu1 %228  ;;  %v227_v8 = vpop.permute.xlu0 %226 }
 0x22a   : > { %v232_v9 = vsel %vm1485_vm9, %v227_v8, %v229_v7 }
 0x22b   : > { %v233_v10 = vadd.f32 %v232_v9, %v225_v4 }
 0x22d   : > { %236 = vrot.lane.b32.xlu1 %v233_v10, %s1373_s4  ;;  %234 = vrot.lane.b32.xlu0 %v233_v10, %s1374_s5 }
 0x29f   : > { %v237_v14 = vpop.permute.xlu1 %236  ;;  %v235_v15 = vpop.permute.xlu0 %234 }
 0x2a0   : > { %v240_v16 = vsel %vm1493_vm10, %v235_v15, %v237_v14 }
 0x2a1   : > { %v241_v17 = vadd.f32 %v240_v16, %v233_v10 }
 0x2a3   : > { %244 = vrot.lane.b32.xlu1 %v241_v17, %s1375_s12  ;;  %242 = vrot.lane.b32.xlu0 %v241_v17, %s1376_s13 }
 0x315   : > { %v245_v20 = vpop.permute.xlu1 %244  ;;  %v243_v21 = vpop.permute.xlu0 %242 }
 0x316   : > { %v248_v22 = vsel %vm1501_vm11, %v243_v21, %v245_v20 }
 0x317   : > { %v249_v23 = vadd.f32 %v248_v22, %v241_v17 }
 0x319   : > { %vm250_vm12 = vcmp.ge.f32.partialorder %v249_v23, 1.0 }
 0x31a   : > { %v251_v25 = vsel %vm250_vm12, 0.0, %v1377_v24 }
 0x31b   : > { %v252_v26 = vadd.f32 0.5, %v251_v25 }
 0x31d   : > { %v253_v27 = vsub.f32 %v1455_v48, %v252_v26 }
 0x31f   : > { %v254_v28 = vmax.f32 %v253_v27, 0.0 }
 0x321   : > { %257 = vrot.lane.b32.xlu1 %v254_v28, %s1366_s26  ;;  %255 = vrot.lane.b32.xlu0 %v254_v28, %s1365_s25 }
 0x393   : > { %v258_v29 = vpop.permute.xlu1 %257  ;;  %v256_v30 = vpop.permute.xlu0 %255 }
 0x394   : > { %v259_v31 = vsel %vm1461_vm6, %v256_v30, %v258_v29 }
 0x395   : > { %v260_v32 = vadd.f32 %v259_v31, %v254_v28 }
 0x397   : > { %263 = vrot.lane.b32.xlu1 %v260_v32, %s1368_s28  ;;  %261 = vrot.lane.b32.xlu0 %v260_v32, %s1367_s27 }
 0x409   : > { %v264_v33 = vpop.permute.xlu1 %263  ;;  %v262_v34 = vpop.permute.xlu0 %261 }
 0x40a   : > { %v265_v35 = vsel %vm1469_vm7, %v262_v34, %v264_v33 }
 0x40b   : > { %v266_v36 = vadd.f32 %v265_v35, %v260_v32 }
 0x40d   : > { %269 = vrot.lane.b32.xlu1 %v266_v36, %s1369_s29  ;;  %267 = vrot.lane.b32.xlu0 %v266_v36, %s1370_s30 }
 0x47f   : > { %v270_v37 = vpop.permute.xlu1 %269  ;;  %v268_v38 = vpop.permute.xlu0 %267 }
 0x480   : > { %v271_v39 = vsel %vm1477_vm8, %v268_v38, %v270_v37 }
 0x481   : > { %v272_v40 = vadd.f32 %v271_v39, %v266_v36 }
 0x483   : > { %275 = vrot.lane.b32.xlu1 %v272_v40, %s1371_s2  ;;  %273 = vrot.lane.b32.xlu0 %v272_v40, %s1372_s3 }
 0x4f5   : > { %v276_v41 = vpop.permute.xlu1 %275  ;;  %v274_v42 = vpop.permute.xlu0 %273 }
 0x4f6   : > { %v277_v43 = vsel %vm1485_vm9, %v274_v42, %v276_v41 }
 0x4f7   : > { %v278_v44 = vadd.f32 %v277_v43, %v272_v40 }
 0x4f9   : > { %281 = vrot.lane.b32.xlu1 %v278_v44, %s1373_s4  ;;  %279 = vrot.lane.b32.xlu0 %v278_v44, %s1374_s5 }
 0x56b   : > { %v282_v45 = vpop.permute.xlu1 %281  ;;  %v280_v46 = vpop.permute.xlu0 %279 }
 0x56c   : > { %v283_v47 = vsel %vm1493_vm10, %v280_v46, %v282_v45 }
 0x56d   : > { %v284_v49 = vadd.f32 %v283_v47, %v278_v44 }
 0x56f   : > { %287 = vrot.lane.b32.xlu1 %v284_v49, %s1375_s12  ;;  %285 = vrot.lane.b32.xlu0 %v284_v49, %s1376_s13 }
 0x5e1   : > { %v288_v50 = vpop.permute.xlu1 %287  ;;  %v286_v51 = vpop.permute.xlu0 %285 }
 0x5e2   : > { %v289_v52 = vsel %vm1501_vm11, %v286_v51, %v288_v50 }
 0x5e3   : > { %v290_v54 = vadd.f32 %v289_v52, %v284_v49 }
 0x5e5   : > { %vm291_vm13 = vcmp.ge.f32.partialorder %v290_v54, 1.0 }
 0x5e6   : > { %v292_v55 = vsel %vm291_vm13, %v252_v26, %v251_v25 }
 0x5e7   : > { %v293_v56 = vadd.f32 0.25, %v292_v55 }
 0x5e9   : > { %v294_v57 = vsub.f32 %v1455_v48, %v293_v56 }
 0x5eb   : > { %v295_v58 = vmax.f32 %v294_v57, 0.0 }
 0x5ed   : > { %298 = vrot.lane.b32.xlu1 %v295_v58, %s1366_s26  ;;  %296 = vrot.lane.b32.xlu0 %v295_v58, %s1365_s25 }
 0x65f   : > { %v299_v60 = vpop.permute.xlu1 %298  ;;  %v297_v61 = vpop.permute.xlu0 %296 }
 0x660   : > { %v300_v62 = vsel %vm1461_vm6, %v297_v61, %v299_v60 }
 0x661   : > { %v301_v63 = vadd.f32 %v300_v62, %v295_v58 }
 0x663   : > { %304 = vrot.lane.b32.xlu1 %v301_v63, %s1368_s28  ;;  %302 = vrot.lane.b32.xlu0 %v301_v63, %s1367_s27 }
 0x6d5   : > { %v305_v1 = vpop.permute.xlu1 %304  ;;  %v303_v2 = vpop.permute.xlu0 %302 }
 0x6d6   : > { %v306_v3 = vsel %vm1469_vm7, %v303_v2, %v305_v1 }
 0x6d7   : > { %v307_v4 = vadd.f32 %v306_v3, %v301_v63 }
 0x6d9   : > { %310 = vrot.lane.b32.xlu1 %v307_v4, %s1369_s29  ;;  %308 = vrot.lane.b32.xlu0 %v307_v4, %s1370_s30 }
 0x74b   : > { %v311_v5 = vpop.permute.xlu1 %310  ;;  %v309_v7 = vpop.permute.xlu0 %308 }
 0x74c   : > { %v312_v8 = vsel %vm1477_vm8, %v309_v7, %v311_v5 }
 0x74d   : > { %v313_v9 = vadd.f32 %v312_v8, %v307_v4 }
 0x74f   : > { %316 = vrot.lane.b32.xlu1 %v313_v9, %s1371_s2  ;;  %314 = vrot.lane.b32.xlu0 %v313_v9, %s1372_s3 }
 0x7c1   : > { %v317_v10 = vpop.permute.xlu1 %316  ;;  %v315_v12 = vpop.permute.xlu0 %314 }
 0x7c2   : > { %v318_v14 = vsel %vm1485_vm9, %v315_v12, %v317_v10 }
 0x7c3   : > { %v319_v15 = vadd.f32 %v318_v14, %v313_v9 }
 0x7c5   : > { %322 = vrot.lane.b32.xlu1 %v319_v15, %s1373_s4  ;;  %320 = vrot.lane.b32.xlu0 %v319_v15, %s1374_s5 }
 0x837   : > { %v323_v16 = vpop.permute.xlu1 %322  ;;  %v321_v17 = vpop.permute.xlu0 %320 }
 0x838   : > { %v324_v18 = vsel %vm1493_vm10, %v321_v17, %v323_v16 }
 0x839   : > { %v325_v20 = vadd.f32 %v324_v18, %v319_v15 }
 0x83b   : > { %328 = vrot.lane.b32.xlu1 %v325_v20, %s1375_s12  ;;  %326 = vrot.lane.b32.xlu0 %v325_v20, %s1376_s13 }
 0x8ad   : > { %v329_v21 = vpop.permute.xlu1 %328  ;;  %v327_v22 = vpop.permute.xlu0 %326 }
 0x8ae   : > { %v330_v23 = vsel %vm1501_vm11, %v327_v22, %v329_v21 }
 0x8af   : > { %v331_v24 = vadd.f32 %v330_v23, %v325_v20 }
 0x8b1   : > { %vm332_vm14 = vcmp.ge.f32.partialorder %v331_v24, 1.0 }
 0x8b2   : > { %v333_v25 = vsel %vm332_vm14, %v293_v56, %v292_v55 }
 0x8b3   : > { %v334_v26 = vadd.f32 0.125, %v333_v25 }
 0x8b5   : > { %v335_v27 = vsub.f32 %v1455_v48, %v334_v26 }
 0x8b7   : > { %v336_v28 = vmax.f32 %v335_v27, 0.0 }
 0x8b9   : > { %339 = vrot.lane.b32.xlu1 %v336_v28, %s1366_s26  ;;  %337 = vrot.lane.b32.xlu0 %v336_v28, %s1365_s25 }
 0x92b   : > { %v340_v29 = vpop.permute.xlu1 %339  ;;  %v338_v30 = vpop.permute.xlu0 %337 }
 0x92c   : > { %v341_v31 = vsel %vm1461_vm6, %v338_v30, %v340_v29 }
 0x92d   : > { %v342_v32 = vadd.f32 %v341_v31, %v336_v28 }
 0x92f   : > { %345 = vrot.lane.b32.xlu1 %v342_v32, %s1368_s28  ;;  %343 = vrot.lane.b32.xlu0 %v342_v32, %s1367_s27 }
 0x9a1   : > { %v346_v33 = vpop.permute.xlu1 %345  ;;  %v344_v34 = vpop.permute.xlu0 %343 }
 0x9a2   : > { %v347_v35 = vsel %vm1469_vm7, %v344_v34, %v346_v33 }
 0x9a3   : > { %v348_v36 = vadd.f32 %v347_v35, %v342_v32 }
 0x9a5   : > { %351 = vrot.lane.b32.xlu1 %v348_v36, %s1369_s29  ;;  %349 = vrot.lane.b32.xlu0 %v348_v36, %s1370_s30 }
 0xa17   : > { %v352_v37 = vpop.permute.xlu1 %351  ;;  %v350_v38 = vpop.permute.xlu0 %349 }
 0xa18   : > { %v353_v39 = vsel %vm1477_vm8, %v350_v38, %v352_v37 }
 0xa19   : > { %v354_v40 = vadd.f32 %v353_v39, %v348_v36 }
 0xa1b   : > { %357 = vrot.lane.b32.xlu1 %v354_v40, %s1371_s2  ;;  %355 = vrot.lane.b32.xlu0 %v354_v40, %s1372_s3 }
 0xa8d   : > { %v358_v41 = vpop.permute.xlu1 %357  ;;  %v356_v42 = vpop.permute.xlu0 %355 }
 0xa8e   : > { %v359_v43 = vsel %vm1485_vm9, %v356_v42, %v358_v41 }
 0xa8f   : > { %v360_v44 = vadd.f32 %v359_v43, %v354_v40 }
 0xa91   : > { %363 = vrot.lane.b32.xlu1 %v360_v44, %s1373_s4  ;;  %361 = vrot.lane.b32.xlu0 %v360_v44, %s1374_s5 }
 0xb03   : > { %v364_v45 = vpop.permute.xlu1 %363  ;;  %v362_v46 = vpop.permute.xlu0 %361 }
 0xb04   : > { %v365_v47 = vsel %vm1493_vm10, %v362_v46, %v364_v45 }
 0xb05   : > { %v366_v49 = vadd.f32 %v365_v47, %v360_v44 }
 0xb07   : > { %369 = vrot.lane.b32.xlu1 %v366_v49, %s1375_s12  ;;  %367 = vrot.lane.b32.xlu0 %v366_v49, %s1376_s13 }
 0xb79   : > { %v370_v50 = vpop.permute.xlu1 %369  ;;  %v368_v51 = vpop.permute.xlu0 %367 }
 0xb7a   : > { %v371_v52 = vsel %vm1501_vm11, %v368_v51, %v370_v50 }
 0xb7b   : > { %v372_v54 = vadd.f32 %v371_v52, %v366_v49 }
 0xb7d   : > { %vm373_vm15 = vcmp.ge.f32.partialorder %v372_v54, 1.0 }
 0xb7e   : > { %v374_v55 = vsel %vm373_vm15, %v334_v26, %v333_v25 }
 0xb7f   : > { %v375_v56 = vadd.f32 0.0625, %v374_v55 }
 0xb81   : > { %v376_v57 = vsub.f32 %v1455_v48, %v375_v56 }
 0xb83   : > { %v377_v58 = vmax.f32 %v376_v57, 0.0 }
 0xb85   : > { %380 = vrot.lane.b32.xlu1 %v377_v58, %s1366_s26  ;;  %378 = vrot.lane.b32.xlu0 %v377_v58, %s1365_s25 }
 0xbf7   : > { %v381_v60 = vpop.permute.xlu1 %380  ;;  %v379_v61 = vpop.permute.xlu0 %378 }
 0xbf8   : > { %v382_v62 = vsel %vm1461_vm6, %v379_v61, %v381_v60 }
 0xbf9   : > { %v383_v63 = vadd.f32 %v382_v62, %v377_v58 }
 0xbfb   : > { %386 = vrot.lane.b32.xlu1 %v383_v63, %s1368_s28  ;;  %384 = vrot.lane.b32.xlu0 %v383_v63, %s1367_s27 }
 0xc6d   : > { %v387_v1 = vpop.permute.xlu1 %386  ;;  %v385_v2 = vpop.permute.xlu0 %384 }
 0xc6e   : > { %v388_v3 = vsel %vm1469_vm7, %v385_v2, %v387_v1 }
 0xc6f   : > { %v389_v4 = vadd.f32 %v388_v3, %v383_v63 }
 0xc71   : > { %392 = vrot.lane.b32.xlu1 %v389_v4, %s1369_s29  ;;  %390 = vrot.lane.b32.xlu0 %v389_v4, %s1370_s30 }
 0xce3   : > { %v393_v5 = vpop.permute.xlu1 %392  ;;  %v391_v7 = vpop.permute.xlu0 %390 }
 0xce4   : > { %v394_v8 = vsel %vm1477_vm8, %v391_v7, %v393_v5 }
 0xce5   : > { %v395_v9 = vadd.f32 %v394_v8, %v389_v4 }
 0xce7   : > { %398 = vrot.lane.b32.xlu1 %v395_v9, %s1371_s2  ;;  %396 = vrot.lane.b32.xlu0 %v395_v9, %s1372_s3 }
 0xd59   : > { %v399_v10 = vpop.permute.xlu1 %398  ;;  %v397_v12 = vpop.permute.xlu0 %396 }
 0xd5a   : > { %v400_v14 = vsel %vm1485_vm9, %v397_v12, %v399_v10 }
 0xd5b   : > { %v401_v15 = vadd.f32 %v400_v14, %v395_v9 }
 0xd5d   : > { %404 = vrot.lane.b32.xlu1 %v401_v15, %s1373_s4  ;;  %402 = vrot.lane.b32.xlu0 %v401_v15, %s1374_s5 }
 0xdcf   : > { %v405_v16 = vpop.permute.xlu1 %404  ;;  %v403_v17 = vpop.permute.xlu0 %402 }
 0xdd0   : > { %v406_v18 = vsel %vm1493_vm10, %v403_v17, %v405_v16 }
 0xdd1   : > { %v407_v20 = vadd.f32 %v406_v18, %v401_v15 }
 0xdd3   : > { %410 = vrot.lane.b32.xlu1 %v407_v20, %s1375_s12  ;;  %408 = vrot.lane.b32.xlu0 %v407_v20, %s1376_s13 }
 0xe45   : > { %v411_v21 = vpop.permute.xlu1 %410  ;;  %v409_v22 = vpop.permute.xlu0 %408 }
 0xe46   : > { %v412_v23 = vsel %vm1501_vm11, %v409_v22, %v411_v21 }
 0xe47   : > { %v413_v24 = vadd.f32 %v412_v23, %v407_v20 }
 0xe49   : > { %vm414_vm0 = vcmp.ge.f32.partialorder %v413_v24, 1.0 }
 0xe4a   : > { %v415_v25 = vsel %vm414_vm0, %v375_v56, %v374_v55 }
 0xe4b   : > { %v416_v26 = vadd.f32 0.03125, %v415_v25 }
 0xe4d   : > { %v417_v27 = vsub.f32 %v1455_v48, %v416_v26 }
 0xe4f   : > { %v418_v28 = vmax.f32 %v417_v27, 0.0 }
 0xe51   : > { %421 = vrot.lane.b32.xlu1 %v418_v28, %s1366_s26  ;;  %419 = vrot.lane.b32.xlu0 %v418_v28, %s1365_s25 }
 0xec3   : > { %v422_v29 = vpop.permute.xlu1 %421  ;;  %v420_v30 = vpop.permute.xlu0 %419 }
 0xec4   : > { %v423_v31 = vsel %vm1461_vm6, %v420_v30, %v422_v29 }
 0xec5   : > { %v424_v32 = vadd.f32 %v423_v31, %v418_v28 }
 0xec7   : > { %427 = vrot.lane.b32.xlu1 %v424_v32, %s1368_s28  ;;  %425 = vrot.lane.b32.xlu0 %v424_v32, %s1367_s27 }
 0xf39   : > { %v428_v33 = vpop.permute.xlu1 %427  ;;  %v426_v34 = vpop.permute.xlu0 %425 }
 0xf3a   : > { %v429_v35 = vsel %vm1469_vm7, %v426_v34, %v428_v33 }
 0xf3b   : > { %v430_v36 = vadd.f32 %v429_v35, %v424_v32 }
 0xf3d   : > { %433 = vrot.lane.b32.xlu1 %v430_v36, %s1369_s29  ;;  %431 = vrot.lane.b32.xlu0 %v430_v36, %s1370_s30 }
 0xfaf   : > { %v434_v37 = vpop.permute.xlu1 %433  ;;  %v432_v38 = vpop.permute.xlu0 %431 }
 0xfb0   : > { %v435_v39 = vsel %vm1477_vm8, %v432_v38, %v434_v37 }
 0xfb1   : > { %v436_v40 = vadd.f32 %v435_v39, %v430_v36 }
 0xfb3   : > { %439 = vrot.lane.b32.xlu1 %v436_v40, %s1371_s2  ;;  %437 = vrot.lane.b32.xlu0 %v436_v40, %s1372_s3 }
0x1025   : > { %v440_v41 = vpop.permute.xlu1 %439  ;;  %v438_v42 = vpop.permute.xlu0 %437 }
0x1026   : > { %v441_v43 = vsel %vm1485_vm9, %v438_v42, %v440_v41 }
0x1027   : > { %v442_v44 = vadd.f32 %v441_v43, %v436_v40 }
0x1029   : > { %445 = vrot.lane.b32.xlu1 %v442_v44, %s1373_s4  ;;  %443 = vrot.lane.b32.xlu0 %v442_v44, %s1374_s5 }
0x109b   : > { %v446_v45 = vpop.permute.xlu1 %445  ;;  %v444_v46 = vpop.permute.xlu0 %443 }
0x109c   : > { %v447_v47 = vsel %vm1493_vm10, %v444_v46, %v446_v45 }
0x109d   : > { %v448_v49 = vadd.f32 %v447_v47, %v442_v44 }
0x109f   : > { %451 = vrot.lane.b32.xlu1 %v448_v49, %s1375_s12  ;;  %449 = vrot.lane.b32.xlu0 %v448_v49, %s1376_s13 }
0x1111   : > { %v452_v50 = vpop.permute.xlu1 %451  ;;  %v450_v51 = vpop.permute.xlu0 %449 }
0x1112   : > { %v453_v52 = vsel %vm1501_vm11, %v450_v51, %v452_v50 }
0x1113   : > { %v454_v54 = vadd.f32 %v453_v52, %v448_v49 }
0x1115   : > { %vm455_vm1 = vcmp.ge.f32.partialorder %v454_v54, 1.0 }
0x1116   : > { %v456_v55 = vsel %vm455_vm1, %v416_v26, %v415_v25 }
0x1117   : > { %v457_v56 = vadd.f32 0.015625, %v456_v55 }
0x1119   : > { %v458_v57 = vsub.f32 %v1455_v48, %v457_v56 }
0x111b   : > { %v459_v58 = vmax.f32 %v458_v57, 0.0 }
0x111d   : > { %462 = vrot.lane.b32.xlu1 %v459_v58, %s1366_s26  ;;  %460 = vrot.lane.b32.xlu0 %v459_v58, %s1365_s25 }
0x118f   : > { %v463_v60 = vpop.permute.xlu1 %462  ;;  %v461_v61 = vpop.permute.xlu0 %460 }
0x1190   : > { %v464_v62 = vsel %vm1461_vm6, %v461_v61, %v463_v60 }
0x1191   : > { %v465_v63 = vadd.f32 %v464_v62, %v459_v58 }
0x1193   : > { %468 = vrot.lane.b32.xlu1 %v465_v63, %s1368_s28  ;;  %466 = vrot.lane.b32.xlu0 %v465_v63, %s1367_s27 }
0x1205   : > { %v469_v1 = vpop.permute.xlu1 %468  ;;  %v467_v2 = vpop.permute.xlu0 %466 }
0x1206   : > { %v470_v3 = vsel %vm1469_vm7, %v467_v2, %v469_v1 }
0x1207   : > { %v471_v4 = vadd.f32 %v470_v3, %v465_v63 }
0x1209   : > { %474 = vrot.lane.b32.xlu1 %v471_v4, %s1369_s29  ;;  %472 = vrot.lane.b32.xlu0 %v471_v4, %s1370_s30 }
0x127b   : > { %v475_v5 = vpop.permute.xlu1 %474  ;;  %v473_v7 = vpop.permute.xlu0 %472 }
0x127c   : > { %v476_v8 = vsel %vm1477_vm8, %v473_v7, %v475_v5 }
0x127d   : > { %v477_v9 = vadd.f32 %v476_v8, %v471_v4 }
0x127f   : > { %480 = vrot.lane.b32.xlu1 %v477_v9, %s1371_s2  ;;  %478 = vrot.lane.b32.xlu0 %v477_v9, %s1372_s3 }
0x12f1   : > { %v481_v10 = vpop.permute.xlu1 %480  ;;  %v479_v12 = vpop.permute.xlu0 %478 }
0x12f2   : > { %v482_v14 = vsel %vm1485_vm9, %v479_v12, %v481_v10 }
0x12f3   : > { %v483_v15 = vadd.f32 %v482_v14, %v477_v9 }
0x12f5   : > { %486 = vrot.lane.b32.xlu1 %v483_v15, %s1373_s4  ;;  %484 = vrot.lane.b32.xlu0 %v483_v15, %s1374_s5 }
0x1367   : > { %v487_v16 = vpop.permute.xlu1 %486  ;;  %v485_v17 = vpop.permute.xlu0 %484 }
0x1368   : > { %v488_v18 = vsel %vm1493_vm10, %v485_v17, %v487_v16 }
0x1369   : > { %v489_v20 = vadd.f32 %v488_v18, %v483_v15 }
0x136b   : > { %492 = vrot.lane.b32.xlu1 %v489_v20, %s1375_s12  ;;  %490 = vrot.lane.b32.xlu0 %v489_v20, %s1376_s13 }
0x13dd   : > { %v493_v21 = vpop.permute.xlu1 %492  ;;  %v491_v22 = vpop.permute.xlu0 %490 }
0x13de   : > { %v494_v23 = vsel %vm1501_vm11, %v491_v22, %v493_v21 }
0x13df   : > { %v495_v24 = vadd.f32 %v494_v23, %v489_v20 }
0x13e1   : > { %vm496_vm2 = vcmp.ge.f32.partialorder %v495_v24, 1.0 }
0x13e2   : > { %v497_v25 = vsel %vm496_vm2, %v457_v56, %v456_v55 }
0x13e3   : > { %v498_v26 = vadd.f32 0.0078125, %v497_v25 }
0x13e5   : > { %v499_v27 = vsub.f32 %v1455_v48, %v498_v26 }
0x13e7   : > { %v500_v28 = vmax.f32 %v499_v27, 0.0 }
0x13e9   : > { %503 = vrot.lane.b32.xlu1 %v500_v28, %s1366_s26  ;;  %501 = vrot.lane.b32.xlu0 %v500_v28, %s1365_s25 }
0x145b   : > { %v504_v29 = vpop.permute.xlu1 %503  ;;  %v502_v30 = vpop.permute.xlu0 %501 }
0x145c   : > { %v505_v31 = vsel %vm1461_vm6, %v502_v30, %v504_v29 }
0x145d   : > { %v506_v32 = vadd.f32 %v505_v31, %v500_v28 }
0x145f   : > { %509 = vrot.lane.b32.xlu1 %v506_v32, %s1368_s28  ;;  %507 = vrot.lane.b32.xlu0 %v506_v32, %s1367_s27 }
0x14d1   : > { %v510_v33 = vpop.permute.xlu1 %509  ;;  %v508_v34 = vpop.permute.xlu0 %507 }
0x14d2   : > { %v511_v35 = vsel %vm1469_vm7, %v508_v34, %v510_v33 }
0x14d3   : > { %v512_v36 = vadd.f32 %v511_v35, %v506_v32 }
0x14d5   : > { %515 = vrot.lane.b32.xlu1 %v512_v36, %s1369_s29  ;;  %513 = vrot.lane.b32.xlu0 %v512_v36, %s1370_s30 }
0x1547   : > { %v516_v37 = vpop.permute.xlu1 %515  ;;  %v514_v38 = vpop.permute.xlu0 %513 }
0x1548   : > { %v517_v39 = vsel %vm1477_vm8, %v514_v38, %v516_v37 }
0x1549   : > { %v518_v40 = vadd.f32 %v517_v39, %v512_v36 }
0x154b   : > { %521 = vrot.lane.b32.xlu1 %v518_v40, %s1371_s2  ;;  %519 = vrot.lane.b32.xlu0 %v518_v40, %s1372_s3 }
0x15bd   : > { %v522_v41 = vpop.permute.xlu1 %521  ;;  %v520_v42 = vpop.permute.xlu0 %519 }
0x15be   : > { %v523_v43 = vsel %vm1485_vm9, %v520_v42, %v522_v41 }
0x15bf   : > { %v524_v44 = vadd.f32 %v523_v43, %v518_v40 }
0x15c1   : > { %527 = vrot.lane.b32.xlu1 %v524_v44, %s1373_s4  ;;  %525 = vrot.lane.b32.xlu0 %v524_v44, %s1374_s5 }
0x1633   : > { %v528_v45 = vpop.permute.xlu1 %527  ;;  %v526_v46 = vpop.permute.xlu0 %525 }
0x1634   : > { %v529_v47 = vsel %vm1493_vm10, %v526_v46, %v528_v45 }
0x1635   : > { %v530_v49 = vadd.f32 %v529_v47, %v524_v44 }
0x1637   : > { %533 = vrot.lane.b32.xlu1 %v530_v49, %s1375_s12  ;;  %531 = vrot.lane.b32.xlu0 %v530_v49, %s1376_s13 }
0x16a9   : > { %v534_v50 = vpop.permute.xlu1 %533  ;;  %v532_v51 = vpop.permute.xlu0 %531 }
0x16aa   : > { %v535_v52 = vsel %vm1501_vm11, %v532_v51, %v534_v50 }
0x16ab   : > { %v536_v54 = vadd.f32 %v535_v52, %v530_v49 }
0x16ad   : > { %vm537_vm3 = vcmp.ge.f32.partialorder %v536_v54, 1.0 }
0x16ae   : > { %v538_v55 = vsel %vm537_vm3, %v498_v26, %v497_v25 }
0x16af   : > { %v539_v56 = vadd.f32 0.00390625, %v538_v55 }
0x16b1   : > { %v540_v57 = vsub.f32 %v1455_v48, %v539_v56 }
0x16b3   : > { %v541_v58 = vmax.f32 %v540_v57, 0.0 }
0x16b5   : > { %544 = vrot.lane.b32.xlu1 %v541_v58, %s1366_s26  ;;  %542 = vrot.lane.b32.xlu0 %v541_v58, %s1365_s25 }
0x1727   : > { %v545_v60 = vpop.permute.xlu1 %544  ;;  %v543_v61 = vpop.permute.xlu0 %542 }
0x1728   : > { %v546_v62 = vsel %vm1461_vm6, %v543_v61, %v545_v60 }
0x1729   : > { %v547_v63 = vadd.f32 %v546_v62, %v541_v58 }
0x172b   : > { %550 = vrot.lane.b32.xlu1 %v547_v63, %s1368_s28  ;;  %548 = vrot.lane.b32.xlu0 %v547_v63, %s1367_s27 }
0x179d   : > { %v551_v1 = vpop.permute.xlu1 %550  ;;  %v549_v2 = vpop.permute.xlu0 %548 }
0x179e   : > { %v552_v3 = vsel %vm1469_vm7, %v549_v2, %v551_v1 }
0x179f   : > { %v553_v4 = vadd.f32 %v552_v3, %v547_v63 }
0x17a1   : > { %556 = vrot.lane.b32.xlu1 %v553_v4, %s1369_s29  ;;  %554 = vrot.lane.b32.xlu0 %v553_v4, %s1370_s30 }
0x1813   : > { %v557_v5 = vpop.permute.xlu1 %556  ;;  %v555_v7 = vpop.permute.xlu0 %554 }
0x1814   : > { %v558_v8 = vsel %vm1477_vm8, %v555_v7, %v557_v5 }
0x1815   : > { %v559_v9 = vadd.f32 %v558_v8, %v553_v4 }
0x1817   : > { %562 = vrot.lane.b32.xlu1 %v559_v9, %s1371_s2  ;;  %560 = vrot.lane.b32.xlu0 %v559_v9, %s1372_s3 }
0x1889   : > { %v563_v10 = vpop.permute.xlu1 %562  ;;  %v561_v12 = vpop.permute.xlu0 %560 }
0x188a   : > { %v564_v14 = vsel %vm1485_vm9, %v561_v12, %v563_v10 }
0x188b   : > { %v565_v15 = vadd.f32 %v564_v14, %v559_v9 }
0x188d   : > { %568 = vrot.lane.b32.xlu1 %v565_v15, %s1373_s4  ;;  %566 = vrot.lane.b32.xlu0 %v565_v15, %s1374_s5 }
0x18ff   : > { %v569_v16 = vpop.permute.xlu1 %568  ;;  %v567_v17 = vpop.permute.xlu0 %566 }
0x1900   : > { %v570_v18 = vsel %vm1493_vm10, %v567_v17, %v569_v16 }
0x1901   : > { %v571_v20 = vadd.f32 %v570_v18, %v565_v15 }
0x1903   : > { %574 = vrot.lane.b32.xlu1 %v571_v20, %s1375_s12  ;;  %572 = vrot.lane.b32.xlu0 %v571_v20, %s1376_s13 }
0x1975   : > { %v575_v21 = vpop.permute.xlu1 %574  ;;  %v573_v22 = vpop.permute.xlu0 %572 }
0x1976   : > { %v576_v23 = vsel %vm1501_vm11, %v573_v22, %v575_v21 }
0x1977   : > { %v577_v24 = vadd.f32 %v576_v23, %v571_v20 }
0x1979   : > { %vm578_vm4 = vcmp.ge.f32.partialorder %v577_v24, 1.0 }
0x197a   : > { %v579_v25 = vsel %vm578_vm4, %v539_v56, %v538_v55 }
0x197b   : > { %v580_v26 = vadd.f32 0.001953125, %v579_v25 }
0x197d   : > { %v581_v27 = vsub.f32 %v1455_v48, %v580_v26 }
0x197f   : > { %v582_v28 = vmax.f32 %v581_v27, 0.0 }
0x1981   : > { %585 = vrot.lane.b32.xlu1 %v582_v28, %s1366_s26  ;;  %583 = vrot.lane.b32.xlu0 %v582_v28, %s1365_s25 }
0x19f3   : > { %v586_v29 = vpop.permute.xlu1 %585  ;;  %v584_v30 = vpop.permute.xlu0 %583 }
0x19f4   : > { %v587_v31 = vsel %vm1461_vm6, %v584_v30, %v586_v29 }
0x19f5   : > { %v588_v32 = vadd.f32 %v587_v31, %v582_v28 }
0x19f7   : > { %591 = vrot.lane.b32.xlu1 %v588_v32, %s1368_s28  ;;  %589 = vrot.lane.b32.xlu0 %v588_v32, %s1367_s27 }
0x1a69   : > { %v592_v33 = vpop.permute.xlu1 %591  ;;  %v590_v34 = vpop.permute.xlu0 %589 }
0x1a6a   : > { %v593_v35 = vsel %vm1469_vm7, %v590_v34, %v592_v33 }
0x1a6b   : > { %v594_v36 = vadd.f32 %v593_v35, %v588_v32 }
0x1a6d   : > { %597 = vrot.lane.b32.xlu1 %v594_v36, %s1369_s29  ;;  %595 = vrot.lane.b32.xlu0 %v594_v36, %s1370_s30 }
0x1adf   : > { %v598_v37 = vpop.permute.xlu1 %597  ;;  %v596_v38 = vpop.permute.xlu0 %595 }
0x1ae0   : > { %v599_v39 = vsel %vm1477_vm8, %v596_v38, %v598_v37 }
0x1ae1   : > { %v600_v40 = vadd.f32 %v599_v39, %v594_v36 }
0x1ae3   : > { %603 = vrot.lane.b32.xlu1 %v600_v40, %s1371_s2  ;;  %601 = vrot.lane.b32.xlu0 %v600_v40, %s1372_s3 }
0x1b55   : > { %v604_v41 = vpop.permute.xlu1 %603  ;;  %v602_v42 = vpop.permute.xlu0 %601 }
0x1b56   : > { %v605_v43 = vsel %vm1485_vm9, %v602_v42, %v604_v41 }
0x1b57   : > { %v606_v44 = vadd.f32 %v605_v43, %v600_v40 }
0x1b59   : > { %609 = vrot.lane.b32.xlu1 %v606_v44, %s1373_s4  ;;  %607 = vrot.lane.b32.xlu0 %v606_v44, %s1374_s5 }
0x1bcb   : > { %v610_v45 = vpop.permute.xlu1 %609  ;;  %v608_v46 = vpop.permute.xlu0 %607 }
0x1bcc   : > { %v611_v47 = vsel %vm1493_vm10, %v608_v46, %v610_v45 }
0x1bcd   : > { %v612_v49 = vadd.f32 %v611_v47, %v606_v44 }
0x1bcf   : > { %615 = vrot.lane.b32.xlu1 %v612_v49, %s1375_s12  ;;  %613 = vrot.lane.b32.xlu0 %v612_v49, %s1376_s13 }
0x1c41   : > { %v616_v50 = vpop.permute.xlu1 %615  ;;  %v614_v51 = vpop.permute.xlu0 %613 }
0x1c42   : > { %v617_v52 = vsel %vm1501_vm11, %v614_v51, %v616_v50 }
0x1c43   : > { %v618_v54 = vadd.f32 %v617_v52, %v612_v49 }
0x1c45   : > { %vm619_vm5 = vcmp.ge.f32.partialorder %v618_v54, 1.0 }
0x1c46   : > { %v620_v55 = vsel %vm619_vm5, %v580_v26, %v579_v25 }
0x1c47   : > { %v621_v56 = vadd.f32 0.0009765625, %v620_v55 }
0x1c49   : > { %v622_v57 = vsub.f32 %v1455_v48, %v621_v56 }
0x1c4b   : > { %v623_v58 = vmax.f32 %v622_v57, 0.0 }
0x1c4d   : > { %626 = vrot.lane.b32.xlu1 %v623_v58, %s1366_s26  ;;  %624 = vrot.lane.b32.xlu0 %v623_v58, %s1365_s25 }
0x1cbf   : > { %v627_v60 = vpop.permute.xlu1 %626  ;;  %v625_v61 = vpop.permute.xlu0 %624 }
0x1cc0   : > { %v628_v62 = vsel %vm1461_vm6, %v625_v61, %v627_v60 }
0x1cc1   : > { %v629_v63 = vadd.f32 %v628_v62, %v623_v58 }
0x1cc3   : > { %632 = vrot.lane.b32.xlu1 %v629_v63, %s1368_s28  ;;  %630 = vrot.lane.b32.xlu0 %v629_v63, %s1367_s27 }
0x1d35   : > { %v633_v1 = vpop.permute.xlu1 %632  ;;  %v631_v2 = vpop.permute.xlu0 %630 }
0x1d36   : > { %v634_v3 = vsel %vm1469_vm7, %v631_v2, %v633_v1 }
0x1d37   : > { %v635_v4 = vadd.f32 %v634_v3, %v629_v63 }
0x1d39   : > { %638 = vrot.lane.b32.xlu1 %v635_v4, %s1369_s29  ;;  %636 = vrot.lane.b32.xlu0 %v635_v4, %s1370_s30 }
0x1dab   : > { %v639_v5 = vpop.permute.xlu1 %638  ;;  %v637_v7 = vpop.permute.xlu0 %636 }
0x1dac   : > { %v640_v8 = vsel %vm1477_vm8, %v637_v7, %v639_v5 }
0x1dad   : > { %v641_v9 = vadd.f32 %v640_v8, %v635_v4 }
0x1daf   : > { %644 = vrot.lane.b32.xlu1 %v641_v9, %s1371_s2  ;;  %642 = vrot.lane.b32.xlu0 %v641_v9, %s1372_s3 }
0x1e21   : > { %v645_v10 = vpop.permute.xlu1 %644  ;;  %v643_v12 = vpop.permute.xlu0 %642 }
0x1e22   : > { %v646_v14 = vsel %vm1485_vm9, %v643_v12, %v645_v10 }
0x1e23   : > { %v647_v15 = vadd.f32 %v646_v14, %v641_v9 }
0x1e25   : > { %650 = vrot.lane.b32.xlu1 %v647_v15, %s1373_s4  ;;  %648 = vrot.lane.b32.xlu0 %v647_v15, %s1374_s5 }
0x1e97   : > { %v651_v16 = vpop.permute.xlu1 %650  ;;  %v649_v17 = vpop.permute.xlu0 %648 }
0x1e98   : > { %v652_v18 = vsel %vm1493_vm10, %v649_v17, %v651_v16 }
0x1e99   : > { %v653_v20 = vadd.f32 %v652_v18, %v647_v15 }
0x1e9b   : > { %656 = vrot.lane.b32.xlu1 %v653_v20, %s1375_s12  ;;  %654 = vrot.lane.b32.xlu0 %v653_v20, %s1376_s13 }
0x1f0d   : > { %v657_v21 = vpop.permute.xlu1 %656  ;;  %v655_v22 = vpop.permute.xlu0 %654 }
0x1f0e   : > { %v658_v23 = vsel %vm1501_vm11, %v655_v22, %v657_v21 }
0x1f0f   : > { %v659_v24 = vadd.f32 %v658_v23, %v653_v20 }
0x1f11   : > { %vm660_vm12 = vcmp.ge.f32.partialorder %v659_v24, 1.0 }
0x1f12   : > { %v661_v25 = vsel %vm660_vm12, %v621_v56, %v620_v55 }
0x1f13   : > { %v662_v26 = vadd.f32 0.00048828125, %v661_v25 }
0x1f15   : > { %v663_v27 = vsub.f32 %v1455_v48, %v662_v26 }
0x1f17   : > { %v664_v28 = vmax.f32 %v663_v27, 0.0 }
0x1f19   : > { %667 = vrot.lane.b32.xlu1 %v664_v28, %s1366_s26  ;;  %665 = vrot.lane.b32.xlu0 %v664_v28, %s1365_s25 }
0x1f8b   : > { %v668_v29 = vpop.permute.xlu1 %667  ;;  %v666_v30 = vpop.permute.xlu0 %665 }
0x1f8c   : > { %v669_v31 = vsel %vm1461_vm6, %v666_v30, %v668_v29 }
0x1f8d   : > { %v670_v32 = vadd.f32 %v669_v31, %v664_v28 }
0x1f8f   : > { %673 = vrot.lane.b32.xlu1 %v670_v32, %s1368_s28  ;;  %671 = vrot.lane.b32.xlu0 %v670_v32, %s1367_s27 }
0x2001   : > { %v674_v33 = vpop.permute.xlu1 %673  ;;  %v672_v34 = vpop.permute.xlu0 %671 }
0x2002   : > { %v675_v35 = vsel %vm1469_vm7, %v672_v34, %v674_v33 }
0x2003   : > { %v676_v36 = vadd.f32 %v675_v35, %v670_v32 }
0x2005   : > { %679 = vrot.lane.b32.xlu1 %v676_v36, %s1369_s29  ;;  %677 = vrot.lane.b32.xlu0 %v676_v36, %s1370_s30 }
0x2077   : > { %v680_v37 = vpop.permute.xlu1 %679  ;;  %v678_v38 = vpop.permute.xlu0 %677 }
0x2078   : > { %v681_v39 = vsel %vm1477_vm8, %v678_v38, %v680_v37 }
0x2079   : > { %v682_v40 = vadd.f32 %v681_v39, %v676_v36 }
0x207b   : > { %685 = vrot.lane.b32.xlu1 %v682_v40, %s1371_s2  ;;  %683 = vrot.lane.b32.xlu0 %v682_v40, %s1372_s3 }
0x20ed   : > { %v686_v41 = vpop.permute.xlu1 %685  ;;  %v684_v42 = vpop.permute.xlu0 %683 }
0x20ee   : > { %v687_v43 = vsel %vm1485_vm9, %v684_v42, %v686_v41 }
0x20ef   : > { %v688_v44 = vadd.f32 %v687_v43, %v682_v40 }
0x20f1   : > { %691 = vrot.lane.b32.xlu1 %v688_v44, %s1373_s4  ;;  %689 = vrot.lane.b32.xlu0 %v688_v44, %s1374_s5 }
0x2163   : > { %v692_v45 = vpop.permute.xlu1 %691  ;;  %v690_v46 = vpop.permute.xlu0 %689 }
0x2164   : > { %v693_v47 = vsel %vm1493_vm10, %v690_v46, %v692_v45 }
0x2165   : > { %v694_v49 = vadd.f32 %v693_v47, %v688_v44 }
0x2167   : > { %697 = vrot.lane.b32.xlu1 %v694_v49, %s1375_s12  ;;  %695 = vrot.lane.b32.xlu0 %v694_v49, %s1376_s13 }
0x21d9   : > { %v698_v50 = vpop.permute.xlu1 %697  ;;  %v696_v51 = vpop.permute.xlu0 %695 }
0x21da   : > { %v699_v52 = vsel %vm1501_vm11, %v696_v51, %v698_v50 }
0x21db   : > { %v700_v54 = vadd.f32 %v699_v52, %v694_v49 }
0x21dd   : > { %vm701_vm13 = vcmp.ge.f32.partialorder %v700_v54, 1.0 }
0x21de   : > { %v702_v55 = vsel %vm701_vm13, %v662_v26, %v661_v25 }
0x21df   : > { %v703_v56 = vadd.f32 0.00024414063, %v702_v55 }
0x21e1   : > { %v704_v57 = vsub.f32 %v1455_v48, %v703_v56 }
0x21e3   : > { %v705_v58 = vmax.f32 %v704_v57, 0.0 }
0x21e5   : > { %708 = vrot.lane.b32.xlu1 %v705_v58, %s1366_s26  ;;  %706 = vrot.lane.b32.xlu0 %v705_v58, %s1365_s25 }
0x2257   : > { %v709_v60 = vpop.permute.xlu1 %708  ;;  %v707_v61 = vpop.permute.xlu0 %706 }
0x2258   : > { %v710_v62 = vsel %vm1461_vm6, %v707_v61, %v709_v60 }
0x2259   : > { %v711_v63 = vadd.f32 %v710_v62, %v705_v58 }
0x225b   : > { %714 = vrot.lane.b32.xlu1 %v711_v63, %s1368_s28  ;;  %712 = vrot.lane.b32.xlu0 %v711_v63, %s1367_s27 }
0x22cd   : > { %v715_v1 = vpop.permute.xlu1 %714  ;;  %v713_v2 = vpop.permute.xlu0 %712 }
0x22ce   : > { %v716_v3 = vsel %vm1469_vm7, %v713_v2, %v715_v1 }
0x22cf   : > { %v717_v4 = vadd.f32 %v716_v3, %v711_v63 }
0x22d1   : > { %720 = vrot.lane.b32.xlu1 %v717_v4, %s1369_s29  ;;  %718 = vrot.lane.b32.xlu0 %v717_v4, %s1370_s30 }
0x2343   : > { %v721_v5 = vpop.permute.xlu1 %720  ;;  %v719_v7 = vpop.permute.xlu0 %718 }
0x2344   : > { %v722_v8 = vsel %vm1477_vm8, %v719_v7, %v721_v5 }
0x2345   : > { %v723_v9 = vadd.f32 %v722_v8, %v717_v4 }
0x2347   : > { %726 = vrot.lane.b32.xlu1 %v723_v9, %s1371_s2  ;;  %724 = vrot.lane.b32.xlu0 %v723_v9, %s1372_s3 }
0x23b9   : > { %v727_v10 = vpop.permute.xlu1 %726  ;;  %v725_v12 = vpop.permute.xlu0 %724 }
0x23ba   : > { %v728_v14 = vsel %vm1485_vm9, %v725_v12, %v727_v10 }
0x23bb   : > { %v729_v15 = vadd.f32 %v728_v14, %v723_v9 }
0x23bd   : > { %732 = vrot.lane.b32.xlu1 %v729_v15, %s1373_s4  ;;  %730 = vrot.lane.b32.xlu0 %v729_v15, %s1374_s5 }
0x242f   : > { %v733_v16 = vpop.permute.xlu1 %732  ;;  %v731_v17 = vpop.permute.xlu0 %730 }
0x2430   : > { %v734_v18 = vsel %vm1493_vm10, %v731_v17, %v733_v16 }
0x2431   : > { %v735_v20 = vadd.f32 %v734_v18, %v729_v15 }
0x2433   : > { %738 = vrot.lane.b32.xlu1 %v735_v20, %s1375_s12  ;;  %736 = vrot.lane.b32.xlu0 %v735_v20, %s1376_s13 }
0x24a5   : > { %v739_v21 = vpop.permute.xlu1 %738  ;;  %v737_v22 = vpop.permute.xlu0 %736 }
0x24a6   : > { %v740_v23 = vsel %vm1501_vm11, %v737_v22, %v739_v21 }
0x24a7   : > { %v741_v24 = vadd.f32 %v740_v23, %v735_v20 }
0x24a9   : > { %vm742_vm14 = vcmp.ge.f32.partialorder %v741_v24, 1.0 }
0x24aa   : > { %v743_v25 = vsel %vm742_vm14, %v703_v56, %v702_v55 }
0x24ab   : > { %v744_v26 = vadd.f32 0.00012207031, %v743_v25 }
0x24ad   : > { %v745_v27 = vsub.f32 %v1455_v48, %v744_v26 }
0x24af   : > { %v746_v28 = vmax.f32 %v745_v27, 0.0 }
0x24b1   : > { %749 = vrot.lane.b32.xlu1 %v746_v28, %s1366_s26  ;;  %747 = vrot.lane.b32.xlu0 %v746_v28, %s1365_s25 }
0x2523   : > { %v750_v29 = vpop.permute.xlu1 %749  ;;  %v748_v30 = vpop.permute.xlu0 %747 }
0x2524   : > { %v751_v31 = vsel %vm1461_vm6, %v748_v30, %v750_v29 }
0x2525   : > { %v752_v32 = vadd.f32 %v751_v31, %v746_v28 }
0x2527   : > { %755 = vrot.lane.b32.xlu1 %v752_v32, %s1368_s28  ;;  %753 = vrot.lane.b32.xlu0 %v752_v32, %s1367_s27 }
0x2599   : > { %v756_v33 = vpop.permute.xlu1 %755  ;;  %v754_v34 = vpop.permute.xlu0 %753 }
0x259a   : > { %v757_v35 = vsel %vm1469_vm7, %v754_v34, %v756_v33 }
0x259b   : > { %v758_v36 = vadd.f32 %v757_v35, %v752_v32 }
0x259d   : > { %761 = vrot.lane.b32.xlu1 %v758_v36, %s1369_s29  ;;  %759 = vrot.lane.b32.xlu0 %v758_v36, %s1370_s30 }
0x260f   : > { %v762_v37 = vpop.permute.xlu1 %761  ;;  %v760_v38 = vpop.permute.xlu0 %759 }
0x2610   : > { %v763_v39 = vsel %vm1477_vm8, %v760_v38, %v762_v37 }
0x2611   : > { %v764_v40 = vadd.f32 %v763_v39, %v758_v36 }
0x2613   : > { %767 = vrot.lane.b32.xlu1 %v764_v40, %s1371_s2  ;;  %765 = vrot.lane.b32.xlu0 %v764_v40, %s1372_s3 }
0x2685   : > { %v768_v41 = vpop.permute.xlu1 %767  ;;  %v766_v42 = vpop.permute.xlu0 %765 }
0x2686   : > { %v769_v43 = vsel %vm1485_vm9, %v766_v42, %v768_v41 }
0x2687   : > { %v770_v44 = vadd.f32 %v769_v43, %v764_v40 }
0x2689   : > { %773 = vrot.lane.b32.xlu1 %v770_v44, %s1373_s4  ;;  %771 = vrot.lane.b32.xlu0 %v770_v44, %s1374_s5 }
0x26fb   : > { %v774_v45 = vpop.permute.xlu1 %773  ;;  %v772_v46 = vpop.permute.xlu0 %771 }
0x26fc   : > { %v775_v47 = vsel %vm1493_vm10, %v772_v46, %v774_v45 }
0x26fd   : > { %v776_v49 = vadd.f32 %v775_v47, %v770_v44 }
0x26ff   : > { %779 = vrot.lane.b32.xlu1 %v776_v49, %s1375_s12  ;;  %777 = vrot.lane.b32.xlu0 %v776_v49, %s1376_s13 }
0x2771   : > { %v780_v50 = vpop.permute.xlu1 %779  ;;  %v778_v51 = vpop.permute.xlu0 %777 }
0x2772   : > { %v781_v52 = vsel %vm1501_vm11, %v778_v51, %v780_v50 }
0x2773   : > { %v782_v54 = vadd.f32 %v781_v52, %v776_v49 }
0x2775   : > { %vm783_vm15 = vcmp.ge.f32.partialorder %v782_v54, 1.0 }
0x2776   : > { %v784_v55 = vsel %vm783_vm15, %v744_v26, %v743_v25 }
0x2777   : > { %v785_v56 = vadd.f32 6.1035156e-05, %v784_v55 }
0x2779   : > { %v786_v57 = vsub.f32 %v1455_v48, %v785_v56 }
0x277b   : > { %v787_v58 = vmax.f32 %v786_v57, 0.0 }
0x277d   : > { %790 = vrot.lane.b32.xlu1 %v787_v58, %s1366_s26  ;;  %788 = vrot.lane.b32.xlu0 %v787_v58, %s1365_s25 }
0x27ef   : > { %v791_v60 = vpop.permute.xlu1 %790  ;;  %v789_v61 = vpop.permute.xlu0 %788 }
0x27f0   : > { %v792_v62 = vsel %vm1461_vm6, %v789_v61, %v791_v60 }
0x27f1   : > { %v793_v63 = vadd.f32 %v792_v62, %v787_v58 }
0x27f3   : > { %796 = vrot.lane.b32.xlu1 %v793_v63, %s1368_s28  ;;  %794 = vrot.lane.b32.xlu0 %v793_v63, %s1367_s27 }
0x2865   : > { %v797_v1 = vpop.permute.xlu1 %796  ;;  %v795_v2 = vpop.permute.xlu0 %794 }
0x2866   : > { %v798_v3 = vsel %vm1469_vm7, %v795_v2, %v797_v1 }
0x2867   : > { %v799_v4 = vadd.f32 %v798_v3, %v793_v63 }
0x2869   : > { %802 = vrot.lane.b32.xlu1 %v799_v4, %s1369_s29  ;;  %800 = vrot.lane.b32.xlu0 %v799_v4, %s1370_s30 }
0x28db   : > { %v803_v5 = vpop.permute.xlu1 %802  ;;  %v801_v7 = vpop.permute.xlu0 %800 }
0x28dc   : > { %v804_v8 = vsel %vm1477_vm8, %v801_v7, %v803_v5 }
0x28dd   : > { %v805_v9 = vadd.f32 %v804_v8, %v799_v4 }
0x28df   : > { %808 = vrot.lane.b32.xlu1 %v805_v9, %s1371_s2  ;;  %806 = vrot.lane.b32.xlu0 %v805_v9, %s1372_s3 }
0x2951   : > { %v809_v10 = vpop.permute.xlu1 %808  ;;  %v807_v12 = vpop.permute.xlu0 %806 }
0x2952   : > { %v810_v14 = vsel %vm1485_vm9, %v807_v12, %v809_v10 }
0x2953   : > { %v811_v15 = vadd.f32 %v810_v14, %v805_v9 }
0x2955   : > { %814 = vrot.lane.b32.xlu1 %v811_v15, %s1373_s4  ;;  %812 = vrot.lane.b32.xlu0 %v811_v15, %s1374_s5 }
0x29c7   : > { %v815_v16 = vpop.permute.xlu1 %814  ;;  %v813_v17 = vpop.permute.xlu0 %812 }
0x29c8   : > { %v816_v18 = vsel %vm1493_vm10, %v813_v17, %v815_v16 }
0x29c9   : > { %v817_v20 = vadd.f32 %v816_v18, %v811_v15 }
0x29cb   : > { %820 = vrot.lane.b32.xlu1 %v817_v20, %s1375_s12  ;;  %818 = vrot.lane.b32.xlu0 %v817_v20, %s1376_s13 }
0x2a3d   : > { %v821_v21 = vpop.permute.xlu1 %820  ;;  %v819_v22 = vpop.permute.xlu0 %818 }
0x2a3e   : > { %v822_v23 = vsel %vm1501_vm11, %v819_v22, %v821_v21 }
0x2a3f   : > { %v823_v24 = vadd.f32 %v822_v23, %v817_v20 }
0x2a41   : > { %vm824_vm0 = vcmp.ge.f32.partialorder %v823_v24, 1.0 }
0x2a42   : > { %v825_v25 = vsel %vm824_vm0, %v785_v56, %v784_v55 }
0x2a43   : > { %v826_v26 = vadd.f32 3.0517578e-05, %v825_v25 }
0x2a45   : > { %v827_v27 = vsub.f32 %v1455_v48, %v826_v26 }
0x2a47   : > { %v828_v28 = vmax.f32 %v827_v27, 0.0 }
0x2a49   : > { %831 = vrot.lane.b32.xlu1 %v828_v28, %s1366_s26  ;;  %829 = vrot.lane.b32.xlu0 %v828_v28, %s1365_s25 }
0x2abb   : > { %v832_v29 = vpop.permute.xlu1 %831  ;;  %v830_v30 = vpop.permute.xlu0 %829 }
0x2abc   : > { %v833_v31 = vsel %vm1461_vm6, %v830_v30, %v832_v29 }
0x2abd   : > { %v834_v32 = vadd.f32 %v833_v31, %v828_v28 }
0x2abf   : > { %837 = vrot.lane.b32.xlu1 %v834_v32, %s1368_s28  ;;  %835 = vrot.lane.b32.xlu0 %v834_v32, %s1367_s27 }
0x2b31   : > { %v838_v33 = vpop.permute.xlu1 %837  ;;  %v836_v34 = vpop.permute.xlu0 %835 }
0x2b32   : > { %v839_v35 = vsel %vm1469_vm7, %v836_v34, %v838_v33 }
0x2b33   : > { %v840_v36 = vadd.f32 %v839_v35, %v834_v32 }
0x2b35   : > { %843 = vrot.lane.b32.xlu1 %v840_v36, %s1369_s29  ;;  %841 = vrot.lane.b32.xlu0 %v840_v36, %s1370_s30 }
0x2ba7   : > { %v844_v37 = vpop.permute.xlu1 %843  ;;  %v842_v38 = vpop.permute.xlu0 %841 }
0x2ba8   : > { %v845_v39 = vsel %vm1477_vm8, %v842_v38, %v844_v37 }
0x2ba9   : > { %v846_v40 = vadd.f32 %v845_v39, %v840_v36 }
0x2bab   : > { %849 = vrot.lane.b32.xlu1 %v846_v40, %s1371_s2  ;;  %847 = vrot.lane.b32.xlu0 %v846_v40, %s1372_s3 }
0x2c1d   : > { %v850_v41 = vpop.permute.xlu1 %849  ;;  %v848_v42 = vpop.permute.xlu0 %847 }
0x2c1e   : > { %v851_v43 = vsel %vm1485_vm9, %v848_v42, %v850_v41 }
0x2c1f   : > { %v852_v44 = vadd.f32 %v851_v43, %v846_v40 }
0x2c21   : > { %855 = vrot.lane.b32.xlu1 %v852_v44, %s1373_s4  ;;  %853 = vrot.lane.b32.xlu0 %v852_v44, %s1374_s5 }
0x2c93   : > { %v856_v45 = vpop.permute.xlu1 %855  ;;  %v854_v46 = vpop.permute.xlu0 %853 }
0x2c94   : > { %v857_v47 = vsel %vm1493_vm10, %v854_v46, %v856_v45 }
0x2c95   : > { %v858_v49 = vadd.f32 %v857_v47, %v852_v44 }
0x2c97   : > { %861 = vrot.lane.b32.xlu1 %v858_v49, %s1375_s12  ;;  %859 = vrot.lane.b32.xlu0 %v858_v49, %s1376_s13 }
0x2d09   : > { %v862_v50 = vpop.permute.xlu1 %861  ;;  %v860_v51 = vpop.permute.xlu0 %859 }
0x2d0a   : > { %v863_v52 = vsel %vm1501_vm11, %v860_v51, %v862_v50 }
0x2d0b   : > { %v864_v54 = vadd.f32 %v863_v52, %v858_v49 }
0x2d0d   : > { %vm865_vm1 = vcmp.ge.f32.partialorder %v864_v54, 1.0 }
0x2d0e   : > { %v866_v55 = vsel %vm865_vm1, %v826_v26, %v825_v25 }
0x2d0f   : > { %v867_v56 = vadd.f32 1.5258789e-05, %v866_v55 }
0x2d11   : > { %v868_v57 = vsub.f32 %v1455_v48, %v867_v56 }
0x2d13   : > { %v869_v58 = vmax.f32 %v868_v57, 0.0 }
0x2d15   : > { %872 = vrot.lane.b32.xlu1 %v869_v58, %s1366_s26  ;;  %870 = vrot.lane.b32.xlu0 %v869_v58, %s1365_s25 }
0x2d87   : > { %v873_v60 = vpop.permute.xlu1 %872  ;;  %v871_v61 = vpop.permute.xlu0 %870 }
0x2d88   : > { %v874_v62 = vsel %vm1461_vm6, %v871_v61, %v873_v60 }
0x2d89   : > { %v875_v63 = vadd.f32 %v874_v62, %v869_v58 }
0x2d8b   : > { %878 = vrot.lane.b32.xlu1 %v875_v63, %s1368_s28  ;;  %876 = vrot.lane.b32.xlu0 %v875_v63, %s1367_s27 }
0x2dfd   : > { %v879_v1 = vpop.permute.xlu1 %878  ;;  %v877_v2 = vpop.permute.xlu0 %876 }
0x2dfe   : > { %v880_v3 = vsel %vm1469_vm7, %v877_v2, %v879_v1 }
0x2dff   : > { %v881_v4 = vadd.f32 %v880_v3, %v875_v63 }
0x2e01   : > { %884 = vrot.lane.b32.xlu1 %v881_v4, %s1369_s29  ;;  %882 = vrot.lane.b32.xlu0 %v881_v4, %s1370_s30 }
0x2e73   : > { %v885_v5 = vpop.permute.xlu1 %884  ;;  %v883_v7 = vpop.permute.xlu0 %882 }
0x2e74   : > { %v886_v8 = vsel %vm1477_vm8, %v883_v7, %v885_v5 }
0x2e75   : > { %v887_v9 = vadd.f32 %v886_v8, %v881_v4 }
0x2e77   : > { %890 = vrot.lane.b32.xlu1 %v887_v9, %s1371_s2  ;;  %888 = vrot.lane.b32.xlu0 %v887_v9, %s1372_s3 }
0x2ee9   : > { %v891_v10 = vpop.permute.xlu1 %890  ;;  %v889_v12 = vpop.permute.xlu0 %888 }
0x2eea   : > { %v892_v14 = vsel %vm1485_vm9, %v889_v12, %v891_v10 }
0x2eeb   : > { %v893_v15 = vadd.f32 %v892_v14, %v887_v9 }
0x2eed   : > { %896 = vrot.lane.b32.xlu1 %v893_v15, %s1373_s4  ;;  %894 = vrot.lane.b32.xlu0 %v893_v15, %s1374_s5 }
0x2f5f   : > { %v897_v16 = vpop.permute.xlu1 %896  ;;  %v895_v17 = vpop.permute.xlu0 %894 }
0x2f60   : > { %v898_v18 = vsel %vm1493_vm10, %v895_v17, %v897_v16 }
0x2f61   : > { %v899_v20 = vadd.f32 %v898_v18, %v893_v15 }
0x2f63   : > { %902 = vrot.lane.b32.xlu1 %v899_v20, %s1375_s12  ;;  %900 = vrot.lane.b32.xlu0 %v899_v20, %s1376_s13 }
0x2fd5   : > { %v903_v21 = vpop.permute.xlu1 %902  ;;  %v901_v22 = vpop.permute.xlu0 %900 }
0x2fd6   : > { %v904_v23 = vsel %vm1501_vm11, %v901_v22, %v903_v21 }
0x2fd7   : > { %v905_v24 = vadd.f32 %v904_v23, %v899_v20 }
0x2fd9   : > { %vm906_vm2 = vcmp.ge.f32.partialorder %v905_v24, 1.0 }
0x2fda   : > { %v907_v25 = vsel %vm906_vm2, %v867_v56, %v866_v55 }
0x2fdb   : > { %v908_v26 = vadd.f32 7.6293945e-06, %v907_v25 }
0x2fdd   : > { %v909_v27 = vsub.f32 %v1455_v48, %v908_v26 }
0x2fdf   : > { %v910_v28 = vmax.f32 %v909_v27, 0.0 }
0x2fe1   : > { %913 = vrot.lane.b32.xlu1 %v910_v28, %s1366_s26  ;;  %911 = vrot.lane.b32.xlu0 %v910_v28, %s1365_s25 }
0x3053   : > { %v914_v29 = vpop.permute.xlu1 %913  ;;  %v912_v30 = vpop.permute.xlu0 %911 }
0x3054   : > { %v915_v31 = vsel %vm1461_vm6, %v912_v30, %v914_v29 }
0x3055   : > { %v916_v32 = vadd.f32 %v915_v31, %v910_v28 }
0x3057   : > { %919 = vrot.lane.b32.xlu1 %v916_v32, %s1368_s28  ;;  %917 = vrot.lane.b32.xlu0 %v916_v32, %s1367_s27 }
0x30c9   : > { %v920_v33 = vpop.permute.xlu1 %919  ;;  %v918_v34 = vpop.permute.xlu0 %917 }
0x30ca   : > { %v921_v35 = vsel %vm1469_vm7, %v918_v34, %v920_v33 }
0x30cb   : > { %v922_v36 = vadd.f32 %v921_v35, %v916_v32 }
0x30cd   : > { %925 = vrot.lane.b32.xlu1 %v922_v36, %s1369_s29  ;;  %923 = vrot.lane.b32.xlu0 %v922_v36, %s1370_s30 }
0x313f   : > { %v926_v37 = vpop.permute.xlu1 %925  ;;  %v924_v38 = vpop.permute.xlu0 %923 }
0x3140   : > { %v927_v39 = vsel %vm1477_vm8, %v924_v38, %v926_v37 }
0x3141   : > { %v928_v40 = vadd.f32 %v927_v39, %v922_v36 }
0x3143   : > { %931 = vrot.lane.b32.xlu1 %v928_v40, %s1371_s2  ;;  %929 = vrot.lane.b32.xlu0 %v928_v40, %s1372_s3 }
0x31b5   : > { %v932_v41 = vpop.permute.xlu1 %931  ;;  %v930_v42 = vpop.permute.xlu0 %929 }
0x31b6   : > { %v933_v43 = vsel %vm1485_vm9, %v930_v42, %v932_v41 }
0x31b7   : > { %v934_v44 = vadd.f32 %v933_v43, %v928_v40 }
0x31b9   : > { %937 = vrot.lane.b32.xlu1 %v934_v44, %s1373_s4  ;;  %935 = vrot.lane.b32.xlu0 %v934_v44, %s1374_s5 }
0x322b   : > { %v938_v45 = vpop.permute.xlu1 %937  ;;  %v936_v46 = vpop.permute.xlu0 %935 }
0x322c   : > { %v939_v47 = vsel %vm1493_vm10, %v936_v46, %v938_v45 }
0x322d   : > { %v940_v49 = vadd.f32 %v939_v47, %v934_v44 }
0x322f   : > { %943 = vrot.lane.b32.xlu1 %v940_v49, %s1375_s12  ;;  %941 = vrot.lane.b32.xlu0 %v940_v49, %s1376_s13 }
0x32a1   : > { %v944_v50 = vpop.permute.xlu1 %943  ;;  %v942_v51 = vpop.permute.xlu0 %941 }
0x32a2   : > { %v945_v52 = vsel %vm1501_vm11, %v942_v51, %v944_v50 }
0x32a3   : > { %v946_v54 = vadd.f32 %v945_v52, %v940_v49 }
0x32a5   : > { %vm947_vm3 = vcmp.ge.f32.partialorder %v946_v54, 1.0 }
0x32a6   : > { %v948_v55 = vsel %vm947_vm3, %v908_v26, %v907_v25 }
0x32a7   : > { %v949_v56 = vadd.f32 3.8146973e-06, %v948_v55 }
0x32a9   : > { %v950_v57 = vsub.f32 %v1455_v48, %v949_v56 }
0x32ab   : > { %v951_v58 = vmax.f32 %v950_v57, 0.0 }
0x32ad   : > { %954 = vrot.lane.b32.xlu1 %v951_v58, %s1366_s26  ;;  %952 = vrot.lane.b32.xlu0 %v951_v58, %s1365_s25 }
0x331f   : > { %v955_v60 = vpop.permute.xlu1 %954  ;;  %v953_v61 = vpop.permute.xlu0 %952 }
0x3320   : > { %v956_v62 = vsel %vm1461_vm6, %v953_v61, %v955_v60 }
0x3321   : > { %v957_v63 = vadd.f32 %v956_v62, %v951_v58 }
0x3323   : > { %960 = vrot.lane.b32.xlu1 %v957_v63, %s1368_s28  ;;  %958 = vrot.lane.b32.xlu0 %v957_v63, %s1367_s27 }
0x3395   : > { %v961_v1 = vpop.permute.xlu1 %960  ;;  %v959_v2 = vpop.permute.xlu0 %958 }
0x3396   : > { %v962_v3 = vsel %vm1469_vm7, %v959_v2, %v961_v1 }
0x3397   : > { %v963_v4 = vadd.f32 %v962_v3, %v957_v63 }
0x3399   : > { %966 = vrot.lane.b32.xlu1 %v963_v4, %s1369_s29  ;;  %964 = vrot.lane.b32.xlu0 %v963_v4, %s1370_s30 }
0x340b   : > { %v967_v5 = vpop.permute.xlu1 %966  ;;  %v965_v7 = vpop.permute.xlu0 %964 }
0x340c   : > { %v968_v8 = vsel %vm1477_vm8, %v965_v7, %v967_v5 }
0x340d   : > { %v969_v9 = vadd.f32 %v968_v8, %v963_v4 }
0x340f   : > { %972 = vrot.lane.b32.xlu1 %v969_v9, %s1371_s2  ;;  %970 = vrot.lane.b32.xlu0 %v969_v9, %s1372_s3 }
0x3481   : > { %v973_v10 = vpop.permute.xlu1 %972  ;;  %v971_v12 = vpop.permute.xlu0 %970 }
0x3482   : > { %v974_v14 = vsel %vm1485_vm9, %v971_v12, %v973_v10 }
0x3483   : > { %v975_v15 = vadd.f32 %v974_v14, %v969_v9 }
0x3485   : > { %978 = vrot.lane.b32.xlu1 %v975_v15, %s1373_s4  ;;  %976 = vrot.lane.b32.xlu0 %v975_v15, %s1374_s5 }
0x34f7   : > { %v979_v16 = vpop.permute.xlu1 %978  ;;  %v977_v17 = vpop.permute.xlu0 %976 }
0x34f8   : > { %v980_v18 = vsel %vm1493_vm10, %v977_v17, %v979_v16 }
0x34f9   : > { %v981_v20 = vadd.f32 %v980_v18, %v975_v15 }
0x34fb   : > { %984 = vrot.lane.b32.xlu1 %v981_v20, %s1375_s12  ;;  %982 = vrot.lane.b32.xlu0 %v981_v20, %s1376_s13 }
0x356d   : > { %v985_v21 = vpop.permute.xlu1 %984  ;;  %v983_v22 = vpop.permute.xlu0 %982 }
0x356e   : > { %v986_v23 = vsel %vm1501_vm11, %v983_v22, %v985_v21 }
0x356f   : > { %v987_v24 = vadd.f32 %v986_v23, %v981_v20 }
0x3571   : > { %vm988_vm4 = vcmp.ge.f32.partialorder %v987_v24, 1.0 }
0x3572   : > { %v989_v25 = vsel %vm988_vm4, %v949_v56, %v948_v55 }
0x3573   : > { %v990_v26 = vadd.f32 1.9073486e-06, %v989_v25 }
0x3575   : > { %v991_v27 = vsub.f32 %v1455_v48, %v990_v26 }
0x3577   : > { %v992_v28 = vmax.f32 %v991_v27, 0.0 }
0x3579   : > { %995 = vrot.lane.b32.xlu1 %v992_v28, %s1366_s26  ;;  %993 = vrot.lane.b32.xlu0 %v992_v28, %s1365_s25 }
0x35eb   : > { %v996_v29 = vpop.permute.xlu1 %995  ;;  %v994_v30 = vpop.permute.xlu0 %993 }
0x35ec   : > { %v997_v31 = vsel %vm1461_vm6, %v994_v30, %v996_v29 }
0x35ed   : > { %v998_v32 = vadd.f32 %v997_v31, %v992_v28 }
0x35ef   : > { %1001 = vrot.lane.b32.xlu1 %v998_v32, %s1368_s28  ;;  %999 = vrot.lane.b32.xlu0 %v998_v32, %s1367_s27 }
0x3661   : > { %v1002_v33 = vpop.permute.xlu1 %1001  ;;  %v1000_v34 = vpop.permute.xlu0 %999 }
0x3662   : > { %v1003_v35 = vsel %vm1469_vm7, %v1000_v34, %v1002_v33 }
0x3663   : > { %v1004_v36 = vadd.f32 %v1003_v35, %v998_v32 }
0x3665   : > { %1007 = vrot.lane.b32.xlu1 %v1004_v36, %s1369_s29  ;;  %1005 = vrot.lane.b32.xlu0 %v1004_v36, %s1370_s30 }
0x36d7   : > { %v1008_v37 = vpop.permute.xlu1 %1007  ;;  %v1006_v38 = vpop.permute.xlu0 %1005 }
0x36d8   : > { %v1009_v39 = vsel %vm1477_vm8, %v1006_v38, %v1008_v37 }
0x36d9   : > { %v1010_v40 = vadd.f32 %v1009_v39, %v1004_v36 }
0x36db   : > { %1013 = vrot.lane.b32.xlu1 %v1010_v40, %s1371_s2  ;;  %1011 = vrot.lane.b32.xlu0 %v1010_v40, %s1372_s3 }
0x374d   : > { %v1014_v41 = vpop.permute.xlu1 %1013  ;;  %v1012_v42 = vpop.permute.xlu0 %1011 }
0x374e   : > { %v1015_v43 = vsel %vm1485_vm9, %v1012_v42, %v1014_v41 }
0x374f   : > { %v1016_v44 = vadd.f32 %v1015_v43, %v1010_v40 }
0x3751   : > { %1019 = vrot.lane.b32.xlu1 %v1016_v44, %s1373_s4  ;;  %1017 = vrot.lane.b32.xlu0 %v1016_v44, %s1374_s5 }
0x37c3   : > { %v1020_v45 = vpop.permute.xlu1 %1019  ;;  %v1018_v46 = vpop.permute.xlu0 %1017 }
0x37c4   : > { %v1021_v47 = vsel %vm1493_vm10, %v1018_v46, %v1020_v45 }
0x37c5   : > { %v1022_v49 = vadd.f32 %v1021_v47, %v1016_v44 }
0x37c7   : > { %1025 = vrot.lane.b32.xlu1 %v1022_v49, %s1375_s12  ;;  %1023 = vrot.lane.b32.xlu0 %v1022_v49, %s1376_s13 }
0x3839   : > { %v1026_v50 = vpop.permute.xlu1 %1025  ;;  %v1024_v51 = vpop.permute.xlu0 %1023 }
0x383a   : > { %v1027_v52 = vsel %vm1501_vm11, %v1024_v51, %v1026_v50 }
0x383b   : > { %v1028_v54 = vadd.f32 %v1027_v52, %v1022_v49 }
0x383d   : > { %vm1029_vm5 = vcmp.ge.f32.partialorder %v1028_v54, 1.0 }
0x383e   : > { %v1030_v55 = vsel %vm1029_vm5, %v990_v26, %v989_v25 }
0x383f   : > { %v1031_v56 = vadd.f32 9.536743e-07, %v1030_v55 }
0x3841   : > { %vm1032_vm12 = vcmp.gt.f32.partialorder %v1455_v48, %v1031_v56 }
0x3842   : > { %v1033_v57 = vsel %vm1032_vm12, 1.0, %v1364_v11  ;;  %v1070_v58 = vsel %vm1032_vm12, %v1455_v48, 0.0 }
0x3843   : > { %1036 = vrot.lane.b32.xlu1 %v1033_v57, %s1366_s26  ;;  %1034 = vrot.lane.b32.xlu0 %v1033_v57, %s1365_s25 }
0x3847   : > { %1073 = vrot.lane.b32.xlu1 %v1070_v58, %s1366_s26  ;;  %1071 = vrot.lane.b32.xlu0 %v1070_v58, %s1365_s25  ;;  %s1127_s25 = scalar_lea.hbm %s2074_s1, %s1210_s20  ;;  %s1115_s26 = scalar_lea.sflag [#allocation3], %s127_s15 }
0x38b5   : > { %v1037_v60 = vpop.permute.xlu1 %1036  ;;  %v1035_v61 = vpop.permute.xlu0 %1034 }
0x38b6   : > { %v1038_v62 = vsel %vm1461_vm6, %v1035_v61, %v1037_v60 }
0x38b7   : > { %v1039_v63 = vadd.f32 %v1038_v62, %v1033_v57 }
0x38b9   : > { %v1074_v1 = vpop.permute.xlu1 %1073  ;;  %1042 = vrot.lane.b32.xlu1 %v1039_v63, %s1368_s28  ;;  %1040 = vrot.lane.b32.xlu0 %v1039_v63, %s1367_s27  ;;  %v1072_v11 = vpop.permute.xlu0 %1071 }
0x38ba   : > { %v1075_v2 = vsel %vm1461_vm6, %v1072_v11, %v1074_v1 }
0x38bb   : > { %v1076_v3 = vadd.f32 %v1075_v2, %v1070_v58 }
0x38bd   : > { %1079 = vrot.lane.b32.xlu1 %v1076_v3, %s1368_s28  ;;  %1077 = vrot.lane.b32.xlu0 %v1076_v3, %s1367_s27  ;;  %s1286_s27 = scalar_lea.vmem %s1130_s22, 64  ;;  %s1378_s28 = smov [#allocation2]  }
0x38be   : > { %p1287_p12 = scmp.ne.s32.totalorder %s1130_s22, %s1286_s27 }
0x38c0   : > { %p1288_p13 = pnand %p1287_p12, %p1429_p4 }
0x38c2   : > { %p1289_p0 = pneg %p1288_p13 }
0x392b   : > { %v1043_v4 = vpop.permute.xlu1 %1042  ;;  %v1041_v5 = vpop.permute.xlu0 %1040 }
0x392c   : > { %v1044_v7 = vsel %vm1469_vm7, %v1041_v5, %v1043_v4 }
0x392d   : > { %v1045_v8 = vadd.f32 %v1044_v7, %v1039_v63 }
0x392f   : > { %v1080_v9 = vpop.permute.xlu1 %1079  ;;  %1048 = vrot.lane.b32.xlu1 %v1045_v8, %s1369_s29  ;;  %1046 = vrot.lane.b32.xlu0 %v1045_v8, %s1370_s30  ;;  %v1078_v10 = vpop.permute.xlu0 %1077 }
0x3930   : > { %v1081_v53 = vsel %vm1469_vm7, %v1078_v10, %v1080_v9 }
0x3931   : > { %v1082_v12 = vadd.f32 %v1081_v53, %v1076_v3 }
0x3933   : > { %1085 = vrot.lane.b32.xlu1 %v1082_v12, %s1369_s29  ;;  %1083 = vrot.lane.b32.xlu0 %v1082_v12, %s1370_s30  ;;  %s1290_s29 = sshll.u32 %s1378_s28, 4  ;;  %s1291_s29 = int_to_ptr.vmem [resolvable:$false] %s1290_s29 }
0x3934   : > { %s1292_s9 = scalar_lea.vmem %s1291_s29, 128  ;;  %p1293_p1 = scmp.lt.s32.totalorder %s1130_s22, %s1291_s29 }
0x3935   : > { %p1294_p2 = scmp.lt.s32.totalorder %s1292_s9, %s1286_s27 }
0x3937   : > { %p1295_p3 = por %p1294_p2, %p1293_p1 }
0x3939   : > { %p1296_p5 = pnand %p1295_p3, %p1289_p0 }
0x39a1   : > { %v1049_v14 = vpop.permute.xlu1 %1048  ;;  %v1047_v15 = vpop.permute.xlu0 %1046 }
0x39a2   : > { %v1050_v16 = vsel %vm1477_vm8, %v1047_v15, %v1049_v14 }
0x39a3   : > { %v1051_v17 = vadd.f32 %v1050_v16, %v1045_v8 }
0x39a5   : > { %v1086_v18 = vpop.permute.xlu1 %1085  ;;  %1054 = vrot.lane.b32.xlu1 %v1051_v17, %s1371_s2  ;;  %1052 = vrot.lane.b32.xlu0 %v1051_v17, %s1372_s3  ;;  %v1084_v20 = vpop.permute.xlu0 %1083 }
0x39a6   : > { %v1087_v59 = vsel %vm1477_vm8, %v1084_v20, %v1086_v18 }
0x39a7   : > { %v1088_v21 = vadd.f32 %v1087_v59, %v1082_v12 }
0x39a9   : > { %1091 = vrot.lane.b32.xlu1 %v1088_v21, %s1371_s2  ;;  %1089 = vrot.lane.b32.xlu0 %v1088_v21, %s1372_s3 }
0x3a17   : > { %v1055_v22 = vpop.permute.xlu1 %1054  ;;  %v1053_v23 = vpop.permute.xlu0 %1052 }
0x3a18   : > { %v1056_v24 = vsel %vm1485_vm9, %v1053_v23, %v1055_v22 }
0x3a19   : > { %v1057_v25 = vadd.f32 %v1056_v24, %v1051_v17 }
0x3a1b   : > { %v1092_v26 = vpop.permute.xlu1 %1091  ;;  %1060 = vrot.lane.b32.xlu1 %v1057_v25, %s1373_s4  ;;  %1058 = vrot.lane.b32.xlu0 %v1057_v25, %s1374_s5  ;;  %v1090_v27 = vpop.permute.xlu0 %1089 }
0x3a1c   : > { %v1093_v0 = vsel %vm1485_vm9, %v1090_v27, %v1092_v26 }
0x3a1d   : > { %v1094_v28 = vadd.f32 %v1093_v0, %v1088_v21 }
0x3a1f   : > { %1097 = vrot.lane.b32.xlu1 %v1094_v28, %s1373_s4  ;;  %1095 = vrot.lane.b32.xlu0 %v1094_v28, %s1374_s5 }
0x3a8d   : > { %v1061_v29 = vpop.permute.xlu1 %1060  ;;  %v1059_v30 = vpop.permute.xlu0 %1058 }
0x3a8e   : > { %v1062_v31 = vsel %vm1493_vm10, %v1059_v30, %v1061_v29 }
0x3a8f   : > { %v1063_v32 = vadd.f32 %v1062_v31, %v1057_v25 }
0x3a91   : > { %v1098_v33 = vpop.permute.xlu1 %1097  ;;  %1066 = vrot.lane.b32.xlu1 %v1063_v32, %s1375_s12  ;;  %1064 = vrot.lane.b32.xlu0 %v1063_v32, %s1376_s13  ;;  %v1096_v34 = vpop.permute.xlu0 %1095 }
0x3a92   : > { %v1099_v6 = vsel %vm1493_vm10, %v1096_v34, %v1098_v33 }
0x3a93   : > { %v1100_v35 = vadd.f32 %v1099_v6, %v1094_v28 }
0x3a95   : > { %1103 = vrot.lane.b32.xlu1 %v1100_v35, %s1375_s12  ;;  %1101 = vrot.lane.b32.xlu0 %v1100_v35, %s1376_s13 }
0x3b03   : > { %v1067_v36 = vpop.permute.xlu1 %1066  ;;  %v1065_v37 = vpop.permute.xlu0 %1064 }
0x3b04   : > { %v1068_v38 = vsel %vm1501_vm11, %v1065_v37, %v1067_v36 }
0x3b05   : > { %v1069_v39 = vadd.f32 %v1068_v38, %v1063_v32 }
0x3b07   : > { %v1108_v40 = vmax.f32 %v1069_v39, 1.0  ;;  %v1104_v41 = vpop.permute.xlu1 %1103  ;;  %v1102_v42 = vpop.permute.xlu0 %1101 }
0x3b08   : > { %v1105_v13 = vsel %vm1501_vm11, %v1102_v42, %v1104_v41 }
0x3b09   : > { %1284 = vrcp.f32 %v1108_v40  ;;  %v1106_v43 = vadd.f32 %v1105_v13, %v1100_v35 }
0x3b0b   : > { %v1208_v44 = vadd.f32 -1.0, %v1106_v43 }
0x3b16   : > { %v1285_v45 = vpop.eup %1284 }
0x3b17   : > { %v1110_v46 = vmul.f32 %v1285_v45, %v1208_v44 }
0x3b19   : > { %v1111_v47 = vsub.f32 %v1455_v48, %v1110_v46 }
0x3b1b   : > { %v1112_v49 = vmax.f32 %v1111_v47, 0.0 }
0x3b1d   : > { %1113 = vst [vmem:[%s129_s21] sm:$0xf] %v1112_v49 }
0x3b1e   : > { %1299 = shalt.err (!%p1296_p5)
}
0x3b1f   : > { %s1300_s30 = scalar_lea.hbm %s1127_s25, 64  ;;  %s1304_s4 = scalar_lea.hbm %s2074_s1, 128 }
0x3b20   : > { %p1301_p6 = scmp.ne.s32.totalorder %s1127_s25, %s1300_s30  ;;  %p1305_p10 = scmp.lt.s32.totalorder %s1127_s25, %s2074_s1 }
0x3b21   : > { %p1306_p11 = scmp.lt.s32.totalorder %s1304_s4, %s1300_s30 }
0x3b22   : > { %p1302_p7 = pnand %p1301_p6, %p1429_p4 }
0x3b23   : > { %p1307_p12 = por %p1306_p11, %p1305_p10 }
0x3b24   : > { %p1303_p9 = pneg %p1302_p7 }
0x3b26   : > { %p1308_p13 = pnand %p1307_p12, %p1303_p9 }
0x3b28   : > { %1311 = shalt.err (!%p1308_p13)
}
0x3b29   : > { %1213 = dma.vmem_to_hbm [thread:$0]  (%p1429_p4), %s1130_s22, 64, %s1127_s25, %s1115_s26  }
0x3b2a PF: > { %p1219_p0 = scmp.ge.s32.totalorder %s1362_s11, 2  ;;  %s1141_s13 = sand.u32 1, %s1342_s6  }
0x3b2b   : > { %s1142_s15 = scalar_lea.sflag [#allocation3], %s1141_s13 }
0x3b2c   : > { %p1216_p1 = pnand %p1219_p0, %p1436_p8 }
0x3b2e   : > { %p1217_p2 = pneg %p1216_p1 }
0x3b30   : > { %1337 = dma.done.wait (%p1217_p2), %s1142_s15, 64  }
0x3b31   : > { %1339 = vsyncadd (%p1217_p2), %s1142_s15, 4294967232  ;;  %s14_s11 = sadd.s32 1, %s1362_s11   ;;  %s2089_s6 = smov %s1346_s7 }
0x3b32   : > { %p11_p3 = scmp.ge.s32.totalorder %s14_s11, 4   ;;  %s2090_s7 = smov %s1350_s8 }
0x3b33   : > { %s2091_s8 = smov %s1442_s19  ;;  %s2092_s9 = smov %s1358_s10 }
0x3b34   : > { %s2093_s10 = smov %s2095_s14  ;;  %13 = sbr.rel (!%p11_p3) target bundleno = 4 (0x4), region = 59 }
0x3b39   :  { %1147 = vsyncpa [#allocation3], 1 }
0x3b3a   :  { %1149 = vsyncpa [#allocation3 + $0x1], 1 }

</bundles_post_ra>
